<compile_context>
chip_gen: v5e
topology: v5e:2x2
jax: 0.10.0
libtpu: 0.0.40
codegen_flags: <defaults>
</compile_context>

<pallas_src>
import jax
import jax.numpy as jnp
from jax.experimental import pallas as pl
from jax.experimental.pallas import tpu as pltpu

Z_DIM = 64
Z_PAD = 128                  # pad latent dim to a full MXU contraction tile
IMG_DIM = 28 * 28            # 784
IMG_PAD = 896                # 7 * 128 -> lane-dense output stores
H1, H2, H3 = 256, 512, 256
BN_EPS = 1e-5

# Offsets into the packed (3, VEC_W) bias/gamma/beta blob (all 128-aligned).
OFF1 = 0
OFF2 = OFF1 + H1             # 256
OFF3 = OFF2 + H2             # 768
OFF4 = OFF3 + H3             # 1024
VEC_W = OFF4 + IMG_PAD       # 1920


def generator_kernel(x_ref, w1_ref, w2_ref, w3_ref, w4_ref, vec_ref, o_ref):
    vec = vec_ref[...]                                   # (3, VEC_W) f32

    def bn_relu(h, off, width):
        # BatchNorm1d training mode (biased variance), one-pass stats,
        # gamma folded into the scale. All math in f32.
        b = vec[0:1, off:off + width]
        g = vec[1:2, off:off + width]
        be = vec[2:3, off:off + width]
        h = h + b
        mean = jnp.mean(h, axis=0, keepdims=True)
        msq = jnp.mean(h * h, axis=0, keepdims=True)
        var = jnp.maximum(msq - mean * mean, 0.0)
        scale = jax.lax.rsqrt(var + BN_EPS) * g
        shift = be - mean * scale
        return jnp.maximum(h * scale + shift, 0.0)

    x = x_ref[...]                                       # (B, Z_PAD) bf16

    # Linear(z, 256) -> BN -> ReLU
    h = jnp.dot(x, w1_ref[...], preferred_element_type=jnp.float32)
    h = bn_relu(h, OFF1, H1)

    # Linear(256, 512) -> BN -> ReLU
    h = jnp.dot(h.astype(jnp.bfloat16), w2_ref[...],
                preferred_element_type=jnp.float32)
    h = bn_relu(h, OFF2, H2)

    # Linear(512, 256) -> BN -> ReLU
    h = jnp.dot(h.astype(jnp.bfloat16), w3_ref[...],
                preferred_element_type=jnp.float32)
    h = bn_relu(h, OFF3, H3)

    # Linear(256, img_dim_padded) -> Tanh
    h = jnp.dot(h.astype(jnp.bfloat16), w4_ref[...],
                preferred_element_type=jnp.float32)
    h = h + vec[0:1, OFF4:OFF4 + IMG_PAD]
    o_ref[...] = jnp.tanh(h)


def generator_forward(x, kparams):
    """x: (B, Z_DIM) f32. Returns (B, IMG_DIM) f32."""
    B = x.shape[0]
    # Cast latent to bf16 and zero-pad its feature dim to 128 (zero rows of w1
    # contribute exactly nothing, so semantics are preserved).
    x_pad = jnp.pad(x.astype(jnp.bfloat16), ((0, 0), (0, Z_PAD - Z_DIM)))

    vmem = pl.BlockSpec(memory_space=pltpu.MemorySpace.VMEM)
    out = pl.pallas_call(
        generator_kernel,
        out_shape=jax.ShapeDtypeStruct((B, IMG_PAD), jnp.float32),
        in_specs=[vmem] * 6,
        out_specs=vmem,
        compiler_params=pltpu.CompilerParams(
            vmem_limit_bytes=48 * 1024 * 1024),   # headroom for large batches
    )(x_pad, kparams["w1"], kparams["w2"], kparams["w3"], kparams["w4"],
      kparams["vec"])
    return out[:, :IMG_DIM]


def init_params(key):
    """Torch-equivalent f32 parameters (weights stored (in, out))."""
    ks = jax.random.split(key, 8)

    def linear(kw, kb, fan_in, fan_out):
        bound = float(fan_in) ** -0.5
        w = jax.random.uniform(kw, (fan_in, fan_out), jnp.float32, -bound, bound)
        b = jax.random.uniform(kb, (fan_out,), jnp.float32, -bound, bound)
        return w, b

    w1, b1 = linear(ks[0], ks[1], Z_DIM, H1)
    w2, b2 = linear(ks[2], ks[3], H1, H2)
    w3, b3 = linear(ks[4], ks[5], H2, H3)
    w4, b4 = linear(ks[6], ks[7], H3, IMG_DIM)

    def bn(n):
        return jnp.ones((n,), jnp.float32), jnp.zeros((n,), jnp.float32)

    g1, be1 = bn(H1)
    g2, be2 = bn(H2)
    g3, be3 = bn(H3)

    return dict(w1=w1, b1=b1, g1=g1, be1=be1,
                w2=w2, b2=b2, g2=g2, be2=be2,
                w3=w3, b3=b3, g3=g3, be3=be3,
                w4=w4, b4=b4)


def pack_params(p):
    """Kernel layout: bf16 padded weights + one f32 (3, VEC_W) vector blob."""
    w1 = jnp.zeros((Z_PAD, H1), jnp.float32).at[:Z_DIM].set(p["w1"])
    w4 = jnp.zeros((H3, IMG_PAD), jnp.float32).at[:, :IMG_DIM].set(p["w4"])

    vec = jnp.zeros((3, VEC_W), jnp.float32)
    vec = vec.at[0, OFF1:OFF1 + H1].set(p["b1"])
    vec = vec.at[0, OFF2:OFF2 + H2].set(p["b2"])
    vec = vec.at[0, OFF3:OFF3 + H3].set(p["b3"])
    vec = vec.at[0, OFF4:OFF4 + IMG_DIM].set(p["b4"])
    vec = vec.at[1, OFF1:OFF1 + H1].set(p["g1"])
    vec = vec.at[1, OFF2:OFF2 + H2].set(p["g2"])
    vec = vec.at[1, OFF3:OFF3 + H3].set(p["g3"])
    vec = vec.at[2, OFF1:OFF1 + H1].set(p["be1"])
    vec = vec.at[2, OFF2:OFF2 + H2].set(p["be2"])
    vec = vec.at[2, OFF3:OFF3 + H3].set(p["be3"])

    return dict(w1=w1.astype(jnp.bfloat16),
                w2=p["w2"].astype(jnp.bfloat16),
                w3=p["w3"].astype(jnp.bfloat16),
                w4=w4.astype(jnp.bfloat16),
                vec=vec)


def reference_f32(x, p):
    """Pure-f32 JAX equivalent of the PyTorch module (training-mode BN)."""
    def bn(h, gamma, beta):
        m = jnp.mean(h, axis=0, keepdims=True)
        v = jnp.mean((h - m) ** 2, axis=0, keepdims=True)
        return (h - m) / jnp.sqrt(v + BN_EPS) * gamma + beta

    h = jnp.maximum(bn(x @ p["w1"] + p["b1"], p["g1"], p["be1"]), 0.0)
    h = jnp.maximum(bn(h @ p["w2"] + p["b2"], p["g2"], p["be2"]), 0.0)
    h = jnp.maximum(bn(h @ p["w3"] + p["b3"], p["g3"], p["be3"]), 0.0)
    return jnp.tanh(h @ p["w4"] + p["b4"])


def reference_bf16(x, p):
    """JAX reference that mirrors the kernel numerics (bf16 matmuls, f32 rest)."""
    def dot_bf16(a, w):
        return jnp.dot(a.astype(jnp.bfloat16), w.astype(jnp.bfloat16),
                       preferred_element_type=jnp.float32)

    def bn_relu(h, b, g, be):
        h = h + b
        mean = jnp.mean(h, axis=0, keepdims=True)
        var = jnp.maximum(jnp.mean(h * h, axis=0, keepdims=True) - mean * mean, 0.0)
        scale = jax.lax.rsqrt(var + BN_EPS) * g
        return jnp.maximum(h * scale + (be - mean * scale), 0.0)

    h = bn_relu(dot_bf16(x, p["w1"]), p["b1"], p["g1"], p["be1"])
    h = bn_relu(dot_bf16(h, p["w2"]), p["b2"], p["g2"], p["be2"])
    h = bn_relu(dot_bf16(h, p["w3"]), p["b3"], p["g3"], p["be3"])
    return jnp.tanh(dot_bf16(h, p["w4"]) + p["b4"])


if __name__ == "__main__":
    key = jax.random.PRNGKey(0)
    k_param, k_x = jax.random.split(key)

    # B=128 fills the MXU M/sublane dimension on every TPU generation while
    # staying tiny (<0.5 MB of activations). The whole batch is one block, so
    # BatchNorm statistics remain full-batch (PyTorch training semantics).
    B = 128
    params = init_params(k_param)
    kparams = pack_params(params)
    x = jax.random.normal(k_x, (B, Z_DIM), jnp.float32)

    out = jax.block_until_ready(generator_forward(x, kparams))
    assert out.shape == (B, IMG_DIM), out.shape

    # Structural check: matches a JAX reference with identical bf16/f32 numerics.
    ref_mirror = reference_bf16(x, params)
    assert float(jnp.max(jnp.abs(out - ref_mirror))) < 2e-3, "mismatch vs bf16 ref"

    # Semantic check: close to the pure-f32 PyTorch-equivalent forward
    # (bf16 matmul operands cost ~1e-2 absolute on a tanh-bounded output).
    ref = reference_f32(x, params)
    assert float(jnp.max(jnp.abs(out - ref))) < 5e-2, "mismatch vs f32 ref"

    print("KERNEL_OK")
</pallas_src>

<mosaic_0001>
module attributes {stable_mosaic.version = 11 : i64} {
  func.func @generator_kernel(%arg0: memref<128x128xbf16, #tpu.memory_space<vmem>>, %arg1: memref<128x256xbf16, #tpu.memory_space<vmem>>, %arg2: memref<256x512xbf16, #tpu.memory_space<vmem>>, %arg3: memref<512x256xbf16, #tpu.memory_space<vmem>>, %arg4: memref<256x896xbf16, #tpu.memory_space<vmem>>, %arg5: memref<3x1920xf32, #tpu.memory_space<vmem>>, %arg6: memref<128x896xf32, #tpu.memory_space<vmem>>) attributes {dimension_semantics = [], scalar_prefetch = 0 : i64, scratch_operands = 0 : i64, tpu.core_type = #tpu.core_type<tc>} {
    %c0 = arith.constant 0 : index
    %c0_0 = arith.constant 0 : index
    %0 = vector.load %arg5[%c0, %c0_0] : memref<3x1920xf32, #tpu.memory_space<vmem>>, vector<3x1920xf32>
    %c0_1 = arith.constant 0 : index
    %c0_2 = arith.constant 0 : index
    %1 = vector.load %arg0[%c0_1, %c0_2] : memref<128x128xbf16, #tpu.memory_space<vmem>>, vector<128x128xbf16>
    %c0_3 = arith.constant 0 : index
    %c0_4 = arith.constant 0 : index
    %2 = vector.load %arg1[%c0_3, %c0_4] : memref<128x256xbf16, #tpu.memory_space<vmem>>, vector<128x256xbf16>
    %cst = arith.constant dense<0.000000e+00> : vector<128x256xf32>
    %3 = tpu.matmul %1, %2, %cst {dimension_numbers = #tpu.dot_dimension_numbers<[1], [0], [0], [1], [0, 0, 1, 1], [], []>} : vector<128x128xbf16>, vector<128x256xbf16>, vector<128x256xf32> -> vector<128x256xf32>
    %4 = vector.extract_strided_slice %0 {offsets = [0, 0], sizes = [1, 256], strides = [1, 1]} : vector<3x1920xf32> to vector<1x256xf32>
    %5 = vector.extract_strided_slice %0 {offsets = [1, 0], sizes = [1, 256], strides = [1, 1]} : vector<3x1920xf32> to vector<1x256xf32>
    %6 = vector.extract_strided_slice %0 {offsets = [2, 0], sizes = [1, 256], strides = [1, 1]} : vector<3x1920xf32> to vector<1x256xf32>
    %7 = vector.broadcast %4 : vector<1x256xf32> to vector<128x256xf32>
    %8 = arith.addf %3, %7 : vector<128x256xf32>
    %cst_5 = arith.constant dense<0.000000e+00> : vector<256xf32>
    %9 = vector.multi_reduction <add>, %8, %cst_5 [0] : vector<128x256xf32> to vector<256xf32>
    %10 = vector.shape_cast %9 : vector<256xf32> to vector<1x256xf32>
    %cst_6 = arith.constant 1.280000e+02 : f32
    %11 = vector.broadcast %cst_6 : f32 to vector<1x256xf32>
    %12 = arith.divf %10, %11 : vector<1x256xf32>
    %13 = arith.mulf %8, %8 : vector<128x256xf32>
    %cst_7 = arith.constant dense<0.000000e+00> : vector<256xf32>
    %14 = vector.multi_reduction <add>, %13, %cst_7 [0] : vector<128x256xf32> to vector<256xf32>
    %15 = vector.shape_cast %14 : vector<256xf32> to vector<1x256xf32>
    %cst_8 = arith.constant 1.280000e+02 : f32
    %16 = vector.broadcast %cst_8 : f32 to vector<1x256xf32>
    %17 = arith.divf %15, %16 : vector<1x256xf32>
    %18 = arith.mulf %12, %12 : vector<1x256xf32>
    %19 = arith.subf %17, %18 : vector<1x256xf32>
    %cst_9 = arith.constant 0.000000e+00 : f32
    %20 = vector.broadcast %cst_9 : f32 to vector<1x256xf32>
    %21 = arith.maximumf %19, %20 : vector<1x256xf32>
    %cst_10 = arith.constant 9.99999974E-6 : f32
    %22 = vector.broadcast %cst_10 : f32 to vector<1x256xf32>
    %23 = arith.addf %21, %22 : vector<1x256xf32>
    %24 = math.rsqrt %23 : vector<1x256xf32>
    %25 = arith.mulf %24, %5 : vector<1x256xf32>
    %26 = arith.mulf %12, %25 : vector<1x256xf32>
    %27 = arith.subf %6, %26 : vector<1x256xf32>
    %28 = vector.broadcast %25 : vector<1x256xf32> to vector<128x256xf32>
    %29 = arith.mulf %8, %28 : vector<128x256xf32>
    %30 = vector.broadcast %27 : vector<1x256xf32> to vector<128x256xf32>
    %31 = arith.addf %29, %30 : vector<128x256xf32>
    %cst_11 = arith.constant 0.000000e+00 : f32
    %32 = vector.broadcast %cst_11 : f32 to vector<128x256xf32>
    %33 = arith.maximumf %31, %32 : vector<128x256xf32>
    %34 = arith.truncf %33 : vector<128x256xf32> to vector<128x256xbf16>
    %c0_12 = arith.constant 0 : index
    %c0_13 = arith.constant 0 : index
    %35 = vector.load %arg2[%c0_12, %c0_13] : memref<256x512xbf16, #tpu.memory_space<vmem>>, vector<256x512xbf16>
    %cst_14 = arith.constant dense<0.000000e+00> : vector<128x512xf32>
    %36 = tpu.matmul %34, %35, %cst_14 {dimension_numbers = #tpu.dot_dimension_numbers<[1], [0], [0], [1], [0, 0, 1, 1], [], []>} : vector<128x256xbf16>, vector<256x512xbf16>, vector<128x512xf32> -> vector<128x512xf32>
    %37 = vector.extract_strided_slice %0 {offsets = [0, 256], sizes = [1, 512], strides = [1, 1]} : vector<3x1920xf32> to vector<1x512xf32>
    %38 = vector.extract_strided_slice %0 {offsets = [1, 256], sizes = [1, 512], strides = [1, 1]} : vector<3x1920xf32> to vector<1x512xf32>
    %39 = vector.extract_strided_slice %0 {offsets = [2, 256], sizes = [1, 512], strides = [1, 1]} : vector<3x1920xf32> to vector<1x512xf32>
    %40 = vector.broadcast %37 : vector<1x512xf32> to vector<128x512xf32>
    %41 = arith.addf %36, %40 : vector<128x512xf32>
    %cst_15 = arith.constant dense<0.000000e+00> : vector<512xf32>
    %42 = vector.multi_reduction <add>, %41, %cst_15 [0] : vector<128x512xf32> to vector<512xf32>
    %43 = vector.shape_cast %42 : vector<512xf32> to vector<1x512xf32>
    %cst_16 = arith.constant 1.280000e+02 : f32
    %44 = vector.broadcast %cst_16 : f32 to vector<1x512xf32>
    %45 = arith.divf %43, %44 : vector<1x512xf32>
    %46 = arith.mulf %41, %41 : vector<128x512xf32>
    %cst_17 = arith.constant dense<0.000000e+00> : vector<512xf32>
    %47 = vector.multi_reduction <add>, %46, %cst_17 [0] : vector<128x512xf32> to vector<512xf32>
    %48 = vector.shape_cast %47 : vector<512xf32> to vector<1x512xf32>
    %cst_18 = arith.constant 1.280000e+02 : f32
    %49 = vector.broadcast %cst_18 : f32 to vector<1x512xf32>
    %50 = arith.divf %48, %49 : vector<1x512xf32>
    %51 = arith.mulf %45, %45 : vector<1x512xf32>
    %52 = arith.subf %50, %51 : vector<1x512xf32>
    %cst_19 = arith.constant 0.000000e+00 : f32
    %53 = vector.broadcast %cst_19 : f32 to vector<1x512xf32>
    %54 = arith.maximumf %52, %53 : vector<1x512xf32>
    %cst_20 = arith.constant 9.99999974E-6 : f32
    %55 = vector.broadcast %cst_20 : f32 to vector<1x512xf32>
    %56 = arith.addf %54, %55 : vector<1x512xf32>
    %57 = math.rsqrt %56 : vector<1x512xf32>
    %58 = arith.mulf %57, %38 : vector<1x512xf32>
    %59 = arith.mulf %45, %58 : vector<1x512xf32>
    %60 = arith.subf %39, %59 : vector<1x512xf32>
    %61 = vector.broadcast %58 : vector<1x512xf32> to vector<128x512xf32>
    %62 = arith.mulf %41, %61 : vector<128x512xf32>
    %63 = vector.broadcast %60 : vector<1x512xf32> to vector<128x512xf32>
    %64 = arith.addf %62, %63 : vector<128x512xf32>
    %cst_21 = arith.constant 0.000000e+00 : f32
    %65 = vector.broadcast %cst_21 : f32 to vector<128x512xf32>
    %66 = arith.maximumf %64, %65 : vector<128x512xf32>
    %67 = arith.truncf %66 : vector<128x512xf32> to vector<128x512xbf16>
    %c0_22 = arith.constant 0 : index
    %c0_23 = arith.constant 0 : index
    %68 = vector.load %arg3[%c0_22, %c0_23] : memref<512x256xbf16, #tpu.memory_space<vmem>>, vector<512x256xbf16>
    %cst_24 = arith.constant dense<0.000000e+00> : vector<128x256xf32>
    %69 = tpu.matmul %67, %68, %cst_24 {dimension_numbers = #tpu.dot_dimension_numbers<[1], [0], [0], [1], [0, 0, 1, 1], [], []>} : vector<128x512xbf16>, vector<512x256xbf16>, vector<128x256xf32> -> vector<128x256xf32>
    %70 = vector.extract_strided_slice %0 {offsets = [0, 768], sizes = [1, 256], strides = [1, 1]} : vector<3x1920xf32> to vector<1x256xf32>
    %71 = vector.extract_strided_slice %0 {offsets = [1, 768], sizes = [1, 256], strides = [1, 1]} : vector<3x1920xf32> to vector<1x256xf32>
    %72 = vector.extract_strided_slice %0 {offsets = [2, 768], sizes = [1, 256], strides = [1, 1]} : vector<3x1920xf32> to vector<1x256xf32>
    %73 = vector.broadcast %70 : vector<1x256xf32> to vector<128x256xf32>
    %74 = arith.addf %69, %73 : vector<128x256xf32>
    %cst_25 = arith.constant dense<0.000000e+00> : vector<256xf32>
    %75 = vector.multi_reduction <add>, %74, %cst_25 [0] : vector<128x256xf32> to vector<256xf32>
    %76 = vector.shape_cast %75 : vector<256xf32> to vector<1x256xf32>
    %cst_26 = arith.constant 1.280000e+02 : f32
    %77 = vector.broadcast %cst_26 : f32 to vector<1x256xf32>
    %78 = arith.divf %76, %77 : vector<1x256xf32>
    %79 = arith.mulf %74, %74 : vector<128x256xf32>
    %cst_27 = arith.constant dense<0.000000e+00> : vector<256xf32>
    %80 = vector.multi_reduction <add>, %79, %cst_27 [0] : vector<128x256xf32> to vector<256xf32>
    %81 = vector.shape_cast %80 : vector<256xf32> to vector<1x256xf32>
    %cst_28 = arith.constant 1.280000e+02 : f32
    %82 = vector.broadcast %cst_28 : f32 to vector<1x256xf32>
    %83 = arith.divf %81, %82 : vector<1x256xf32>
    %84 = arith.mulf %78, %78 : vector<1x256xf32>
    %85 = arith.subf %83, %84 : vector<1x256xf32>
    %cst_29 = arith.constant 0.000000e+00 : f32
    %86 = vector.broadcast %cst_29 : f32 to vector<1x256xf32>
    %87 = arith.maximumf %85, %86 : vector<1x256xf32>
    %cst_30 = arith.constant 9.99999974E-6 : f32
    %88 = vector.broadcast %cst_30 : f32 to vector<1x256xf32>
    %89 = arith.addf %87, %88 : vector<1x256xf32>
    %90 = math.rsqrt %89 : vector<1x256xf32>
    %91 = arith.mulf %90, %71 : vector<1x256xf32>
    %92 = arith.mulf %78, %91 : vector<1x256xf32>
    %93 = arith.subf %72, %92 : vector<1x256xf32>
    %94 = vector.broadcast %91 : vector<1x256xf32> to vector<128x256xf32>
    %95 = arith.mulf %74, %94 : vector<128x256xf32>
    %96 = vector.broadcast %93 : vector<1x256xf32> to vector<128x256xf32>
    %97 = arith.addf %95, %96 : vector<128x256xf32>
    %cst_31 = arith.constant 0.000000e+00 : f32
    %98 = vector.broadcast %cst_31 : f32 to vector<128x256xf32>
    %99 = arith.maximumf %97, %98 : vector<128x256xf32>
    %100 = arith.truncf %99 : vector<128x256xf32> to vector<128x256xbf16>
    %c0_32 = arith.constant 0 : index
    %c0_33 = arith.constant 0 : index
    %101 = vector.load %arg4[%c0_32, %c0_33] : memref<256x896xbf16, #tpu.memory_space<vmem>>, vector<256x896xbf16>
    %cst_34 = arith.constant dense<0.000000e+00> : vector<128x896xf32>
    %102 = tpu.matmul %100, %101, %cst_34 {dimension_numbers = #tpu.dot_dimension_numbers<[1], [0], [0], [1], [0, 0, 1, 1], [], []>} : vector<128x256xbf16>, vector<256x896xbf16>, vector<128x896xf32> -> vector<128x896xf32>
    %103 = vector.extract_strided_slice %0 {offsets = [0, 1024], sizes = [1, 896], strides = [1, 1]} : vector<3x1920xf32> to vector<1x896xf32>
    %104 = vector.broadcast %103 : vector<1x896xf32> to vector<128x896xf32>
    %105 = arith.addf %102, %104 : vector<128x896xf32>
    %106 = math.tanh %105 : vector<128x896xf32>
    %c0_35 = arith.constant 0 : index
    %c0_36 = arith.constant 0 : index
    %107 = vector.load %arg6[%c0_35, %c0_36] : memref<128x896xf32, #tpu.memory_space<vmem>>, vector<128x896xf32>
    tpu.vector_store %arg6[%c0_35, %c0_36], %106 {strides = array<i32>} : memref<128x896xf32, #tpu.memory_space<vmem>>, vector<128x896xf32>,
    return
  }
}

</mosaic_0001>

<bundles_post_ra>
// kernel: tpu_custom_call.1
= control target key start
LH: loop header
LB: loop body
LE: loop exit
PB: predicated region body
PF: predicated region fallthrough
CT: control target
= control target key end

     0   :  { %11 = vsyncpa [#allocation3], 0  ;;  %s8894_s0 = inlined_call_operand.hbm [shape: bf16[128,128], index: 0, kind: input, shape index: {}]   ;;  %s8895_s1 = inlined_call_operand.hbm [shape: bf16[128,256], index: 1, kind: input, shape index: {}]   ;;  %s8896_s2 = inlined_call_operand.hbm [shape: bf16[256,512], index: 2, kind: input, shape index: {}]   ;;  %s8897_s3 = inlined_call_operand.hbm [shape: bf16[512,256], index: 3, kind: input, shape index: {}]   ;;  %s8898_s4 = inlined_call_operand.hbm [shape: bf16[256,896], index: 4, kind: input, shape index: {}]   ;;  %s8899_s5 = inlined_call_operand.hbm [shape: f32[3,1920], index: 5, kind: input, shape index: {}]   ;;  %s8900_s6 = inlined_call_operand.hbm [shape: f32[128,896], index: 6, kind: output, shape index: {}]  }
   0x1   :  { %12 = vsyncpa [#allocation6], 0 }
   0x2   :  { %13 = vsyncpa [#allocation9], 0 }
   0x3   :  { %14 = vsyncpa [#allocation12], 0  ;;  %s33_s23 = sshll.u32 %s8895_s1, 4  ;;  %s34_s23 = int_to_ptr.hbm [resolvable:$true] %s33_s23 }
   0x4   :  { %15 = vsyncpa [#allocation4], 0  ;;  %s6527_s24 = smov [#allocation5]   ;;  %s59_s28 = sshll.u32 %s8897_s3, 4  ;;  %s60_s28 = int_to_ptr.hbm [resolvable:$true] %s59_s28 }
   0x5   :  { %s35_s25 = sshll.u32 %s6527_s24, 4  ;;  %s6528_s29 = smov 128   ;;  %s36_s25 = int_to_ptr.vmem [resolvable:$true] %s35_s25 }
   0x6   :  { %s6529_s30 = smov 8   ;;  %s6530_s7 = smov [#allocation8]  }
   0x7   :  { %41 = dma.hbm_to_vmem [thread:$0]  %s34_s23, 2048, %s36_s25, [#allocation6], %s6528_s29, %s6528_s29, %s6529_s30  }
   0x8   :  { %s61_s8 = sshll.u32 %s6530_s7, 4  ;;  %s20_s11 = sshll.u32 %s8894_s0, 4  ;;  %s62_s8 = int_to_ptr.vmem [resolvable:$true] %s61_s8  ;;  %s21_s11 = int_to_ptr.hbm [resolvable:$true] %s20_s11 }
   0x9   :  { %67 = dma.hbm_to_vmem [thread:$0]  %s60_s28, 8192, %s62_s8, [#allocation9], %s6528_s29, %s6528_s29, %s6529_s30  }
   0xa   :  { %s6531_s1 = smov [#allocation2]   ;;  %s46_s3 = sshll.u32 %s8896_s2, 4  ;;  %s47_s3 = int_to_ptr.hbm [resolvable:$true] %s46_s3 }
   0xb   :  { %s22_s12 = sshll.u32 %s6531_s1, 4  ;;  %s6532_s15 = smov 64   ;;  %s23_s12 = int_to_ptr.vmem [resolvable:$true] %s22_s12 }
   0xc   :  { %s6533_s16 = smov 4   ;;  %s6534_s17 = smov [#allocation7]  }
   0xd   :  { %28 = dma.hbm_to_vmem [thread:$0]  %s21_s11, 1024, %s23_s12, [#allocation3], %s6532_s15, %s6532_s15, %s6533_s16  }
   0xe   :  { %s48_s18 = sshll.u32 %s6534_s17, 4  ;;  %s6535_s19 = smov 256   ;;  %s49_s18 = int_to_ptr.vmem [resolvable:$true] %s48_s18 }
   0xf   :  { %s6536_s20 = smov 16   ;;  %s72_s22 = sshll.u32 %s8898_s4, 4  ;;  %s73_s22 = int_to_ptr.hbm [resolvable:$true] %s72_s22 }
  0x10   :  { %54 = dma.hbm_to_vmem [thread:$0]  %s47_s3, 8192, %s49_s18, [#allocation6], %s6535_s19, %s6535_s19, %s6536_s20  }
  0x11   :  { %s6537_s23 = smov [#allocation10]   ;;  %s86_s26 = sshll.u32 %s8899_s5, 4  ;;  %s87_s26 = int_to_ptr.hbm [resolvable:$true] %s86_s26 }
  0x12   :  { %s74_s24 = sshll.u32 %s6537_s23, 4  ;;  %s6538_s27 = smov 448   ;;  %s75_s24 = int_to_ptr.vmem [resolvable:$true] %s74_s24 }
  0x13   :  { %s6539_s28 = smov 28   ;;  %s6540_s29 = smov [#allocation11]  }
  0x14   :  { %80 = dma.hbm_to_vmem [thread:$0]  %s73_s22, 14336, %s75_s24, [#allocation9], %s6538_s27, %s6538_s27, %s6539_s28  }
  0x15   :  { %s88_s30 = sshll.u32 %s6540_s29, 4  ;;  %s89_s30 = int_to_ptr.vmem [resolvable:$true] %s88_s30 }
  0x16   :  { %91 = dma.hbm_to_vmem [thread:$0]  %s87_s26, 960, %s89_s30, [#allocation12]  }
  0x17   :  { %6517 = dma.done.wait [#allocation3], 1024  }
  0x18   :  { %6518 = vsyncadd [#allocation3], 4294966272 }
  0x19   :  { %6519 = dma.done.wait [#allocation6], 10240  }
  0x1a   :  { %6520 = vsyncadd [#allocation6], 4294957056 }
  0x1b   :  { %6521 = dma.done.wait [#allocation9], 22528  }
  0x1c   :  { %6522 = vsyncadd [#allocation9], 4294944768 }
  0x1d   :  { %6523 = dma.done.wait [#allocation12], 960  }
  0x1e   :  { %6524 = vsyncadd [#allocation12], 4294966336  ;;  %v4857_v0 = vld [vmem:[#allocation5 + $0x70] sm:$0xf]  ;;  %v5846_v1 = vld [vmem:[#allocation5 + $0x74] sm:$0xf0] }
  0x1f   :  { %v5845_v2 = vld [vmem:[#allocation5 + $0x74] sm:$0xf]  ;;  %v4858_v3 = vor.u32 %v5846_v1, %v4857_v0  ;;  %v4859_v4 = vld [vmem:[#allocation5 + $0x78] sm:$0xf0]  ;;  %v4849_v5 = vld [vmem:[#allocation5 + $0x60] sm:$0xf] }
  0x20   :  { %v5844_v6 = vld [vmem:[#allocation5 + $0x64] sm:$0xf0]  ;;  %v4862_v7 = vor.u32 %v5845_v2, %v4859_v4  ;;  %v5843_v8 = vld [vmem:[#allocation5 + $0x64] sm:$0xf]  ;;  %v4851_v9 = vld [vmem:[#allocation5 + $0x68] sm:$0xf0] }
  0x21   :  { %291 = vmatpush.bf16.msra.mxu0 %v4858_v3  ;;  %v4850_v10 = vor.u32 %v5844_v6, %v4849_v5  ;;  %v4854_v11 = vor.u32 %v5843_v8, %v4851_v9  ;;  %v4841_v12 = vld [vmem:[#allocation5 + $0x50] sm:$0xf]  ;;  %v5842_v13 = vld [vmem:[#allocation5 + $0x54] sm:$0xf0]  ;;  %v5841_v14 = vld [vmem:[#allocation5 + $0x54] sm:$0xf] }
  0x22   :  { %340 = vmatpush.bf16.msra.mxu1 %v4862_v7  ;;  %v4843_v15 = vld [vmem:[#allocation5 + $0x58] sm:$0xf0]  ;;  %v4842_v16 = vor.u32 %v5842_v13, %v4841_v12  ;;  %v4833_v18 = vld [vmem:[#allocation5 + $0x40] sm:$0xf]  ;;  %v5840_v19 = vld [vmem:[#allocation5 + $0x44] sm:$0xf0] }
  0x23   :  { %v4846_v17 = vor.u32 %v5841_v14, %v4843_v15  ;;  %v5839_v20 = vld [vmem:[#allocation5 + $0x44] sm:$0xf]  ;;  %v4835_v21 = vld [vmem:[#allocation5 + $0x48] sm:$0xf0]  ;;  %v4834_v22 = vor.u32 %v5840_v19, %v4833_v18  ;;  %v4825_v24 = vld [vmem:[#allocation5 + $0x30] sm:$0xf] }
  0x24   :  { %v4838_v23 = vor.u32 %v5839_v20, %v4835_v21  ;;  %v5838_v25 = vld [vmem:[#allocation5 + $0x34] sm:$0xf0]  ;;  %v5837_v26 = vld [vmem:[#allocation5 + $0x34] sm:$0xf]  ;;  %v4827_v27 = vld [vmem:[#allocation5 + $0x38] sm:$0xf0] }
  0x25   :  { %292 = vmatpush.bf16.msra.mxu0 %v4850_v10  ;;  %v4826_v28 = vor.u32 %v5838_v25, %v4825_v24  ;;  %v4830_v29 = vor.u32 %v5837_v26, %v4827_v27  ;;  %v4817_v30 = vld [vmem:[#allocation5 + $0x20] sm:$0xf]  ;;  %v5836_v31 = vld [vmem:[#allocation5 + $0x24] sm:$0xf0]  ;;  %v5835_v32 = vld [vmem:[#allocation5 + $0x24] sm:$0xf] }
  0x26   :  { %341 = vmatpush.bf16.msra.mxu1 %v4854_v11  ;;  %v4819_v33 = vld [vmem:[#allocation5 + $0x28] sm:$0xf0]  ;;  %v4818_v34 = vor.u32 %v5836_v31, %v4817_v30  ;;  %v4809_v36 = vld [vmem:[#allocation5 + $0x10] sm:$0xf]  ;;  %v5834_v37 = vld [vmem:[#allocation5 + $0x14] sm:$0xf0] }
  0x27   :  { %v4822_v35 = vor.u32 %v5835_v32, %v4819_v33  ;;  %v5833_v38 = vld [vmem:[#allocation5 + $0x14] sm:$0xf]  ;;  %v4811_v39 = vld [vmem:[#allocation5 + $0x18] sm:$0xf0]  ;;  %v4810_v40 = vor.u32 %v5834_v37, %v4809_v36  ;;  %v4801_v42 = vld [vmem:[#allocation5] sm:$0xf] }
  0x28   :  { %v4814_v41 = vor.u32 %v5833_v38, %v4811_v39  ;;  %v5832_v43 = vld [vmem:[#allocation5 + $0x4] sm:$0xf0]  ;;  %v5831_v44 = vld [vmem:[#allocation5 + $0x4] sm:$0xf]  ;;  %v4803_v45 = vld [vmem:[#allocation5 + $0x8] sm:$0xf0] }
  0x29   :  { %293 = vmatpush.bf16.msra.mxu0 %v4842_v16  ;;  %v4802_v46 = vor.u32 %v5832_v43, %v4801_v42  ;;  %v4806_v47 = vor.u32 %v5831_v44, %v4803_v45  ;;  %v5823_v48 = vld [vmem:[#allocation2] sm:$0xff]  ;;  %v5824_v49 = vld [vmem:[#allocation2 + $0x8] sm:$0xff]  ;;  %v5825_v50 = vld [vmem:[#allocation2 + $0x10] sm:$0xff]  ;;  %vm555_vm7 = vcmask 1043456   ;;  %s6542_s4 = smov [#allocation13]   ;;  %s4751_s9 = sshll.u32 %s8900_s6, 4  ;;  %s4752_s9 = int_to_ptr.hbm [resolvable:$true] %s4751_s9 }
  0x2a   :  { %342 = vmatpush.bf16.msra.mxu1 %v4846_v17  ;;  %v5826_v51 = vld [vmem:[#allocation2 + $0x18] sm:$0xff]  ;;  %v5827_v52 = vld [vmem:[#allocation2 + $0x20] sm:$0xff]  ;;  %v5828_v53 = vld [vmem:[#allocation2 + $0x28] sm:$0xff]  ;;  %s4749_s5 = sshll.u32 %s6542_s4, 4  ;;  %s6543_s10 = smov 896   ;;  %s4750_s5 = int_to_ptr.vmem [resolvable:$true] %s4749_s5 }
  0x2b   :  { %v5829_v54 = vld [vmem:[#allocation2 + $0x30] sm:$0xff]  ;;  %v5830_v55 = vld [vmem:[#allocation2 + $0x38] sm:$0xff]  ;;  %v5875_v0 = vld [vmem:[#allocation7 + $0xe4] sm:$0xf]  ;;  %s6544_s11 = smov 56  }
  0x2c   :  { %v4979_v1 = vld [vmem:[#allocation7 + $0xf0] sm:$0xf0]  ;;  %v5907_v5 = vld [vmem:[#allocation7 + $0x1e4] sm:$0xf] }
  0x2d   :  { %294 = vmatpush.bf16.msra.mxu0 %v4834_v22  ;;  %v4982_v2 = vor.u32 %v5875_v0, %v4979_v1  ;;  %v5107_v6 = vld [vmem:[#allocation7 + $0x1f0] sm:$0xf0]  ;;  %v5871_v10 = vld [vmem:[#allocation7 + $0xc4] sm:$0xf] }
  0x2e   :  { %343 = vmatpush.bf16.msra.mxu1 %v4838_v23  ;;  %v5110_v7 = vor.u32 %v5907_v5, %v5107_v6  ;;  %v4963_v11 = vld [vmem:[#allocation7 + $0xd0] sm:$0xf0]  ;;  %v5903_v15 = vld [vmem:[#allocation7 + $0x1c4] sm:$0xf] }
  0x2f   :  { %v4966_v12 = vor.u32 %v5871_v10, %v4963_v11  ;;  %v5091_v16 = vld [vmem:[#allocation7 + $0x1d0] sm:$0xf0]  ;;  %v5867_v20 = vld [vmem:[#allocation7 + $0xa4] sm:$0xf] }
  0x30   :  { %v5094_v17 = vor.u32 %v5903_v15, %v5091_v16  ;;  %v4947_v21 = vld [vmem:[#allocation7 + $0xb0] sm:$0xf0]  ;;  %v5899_v25 = vld [vmem:[#allocation7 + $0x1a4] sm:$0xf] }
  0x31   :  { %295 = vmatpush.bf16.msra.mxu0 %v4826_v28  ;;  %v4950_v22 = vor.u32 %v5867_v20, %v4947_v21  ;;  %v5075_v26 = vld [vmem:[#allocation7 + $0x1b0] sm:$0xf0]  ;;  %v5863_v30 = vld [vmem:[#allocation7 + $0x84] sm:$0xf] }
  0x32   :  { %344 = vmatpush.bf16.msra.mxu1 %v4830_v29  ;;  %v5078_v27 = vor.u32 %v5899_v25, %v5075_v26  ;;  %v4931_v31 = vld [vmem:[#allocation7 + $0x90] sm:$0xf0]  ;;  %v6624_v32 = vld [vmem:[#allocation11] sm:$0x77] }
  0x33   :  { %v4934_v33 = vor.u32 %v5863_v30, %v4931_v31  ;;  %v158_v37 = vperm.slane %v6624_v32, 4 }
  0x35   :  { %296 = vmatpush.bf16.msra.mxu0 %v4818_v34  ;;  %v6634_v39 = vperm.slane %v158_v37, 0 }
  0x36   :  { %345 = vmatpush.bf16.msra.mxu1 %v4822_v35  ;;  %v157_v35 = vperm.slane %v6624_v32, 0 }
  0x38   :  { %v6632_v38 = vperm.slane %v157_v35, 0 }
  0x39   :  { %297 = vmatpush.bf16.msra.mxu0 %v4810_v40  ;;  %v5895_v40 = vld [vmem:[#allocation7 + $0x184] sm:$0xf] }
  0x3a   :  { %346 = vmatpush.bf16.msra.mxu1 %v4814_v41  ;;  %v5059_v41 = vld [vmem:[#allocation7 + $0x190] sm:$0xf0] }
  0x3b   :  { %v5062_v43 = vor.u32 %v5895_v40, %v5059_v41 }
  0x3d   :  { %298 = vmatpush.bf16.msra.mxu0 %v4802_v46 }
  0x3e   :  { %347 = vmatpush.bf16.msra.mxu1 %v4806_v47 }
  0x40   :  { %299 = vmatmul.bf16.vlgmr.msra.gmra.mxu0 %v5823_v48 }
  0x41   :  { %348 = vmatmul.bf16.vlgmr.msra.gmra.mxu1 %v5823_v48  ;;  %1177 = vmatpush.bf16.msrb.mxu0 %v4982_v2 }
  0x42   :  { %1226 = vmatpush.bf16.msrb.mxu1 %v5110_v7 }
  0x45   :  { %1178 = vmatpush.bf16.msrb.mxu0 %v4966_v12 }
  0x46   :  { %1227 = vmatpush.bf16.msrb.mxu1 %v5094_v17 }
  0x49   :  { %1179 = vmatpush.bf16.msrb.mxu0 %v4950_v22 }
  0x4a   :  { %1228 = vmatpush.bf16.msrb.mxu1 %v5078_v27 }
  0x4d   :  { %1180 = vmatpush.bf16.msrb.mxu0 %v4934_v33 }
  0x4e   :  { %1229 = vmatpush.bf16.msrb.mxu1 %v5062_v43 }
  0x50   :  { %304 = vmatmul.bf16.gmra.mxu0 %v5824_v49 }
  0x51   :  { %353 = vmatmul.bf16.gmra.mxu1 %v5824_v49 }
  0x60   :  { %309 = vmatmul.bf16.gmra.mxu0 %v5825_v50 }
  0x61   :  { %358 = vmatmul.bf16.gmra.mxu1 %v5825_v50 }
  0x70   :  { %314 = vmatmul.bf16.gmra.mxu0 %v5826_v51 }
  0x71   :  { %363 = vmatmul.bf16.gmra.mxu1 %v5826_v51 }
  0x80   :  { %319 = vmatmul.bf16.gmra.mxu0 %v5827_v52 }
  0x81   :  { %368 = vmatmul.bf16.gmra.mxu1 %v5827_v52 }
  0x90   :  { %324 = vmatmul.bf16.gmra.mxu0 %v5828_v53 }
  0x91   :  { %373 = vmatmul.bf16.gmra.mxu1 %v5828_v53 }
  0xa0   :  { %329 = vmatmul.bf16.gmra.mxu0 %v5829_v54 }
  0xa1   :  { %378 = vmatmul.bf16.gmra.mxu1 %v5829_v54 }
  0xb0   :  { %334 = vmatmul.bf16.gmra.mxu0 %v5830_v55 }
  0xb1   :  { %383 = vmatmul.bf16.gmra.mxu1 %v5830_v55 }
  0xbd   :  { %v300_v56 = vpop.f32.mrf.mxu0 }
  0xbe   :  { %v6598_v57 = vpop.f32.mrf.mxu1  ;;  %v6645_v46 = vadd.f32 %v300_v56, %v6632_v38 }
  0xbf   :  { %v6654_v49 = vadd.f32 %v6598_v57, %v6634_v39 }
  0xc0   :  { %v440_v55 = vmul.f32 %v6645_v46, %v6645_v46 }
  0xc5   :  { %v302_v58 = vpop.f32.mrf.mxu0 }
  0xc6   :  { %v351_v59 = vpop.f32.mrf.mxu1  ;;  %v6637_v42 = vadd.f32 %v302_v58, %v6632_v38  ;;  %v441_v58 = vmul.f32 %v6654_v49, %v6654_v49 }
  0xc7   :  { %v6640_v44 = vadd.f32 %v351_v59, %v6634_v39 }
  0xc8   :  { %v442_v51 = vmul.f32 %v6637_v42, %v6637_v42  ;;  %v389_v59 = vadd.f32 %v6637_v42, %v6645_v46 }
  0xc9   :  { %v443_v53 = vmul.f32 %v6640_v44, %v6640_v44 }
  0xcb   :  { %v493_v2 = vadd.f32 %v443_v53, %v441_v58 }
  0xcd   :  { %v305_v60 = vpop.f32.mrf.mxu0 }
  0xce   :  { %v354_v61 = vpop.f32.mrf.mxu1  ;;  %v6648_v47 = vadd.f32 %v305_v60, %v6632_v38 }
  0xcf   :  { %v6657_v50 = vadd.f32 %v354_v61, %v6634_v39 }
  0xd0   :  { %v444_v56 = vmul.f32 %v6648_v47, %v6648_v47  ;;  %v390_v6 = vadd.f32 %v389_v59, %v6648_v47 }
  0xd1   :  { %v445_v60 = vmul.f32 %v6657_v50, %v6657_v50 }
  0xd5   :  { %v307_v62 = vpop.f32.mrf.mxu0 }
  0xd6   :  { %v6600_v63 = vpop.f32.mrf.mxu1  ;;  %v6662_v52 = vadd.f32 %v307_v62, %v6632_v38  ;;  %v472_v62 = vadd.f32 %v442_v51, %v440_v55 }
  0xd7   :  { %v6668_v54 = vadd.f32 %v6600_v63, %v6634_v39  ;;  %v410_v63 = vadd.f32 %v6640_v44, %v6654_v49 }
  0xd8   :  { %v446_v0 = vmul.f32 %v6662_v52, %v6662_v52  ;;  %v473_v7 = vadd.f32 %v472_v62, %v444_v56  ;;  %v391_v17 = vadd.f32 %v390_v6, %v6662_v52 }
  0xd9   :  { %v411_v10 = vadd.f32 %v410_v63, %v6657_v50 }
  0xda   :  { %v474_v20 = vadd.f32 %v473_v7, %v446_v0 }
  0xdb   :  { %v412_v21 = vadd.f32 %v411_v10, %v6668_v54 }
  0xdd   :  { %v310_v3 = vpop.f32.mrf.mxu0 }
  0xde   :  { %v6602_v4 = vpop.f32.mrf.mxu1  ;;  %v6675_v57 = vadd.f32 %v310_v3, %v6632_v38  ;;  %v447_v3 = vmul.f32 %v6668_v54, %v6668_v54 }
  0xdf   :  { %v6685_v61 = vadd.f32 %v6602_v4, %v6634_v39 }
  0xe0   :  { %v448_v11 = vmul.f32 %v6675_v57, %v6675_v57  ;;  %v392_v27 = vadd.f32 %v391_v17, %v6675_v57 }
  0xe1   :  { %v449_v15 = vmul.f32 %v6685_v61, %v6685_v61  ;;  %v413_v30 = vadd.f32 %v412_v21, %v6685_v61 }
  0xe5   :  { %v6604_v8 = vpop.f32.mrf.mxu0 }
  0xe6   :  { %v6606_v9 = vpop.f32.mrf.mxu1  ;;  %v6693_v1 = vadd.f32 %v6604_v8, %v6632_v38  ;;  %v494_v8 = vadd.f32 %v493_v2, %v445_v60 }
  0xe7   :  { %v6699_v5 = vadd.f32 %v6606_v9, %v6634_v39 }
  0xe8   :  { %v450_v22 = vmul.f32 %v6693_v1, %v6693_v1  ;;  %v495_v25 = vadd.f32 %v494_v8, %v447_v3  ;;  %v393_v40 = vadd.f32 %v392_v27, %v6693_v1 }
  0xe9   :  { %v451_v26 = vmul.f32 %v6699_v5, %v6699_v5  ;;  %v414_v43 = vadd.f32 %v413_v30, %v6699_v5 }
  0xea   :  { %v496_v33 = vadd.f32 %v495_v25, %v449_v15 }
  0xec   :  { %v497_v51 = vadd.f32 %v496_v33, %v451_v26 }
  0xed   :  { %v6608_v13 = vpop.f32.mrf.mxu0 }
  0xee   :  { %v6610_v14 = vpop.f32.mrf.mxu1  ;;  %v6709_v16 = vadd.f32 %v6608_v13, %v6632_v38 }
  0xef   :  { %v6713_v9 = vadd.f32 %v6610_v14, %v6634_v39  ;;  %v475_v14 = vadd.f32 %v474_v20, %v448_v11 }
  0xf0   :  { %v452_v35 = vmul.f32 %v6709_v16, %v6709_v16 }
  0xf1   :  { %v453_v37 = vmul.f32 %v6713_v9, %v6713_v9  ;;  %v476_v41 = vadd.f32 %v475_v14, %v450_v22  ;;  %v415_v58 = vadd.f32 %v414_v43, %v6713_v9 }
  0xf3   :  { %v477_v62 = vadd.f32 %v476_v41, %v452_v35  ;;  %v498_v63 = vadd.f32 %v497_v51, %v453_v37 }
  0xf5   :  { %v6612_v18 = vpop.f32.mrf.mxu0 }
  0xf6   :  { %v6614_v19 = vpop.f32.mrf.mxu1  ;;  %v6723_v13 = vadd.f32 %v6612_v18, %v6632_v38 }
  0xf7   :  { %v6729_v31 = vadd.f32 %v6614_v19, %v6634_v39 }
  0xf8   :  { %v454_v53 = vmul.f32 %v6723_v13, %v6723_v13 }
  0xf9   :  { %v455_v59 = vmul.f32 %v6729_v31, %v6729_v31  ;;  %v416_v10 = vadd.f32 %v415_v58, %v6729_v31 }
  0xfa   :  { %v478_v7 = vadd.f32 %v477_v62, %v454_v53 }
  0xfb   :  { %v499_v8 = vadd.f32 %v498_v63, %v455_v59 }
  0xfd   :  { %v6616_v23 = vpop.f32.mrf.mxu0 }
  0xfe   :  { %v6618_v24 = vpop.f32.mrf.mxu1  ;;  %v6737_v18 = vadd.f32 %v6616_v23, %v6632_v38  ;;  %v394_v23 = vadd.f32 %v393_v40, %v6709_v16 }
  0xff   :  { %v6743_v19 = vadd.f32 %v6618_v24, %v6634_v39 }
 0x100   :  { %v456_v0 = vmul.f32 %v6737_v18, %v6737_v18  ;;  %v395_v2 = vadd.f32 %v394_v23, %v6723_v13 }
 0x101   :  { %v457_v3 = vmul.f32 %v6743_v19, %v6743_v19  ;;  %v417_v20 = vadd.f32 %v416_v10, %v6743_v19 }
 0x103   :  { %v500_v25 = vadd.f32 %v499_v8, %v457_v3 }
 0x105   :  { %v6620_v28 = vpop.f32.mrf.mxu0 }
 0x106   :  { %v6622_v29 = vpop.f32.mrf.mxu1  ;;  %v6749_v55 = vadd.f32 %v6620_v28, %v6632_v38 }
 0x107   :  { %v6757_v24 = vadd.f32 %v6622_v29, %v6634_v39  ;;  %v6541_v29 = vmov 128.0  }
 0x108   :  { %6105 = vrcp.f32 %v6541_v29  ;;  %v458_v11 = vmul.f32 %v6749_v55, %v6749_v55 }
 0x109   :  { %v459_v15 = vmul.f32 %v6757_v24, %v6757_v24  ;;  %v418_v30 = vadd.f32 %v417_v20, %v6757_v24 }
 0x10d   :  { %v6626_v34 = vpop.f32.mrf.mxu0 }
 0x10e   :  { %v6629_v36 = vpop.f32.mrf.mxu1  ;;  %v6763_v28 = vadd.f32 %v6626_v34, %v6632_v38  ;;  %v396_v34 = vadd.f32 %v395_v2, %v6737_v18  ;;  %v6799_v37 = vpop.eup %6105 }
 0x10f   :  { %v6770_v6 = vadd.f32 %v6629_v36, %v6634_v39  ;;  %v479_v36 = vadd.f32 %v478_v7, %v456_v0  ;;  %vm436_vm0 = vweird.f32 %v6799_v37 }
 0x110   :  { %v460_v21 = vmul.f32 %v6763_v28, %v6763_v28  ;;  %v397_v26 = vadd.f32 %v396_v34, %v6749_v55 }
 0x111   :  { %v461_v27 = vmul.f32 %v6770_v6, %v6770_v6  ;;  %v419_v53 = vadd.f32 %v418_v30, %v6770_v6 }
 0x112   :  { %v398_v40 = vadd.f32 %v397_v26, %v6763_v28 }
 0x115   :  { %v6642_v45 = vpop.f32.mrf.mxu0 }
 0x116   :  { %v6650_v48 = vpop.f32.mrf.mxu1  ;;  %v6780_v17 = vadd.f32 %v6642_v45, %v6632_v38  ;;  %v480_v45 = vadd.f32 %v479_v36, %v458_v11 }
 0x117   :  { %v6787_v22 = vadd.f32 %v6650_v48, %v6634_v39  ;;  %v501_v48 = vadd.f32 %v500_v25, %v459_v15 }
 0x118   :  { %v462_v41 = vmul.f32 %v6780_v17, %v6780_v17  ;;  %v481_v51 = vadd.f32 %v480_v45, %v460_v21  ;;  %v399_v59 = vadd.f32 %v398_v40, %v6780_v17  ;;  %v4977_v40 = vld [vmem:[#allocation7 + $0xe0] sm:$0xf] }
 0x119   :  { %v502_v58 = vadd.f32 %v501_v48, %v461_v27 }
 0x11a   :  { %v482_v3 = vadd.f32 %v481_v51, %v462_v41  ;;  %v5877_v41 = vld [vmem:[#allocation7 + $0xec] sm:$0xf0] }
 0x11d   :  { %v330_v4 = vpop.f32.mrf.mxu0 }
 0x11e   :  { %v379_v12 = vpop.f32.mrf.mxu1  ;;  %v6793_v14 = vadd.f32 %v330_v4, %v6632_v38 }
 0x11f   :  { %v6797_v33 = vadd.f32 %v379_v12, %v6634_v39  ;;  %v463_v12 = vmul.f32 %v6787_v22, %v6787_v22 }
 0x120   :  { %v464_v62 = vmul.f32 %v6793_v14, %v6793_v14  ;;  %v400_v29 = vadd.f32 %v399_v59, %v6793_v14  ;;  %v5909_v59 = vld [vmem:[#allocation7 + $0x1ec] sm:$0xf0] }
 0x121   :  { %v465_v0 = vmul.f32 %v6797_v33, %v6797_v33  ;;  %v503_v10 = vadd.f32 %v502_v58, %v463_v12  ;;  %v4978_v58 = vor.u32 %v5877_v41, %v4977_v40 }
 0x122   :  { %v483_v34 = vadd.f32 %v482_v3, %v464_v62 }
 0x123   :  { %v504_v20 = vadd.f32 %v503_v10, %v465_v0  ;;  %1079 = vmatpush.bf16.msra.mxu2 %v4978_v58 }
 0x125   :  { %v332_v56 = vpop.f32.mrf.mxu0 }
 0x126   :  { %v381_v60 = vpop.f32.mrf.mxu1  ;;  %v6805_v43 = vadd.f32 %v332_v56, %v6632_v38  ;;  %v420_v56 = vadd.f32 %v419_v53, %v6787_v22 }
 0x127   :  { %v6811_v23 = vadd.f32 %v381_v60, %v6634_v39  ;;  %v432_v60 = vmul.f32 128.0, %v6799_v37 }
 0x128   :  { %v466_v7 = vmul.f32 %v6805_v43, %v6805_v43  ;;  %v421_v11 = vadd.f32 %v420_v56, %v6797_v33  ;;  %v401_v15 = vadd.f32 %v400_v29, %v6805_v43 }
 0x129   :  { %v467_v8 = vmul.f32 %v6811_v23, %v6811_v23  ;;  %v433_v27 = vsub.f32 1.0, %v432_v60 }
 0x12a   :  { %v422_v21 = vadd.f32 %v421_v11, %v6811_v23  ;;  %v484_v45 = vadd.f32 %v483_v34, %v466_v7  ;;  %v5873_v11 = vld [vmem:[#allocation7 + $0xcc] sm:$0xf0] }
 0x12b   :  { %v505_v51 = vadd.f32 %v504_v20, %v467_v8  ;;  %v434_v8 = vmul.f32 %v6799_v37, %v433_v27  ;;  %v5089_v20 = vld [vmem:[#allocation7 + $0x1c0] sm:$0xf] }
 0x12d   :  { %v335_v35 = vpop.f32.mrf.mxu0 }
 0x12e   :  { %v384_v4 = vpop.f32.mrf.mxu1  ;;  %v6817_v63 = vadd.f32 %v335_v35, %v6632_v38 }
 0x12f   :  { %v6823_v2 = vadd.f32 %v384_v4, %v6634_v39  ;;  %v5105_v4 = vld [vmem:[#allocation7 + $0x1e0] sm:$0xf] }
 0x130   :  { %v468_v36 = vmul.f32 %v6817_v63, %v6817_v63  ;;  %v402_v30 = vadd.f32 %v401_v15, %v6817_v63 }
 0x131   :  { %v469_v25 = vmul.f32 %v6823_v2, %v6823_v2  ;;  %v423_v53 = vadd.f32 %v422_v21, %v6823_v2  ;;  %v5905_v21 = vld [vmem:[#allocation7 + $0x1cc] sm:$0xf0] }
 0x132   :  { %v485_v62 = vadd.f32 %v484_v45, %v468_v36  ;;  %v5090_v45 = vor.u32 %v5905_v21, %v5089_v20  ;;  %v5057_v20 = vld [vmem:[#allocation7 + $0x180] sm:$0xf]  ;;  %v5897_v21 = vld [vmem:[#allocation7 + $0x18c] sm:$0xf0] }
 0x133   :  { %v506_v60 = vadd.f32 %v505_v51, %v469_v25  ;;  %v5869_v51 = vld [vmem:[#allocation7 + $0xac] sm:$0xf0] }
 0x135   :  { %v337_v26 = vpop.f32.mrf.mxu0 }
 0x136   :  { %v6840_v35 = vadd.f32 %v337_v26, %v6632_v38  ;;  %v386_v48 = vpop.f32.mrf.mxu1  ;;  %v5106_v38 = vor.u32 %v5909_v59, %v5105_v4  ;;  %v4945_v4 = vld [vmem:[#allocation7 + $0xa0] sm:$0xf] }
 0x137   :  { %v6844_v12 = vadd.f32 %v386_v48, %v6634_v39  ;;  %v4961_v39 = vld [vmem:[#allocation7 + $0xc0] sm:$0xf]  ;;  %v4946_v59 = vor.u32 %v5869_v51, %v4945_v4  ;;  %v5859_v4 = vld [vmem:[#allocation7 + $0x64] sm:$0xf]  ;;  %v4915_v51 = vld [vmem:[#allocation7 + $0x70] sm:$0xf0] }
 0x138   :  { %v403_v56 = vadd.f32 %v402_v30, %v6840_v35  ;;  %v470_v0 = vmul.f32 %v6840_v35, %v6840_v35  ;;  %1128 = vmatpush.bf16.msra.mxu3 %v5106_v38  ;;  %v4962_v36 = vor.u32 %v5873_v11, %v4961_v39  ;;  %v4929_v39 = vld [vmem:[#allocation7 + $0x80] sm:$0xf]  ;;  %v5865_v11 = vld [vmem:[#allocation7 + $0x8c] sm:$0xf0] }
 0x139   :  { %v424_v3 = vadd.f32 %v423_v53, %v6844_v12  ;;  %v471_v29 = vmul.f32 %v6844_v12, %v6844_v12  ;;  %v435_v53 = vadd.f32 %v6799_v37, %v434_v8 }
 0x13a   :  { %v404_v7 = vrot.slane %v403_v56, 4  ;;  %v486_v10 = vadd.f32 %v485_v62, %v470_v0  ;;  %1080 = vmatpush.bf16.msra.mxu2 %v4962_v36  ;;  %v5073_v62 = vld [vmem:[#allocation7 + $0x1a0] sm:$0xf]  ;;  %v5901_v0 = vld [vmem:[#allocation7 + $0x1ac] sm:$0xf0]  ;;  %v4930_v36 = vor.u32 %v5865_v11, %v4929_v39 }
 0x13b   :  { %v425_v34 = vrot.slane %v424_v3, 4  ;;  %v507_v15 = vadd.f32 %v506_v60, %v471_v29  ;;  %v5074_v60 = vor.u32 %v5901_v0, %v5073_v62  ;;  %v6856_v8 = vsel %vm436_vm0, %v6799_v37, %v435_v53  ;;  %v4913_v62 = vld [vmem:[#allocation7 + $0x60] sm:$0xf] }
 0x13c   :  { %v405_v26 = vadd.f32 %v404_v7, %v403_v56  ;;  %v487_v25 = vrot.slane %v486_v10, 4  ;;  %1129 = vmatpush.bf16.msra.mxu3 %v5090_v45  ;;  %8938 = vst [vmem:[#allocation19_spill] sm:$0xff] %v6856_v8  ;;  %v5058_v45 = vor.u32 %v5897_v21, %v5057_v20  ;;  %v5887_v20 = vld [vmem:[#allocation7 + $0x144] sm:$0xf] }
 0x13d   :  { %v426_v30 = vadd.f32 %v425_v34, %v424_v3  ;;  %v508_v48 = vrot.slane %v507_v15, 4 }
 0x13e   :  { %v406_v40 = vrot.slane %v405_v26, 2  ;;  %v488_v41 = vadd.f32 %v487_v25, %v486_v10  ;;  %1081 = vmatpush.bf16.msra.mxu2 %v4946_v59  ;;  %v5043_v59 = vld [vmem:[#allocation7 + $0x170] sm:$0xf0] }
 0x13f   :  { %v427_v58 = vrot.slane %v426_v30, 2  ;;  %v509_v27 = vadd.f32 %v508_v48, %v507_v15 }
 0x140   :  { %v407_v38 = vadd.f32 %v406_v40, %v405_v26  ;;  %v489_v56 = vrot.slane %v488_v41, 2  ;;  %1130 = vmatpush.bf16.msra.mxu3 %v5074_v60  ;;  %v5861_v60 = vld [vmem:[#allocation7 + $0x6c] sm:$0xf0] }
 0x141   :  { %v428_v3 = vadd.f32 %v427_v58, %v426_v30  ;;  %v510_v29 = vrot.slane %v509_v27, 2  ;;  %v5891_v58 = vld [vmem:[#allocation7 + $0x164] sm:$0xf]  ;;  %v4914_v39 = vor.u32 %v5861_v60, %v4913_v62 }
 0x142   :  { %v408_v7 = vrot.slane %v407_v38, 1  ;;  %v490_v10 = vadd.f32 %v489_v56, %v488_v41  ;;  %1082 = vmatpush.bf16.msra.mxu2 %v4930_v36  ;;  %v5046_v56 = vor.u32 %v5891_v58, %v5043_v59  ;;  %v4899_v36 = vld [vmem:[#allocation7 + $0x50] sm:$0xf0]  ;;  %v5889_v58 = vld [vmem:[#allocation7 + $0x14c] sm:$0xf0] }
 0x143   :  { %v429_v34 = vrot.slane %v428_v3, 1  ;;  %v511_v15 = vadd.f32 %v510_v29, %v509_v27  ;;  %v4918_v27 = vor.u32 %v5859_v4, %v4915_v51  ;;  %v5893_v29 = vld [vmem:[#allocation7 + $0x16c] sm:$0xf0]  ;;  %v5025_v51 = vld [vmem:[#allocation7 + $0x140] sm:$0xf] }
 0x144   :  { %v409_v26 = vadd.f32 %v408_v7, %v407_v38  ;;  %v491_v25 = vrot.slane %v490_v10, 1  ;;  %1131 = vmatpush.bf16.msra.mxu3 %v5058_v45  ;;  %1230 = vmatpush.bf16.msrb.mxu1 %v5046_v56  ;;  %v4897_v45 = vld [vmem:[#allocation7 + $0x40] sm:$0xf]  ;;  %v5851_v62 = vld [vmem:[#allocation7 + $0x24] sm:$0xf] }
 0x145   :  { %v430_v48 = vadd.f32 %v429_v34, %v428_v3  ;;  %v512_v30 = vrot.slane %v511_v15, 1  ;;  %v5041_v3 = vld [vmem:[#allocation7 + $0x160] sm:$0xf]  ;;  %1181 = vmatpush.bf16.msrb.mxu0 %v4918_v27  ;;  %v5026_v27 = vor.u32 %v5889_v58, %v5025_v51  ;;  %v5883_v60 = vld [vmem:[#allocation7 + $0x124] sm:$0xf] }
 0x146   :  { %v6859_v40 = vmul.f32 %v6856_v8, %v409_v26  ;;  %v492_v41 = vadd.f32 %v491_v25, %v490_v10  ;;  %v5042_v11 = vor.u32 %v5893_v29, %v5041_v3  ;;  %v5027_v25 = vld [vmem:[#allocation7 + $0x150] sm:$0xf0]  ;;  %1083 = vmatpush.bf16.msra.mxu2 %v4914_v39  ;;  %v5009_v39 = vld [vmem:[#allocation7 + $0x120] sm:$0xf]  ;;  %v5881_v51 = vld [vmem:[#allocation7 + $0x10c] sm:$0xf0] }
 0x147   :  { %v6862_v37 = vmul.f32 %v6856_v8, %v430_v48  ;;  %v513_v53 = vadd.f32 %v512_v30, %v511_v15  ;;  %v5855_v15 = vld [vmem:[#allocation7 + $0x44] sm:$0xf]  ;;  %v5857_v48 = vld [vmem:[#allocation7 + $0x4c] sm:$0xf0]  ;;  %v5011_v3 = vld [vmem:[#allocation7 + $0x130] sm:$0xf0] }
 0x148   :  { %v514_v0 = vmul.f32 %v492_v41, %v6856_v8  ;;  %v516_v38 = vmul.f32 %v6859_v40, %v6859_v40  ;;  %v4902_v26 = vor.u32 %v5855_v15, %v4899_v36  ;;  %1132 = vmatpush.bf16.msra.mxu3 %v5042_v11  ;;  %v5030_v41 = vor.u32 %v5887_v20, %v5027_v25  ;;  %v5847_v15 = vld [vmem:[#allocation7 + $0x4] sm:$0xf]  ;;  %v4867_v36 = vld [vmem:[#allocation7 + $0x10] sm:$0xf0] }
 0x149   :  { %v515_v7 = vmul.f32 %v513_v53, %v6856_v8  ;;  %v517_v10 = vmul.f32 %v6862_v37, %v6862_v37  ;;  %v4898_v4 = vor.u32 %v5857_v48, %v4897_v45  ;;  %v5014_v29 = vor.u32 %v5883_v60, %v5011_v3  ;;  %v5879_v20 = vld [vmem:[#allocation7 + $0x104] sm:$0xf]  ;;  %v4995_v25 = vld [vmem:[#allocation7 + $0x110] sm:$0xf0]  ;;  %v4865_v45 = vld [vmem:[#allocation7] sm:$0xf] }
 0x14a   :  { %v518_v34 = vsub.f32 %v514_v0, %v516_v38  ;;  %1182 = vmatpush.bf16.msrb.mxu0 %v4902_v26  ;;  %1231 = vmatpush.bf16.msrb.mxu1 %v5030_v41  ;;  %v4883_v0 = vld [vmem:[#allocation7 + $0x30] sm:$0xf0]  ;;  %v4870_v26 = vor.u32 %v5847_v15, %v4867_v36  ;;  %v5849_v48 = vld [vmem:[#allocation7 + $0xc] sm:$0xf0]  ;;  %v4985_v60 = vld [vmem:[#allocation7 + $0xe8] sm:$0xf] }
 0x14b   :  { %v519_v21 = vsub.f32 %v515_v7, %v517_v10  ;;  %v4886_v56 = vor.u32 %v5851_v62, %v4883_v0  ;;  %1084 = vmatpush.bf16.msra.mxu2 %v4898_v4  ;;  %v4881_v7 = vld [vmem:[#allocation7 + $0x20] sm:$0xf]  ;;  %v5853_v10 = vld [vmem:[#allocation7 + $0x2c] sm:$0xf0]  ;;  %v4866_v41 = vor.u32 %v5849_v48, %v4865_v45  ;;  %v5878_v3 = vld [vmem:[#allocation7 + $0xf4] sm:$0xf0] }
 0x14c   :  { %v520_v30 = vmax.f32 %v518_v34, 0.0  ;;  %1133 = vmatpush.bf16.msra.mxu3 %v5026_v27  ;;  %v4882_v11 = vor.u32 %v5853_v10, %v4881_v7  ;;  %v5885_v34 = vld [vmem:[#allocation7 + $0x12c] sm:$0xf0]  ;;  %v4993_v4 = vld [vmem:[#allocation7 + $0x100] sm:$0xf]  ;;  %v4986_v7 = vor.u32 %v5878_v3, %v4985_v60 }
 0x14d   :  { %v521_v53 = vmax.f32 %v519_v21, 0.0  ;;  %v5010_v21 = vor.u32 %v5885_v34, %v5009_v39  ;;  %v4994_v58 = vor.u32 %v5881_v51, %v4993_v4  ;;  %v5113_v10 = vld [vmem:[#allocation7 + $0x1e8] sm:$0xf]  ;;  %v5910_v39 = vld [vmem:[#allocation7 + $0x1f4] sm:$0xf0]  ;;  %v545_v51 = vperm.slane %v6624_v32, 5 }
 0x14e   :  { %v6870_v59 = vadd.f32 1e-05, %v520_v30  ;;  %1183 = vmatpush.bf16.msrb.mxu0 %v4886_v56  ;;  %1232 = vmatpush.bf16.msrb.mxu1 %v5014_v29  ;;  %v4998_v30 = vor.u32 %v5879_v20, %v4995_v25  ;;  %v5114_v15 = vor.u32 %v5910_v39, %v5113_v10  ;;  %v4987_v36 = vld [vmem:[#allocation7 + $0xf8] sm:$0xf0]  ;;  %v5908_v20 = vld [vmem:[#allocation7 + $0x1ec] sm:$0xf] }
 0x14f   :  { %v6872_v38 = vadd.f32 1e-05, %v521_v53  ;;  %1085 = vmatpush.bf16.msra.mxu2 %v4882_v11  ;;  %v5876_v11 = vld [vmem:[#allocation7 + $0xec] sm:$0xf]  ;;  %v5115_v25 = vld [vmem:[#allocation7 + $0x1f8] sm:$0xf0] }
 0x150   :  { %6107 = vrsqrt.f32 %v6870_v59  ;;  %1134 = vmatpush.bf16.msra.mxu3 %v5010_v21  ;;  %v5118_v48 = vor.u32 %v5908_v20, %v5115_v25  ;;  %vm530_vm3 = vweird.f32 %v6870_v59  ;;  %v5872_v20 = vld [vmem:[#allocation7 + $0xcc] sm:$0xf]  ;;  %v5099_v25 = vld [vmem:[#allocation7 + $0x1d8] sm:$0xf0] }
 0x151   :  { %6109 = vrsqrt.f32 %v6872_v38  ;;  %vm540_vm5 = vweird.f32 %v6872_v38 }
 0x152   :  { %1184 = vmatpush.bf16.msrb.mxu0 %v4870_v26  ;;  %1233 = vmatpush.bf16.msrb.mxu1 %v4998_v30  ;;  %v4990_v26 = vor.u32 %v5876_v11, %v4987_v36  ;;  %v544_v30 = vperm.slane %v6624_v32, 1  ;;  %v5874_v11 = vld [vmem:[#allocation7 + $0xd4] sm:$0xf0] }
 0x153   :  { %1086 = vmatpush.bf16.msra.mxu2 %v4866_v41  ;;  %v5906_v36 = vld [vmem:[#allocation7 + $0x1d4] sm:$0xf0] }
 0x154   :  { %1135 = vmatpush.bf16.msra.mxu3 %v4994_v58 }
 0x156   :  { %v6108_v53 = vpop.eup %6107  ;;  %1373 = vmatpush.bf16.msra.mxu0 %v4990_v26  ;;  %1422 = vmatpush.bf16.msra.mxu1 %v5118_v48  ;;  %v4971_v26 = vld [vmem:[#allocation7 + $0xd8] sm:$0xf0] }
 0x157   :  { %v6110_v27 = vpop.eup %6109  ;;  %v525_v62 = vmul.f32 %v6108_v53, %v6870_v59  ;;  %1275 = vmatpush.bf16.msrb.mxu2 %v4986_v7  ;;  %vm531_vm1 = vweird.f32 %v6108_v53 }
 0x158   :  { %v535_v0 = vmul.f32 %v6110_v27, %v6872_v38  ;;  %1324 = vmatpush.bf16.msrb.mxu3 %v5114_v15  ;;  %vm541_vm2 = vweird.f32 %v6110_v27  ;;  %vm532_vm4 = vmor %vm530_vm3, %vm531_vm1 }
 0x159   :  { %v526_v56 = vmul.f32 %v6108_v53, %v525_v62  ;;  %vm542_vm6 = vmor %vm540_vm5, %vm541_vm2 }
 0x15a   :  { %v536_v29 = vmul.f32 %v6110_v27, %v535_v0 }
 0x15b   :  { %v527_v34 = vmul.f32 0.5, %v526_v56 }
 0x15c   :  { %v537_v21 = vmul.f32 0.5, %v536_v29 }
 0x15d   :  { %v528_v45 = vsub.f32 1.5, %v527_v34  ;;  %v5097_v34 = vld [vmem:[#allocation7 + $0x1c8] sm:$0xf] }
 0x15e   :  { %v538_v41 = vsub.f32 1.5, %v537_v21  ;;  %v5098_v21 = vor.u32 %v5906_v36, %v5097_v34 }
 0x15f   :  { %v529_v4 = vmul.f32 %v6108_v53, %v528_v45 }
 0x160   :  { %v539_v58 = vmul.f32 %v6110_v27, %v538_v41  ;;  %1325 = vmatpush.bf16.msrb.mxu3 %v5098_v21 }
 0x161   :  { %v533_v62 = vsel %vm532_vm4, %v6108_v53, %v529_v4 }
 0x162   :  { %v548_v0 = vmul.f32 %v544_v30, %v533_v62  ;;  %v543_v56 = vsel %vm542_vm6, %v6110_v27, %v539_v58  ;;  %v4969_v27 = vld [vmem:[#allocation7 + $0xc8] sm:$0xf] }
 0x163   :  { %v549_v60 = vmul.f32 %v545_v51, %v543_v56 }
 0x164   :  { %v6882_v3 = vperm.slane %v548_v0, 0  ;;  %v550_v10 = vmul.f32 %v548_v0, %v6859_v40  ;;  %v4974_v40 = vor.u32 %v5872_v20, %v4971_v26  ;;  %v5081_v26 = vld [vmem:[#allocation7 + $0x1a8] sm:$0xf] }
 0x165   :  { %v551_v29 = vmul.f32 %v549_v60, %v6862_v37  ;;  %v6885_v7 = vperm.slane %v549_v60, 0  ;;  %v4970_v37 = vor.u32 %v5874_v11, %v4969_v27 }
 0x166   :  { %v6889_v59 = vmul.f32 %v6882_v3, %v6840_v35  ;;  %v5904_v35 = vld [vmem:[#allocation7 + $0x1cc] sm:$0xf]  ;;  %1374 = vmatpush.bf16.msra.mxu0 %v4974_v40  ;;  %v562_v41 = vmul.f32 %v6882_v3, %v6645_v46  ;;  %v564_v4 = vmul.f32 %v6882_v3, %v6637_v42  ;;  %v6908_v62 = vmul.f32 %v6882_v3, %v6817_v63 }
 0x167   :  { %v554_v39 = vrot.slane %v551_v29, 4  ;;  %v593_v38 = vmul.f32 %v6885_v7, %v6844_v12  ;;  %1276 = vmatpush.bf16.msrb.mxu2 %v4970_v37  ;;  %v5102_v48 = vor.u32 %v5904_v35, %v5099_v25  ;;  %v563_v51 = vmul.f32 %v6885_v7, %v6654_v49 }
 0x168   :  { %v6912_v0 = vmul.f32 %v6885_v7, %v6823_v2  ;;  %v565_v46 = vmul.f32 %v6885_v7, %v6640_v44  ;;  %v566_v2 = vmul.f32 %v6882_v3, %v6648_v47  ;;  %v568_v44 = vmul.f32 %v6882_v3, %v6662_v52 }
 0x169   :  { %v556_v53 = vsel %vm555_vm7, %v550_v10, %v554_v39  ;;  %1423 = vmatpush.bf16.msra.mxu1 %v5102_v48  ;;  %v567_v27 = vmul.f32 %v6885_v7, %v6657_v50  ;;  %v569_v11 = vmul.f32 %v6885_v7, %v6668_v54  ;;  %v578_v34 = vmul.f32 %v6882_v3, %v6737_v18  ;;  %v5868_v48 = vld [vmem:[#allocation7 + $0xac] sm:$0xf] }
 0x16a   :  { %v557_v15 = vrot.slane %v556_v53, 6  ;;  %v580_v37 = vmul.f32 %v6882_v3, %v6749_v55  ;;  %v579_v47 = vmul.f32 %v6885_v7, %v6743_v19  ;;  %v581_v52 = vmul.f32 %v6885_v7, %v6757_v24  ;;  %v4953_v55 = vld [vmem:[#allocation7 + $0xa8] sm:$0xf]  ;;  %v5870_v24 = vld [vmem:[#allocation7 + $0xb4] sm:$0xf0] }
 0x16b   :  { %v582_v54 = vmul.f32 %v6882_v3, %v6763_v28  ;;  %v584_v18 = vmul.f32 %v6882_v3, %v6780_v17  ;;  %v583_v36 = vmul.f32 %v6885_v7, %v6770_v6  ;;  %v585_v20 = vmul.f32 %v6885_v7, %v6787_v22  ;;  %v5902_v17 = vld [vmem:[#allocation7 + $0x1b4] sm:$0xf0]  ;;  %v5900_v6 = vld [vmem:[#allocation7 + $0x1ac] sm:$0xf] }
 0x16c   :  { %v559_v45 = vsub.f32 %v6624_v32, %v557_v15  ;;  %v4954_v21 = vor.u32 %v5870_v24, %v4953_v55  ;;  %v586_v35 = vmul.f32 %v6882_v3, %v6793_v14  ;;  %v588_v25 = vmul.f32 %v6882_v3, %v6805_v43 }
 0x16d   :  { %v5082_v40 = vor.u32 %v5902_v17, %v5081_v26  ;;  %v587_v14 = vmul.f32 %v6885_v7, %v6797_v33  ;;  %v589_v43 = vmul.f32 %v6885_v7, %v6811_v23 }
 0x16e   :  { %v595_v12 = vperm.slane %v559_v45, 2  ;;  %v596_v30 = vperm.slane %v559_v45, 6  ;;  %1277 = vmatpush.bf16.msrb.mxu2 %v4954_v21 }
 0x16f   :  { %1326 = vmatpush.bf16.msrb.mxu3 %v5082_v40 }
 0x170   :  { %v6902_v58 = vperm.slane %v595_v12, 2  ;;  %v6904_v32 = vperm.slane %v596_v30, 2  ;;  %v4955_v12 = vld [vmem:[#allocation7 + $0xb8] sm:$0xf0] }
 0x172   :  { %v6917_v42 = vadd.f32 %v6904_v32, %v593_v38  ;;  %v601_v49 = vadd.f32 %v6902_v58, %v562_v41  ;;  %v603_v56 = vadd.f32 %v6902_v58, %v564_v4  ;;  %v602_v60 = vadd.f32 %v6904_v32, %v563_v51  ;;  %v5083_v51 = vld [vmem:[#allocation7 + $0x1b8] sm:$0xf0] }
 0x173   :  { %v604_v29 = vadd.f32 %v6904_v32, %v565_v46  ;;  %v6946_v50 = vadd.f32 %v6902_v58, %v566_v2  ;;  %v6955_v19 = vadd.f32 %v6902_v58, %v568_v44  ;;  %v606_v28 = vadd.f32 %v6904_v32, %v567_v27 }
 0x174   :  { %v633_v63 = vmax.f32 %v601_v49, 0.0  ;;  %v635_v10 = vmax.f32 %v603_v56, 0.0  ;;  %v634_v39 = vmax.f32 %v602_v60, 0.0  ;;  %v608_v45 = vadd.f32 %v6904_v32, %v569_v11 }
 0x175   :  { %v636_v53 = vmax.f32 %v604_v29, 0.0  ;;  %v617_v30 = vadd.f32 %v6902_v58, %v578_v34  ;;  %v619_v22 = vadd.f32 %v6902_v58, %v580_v37  ;;  %v637_v41 = vmax.f32 %v6946_v50, 0.0 }
 0x176   :  { %v6927_v38 = vpack.c.bf16 %v635_v10, %v633_v63  ;;  %v4958_v4 = vor.u32 %v5868_v48, %v4955_v12  ;;  %v639_v46 = vmax.f32 %v6955_v19, 0.0  ;;  %v5086_v49 = vor.u32 %v5900_v6, %v5083_v51 }
 0x177   :  { %v6935_v15 = vpack.c.bf16 %v636_v53, %v634_v39  ;;  %v649_v56 = vmax.f32 %v617_v30, 0.0  ;;  %v651_v60 = vmax.f32 %v619_v22, 0.0  ;;  %v638_v29 = vmax.f32 %v606_v28, 0.0 }
 0x178   :  { %1087 = vmatmul.bf16.vlgmr.msra.gmra.mxu2 %v6927_v38  ;;  %1185 = vmatmul.bf16.vlgmr.msrb.gmra.mxu0 %v6927_v38  ;;  %v618_v63 = vadd.f32 %v6904_v32, %v579_v47  ;;  %v620_v10 = vadd.f32 %v6904_v32, %v581_v52  ;;  %v621_v39 = vadd.f32 %v6902_v58, %v582_v54  ;;  %v640_v53 = vmax.f32 %v608_v45, 0.0 }
 0x179   :  { %1136 = vmatmul.bf16.vlgmr.msra.gmra.mxu3 %v6935_v15  ;;  %1234 = vmatmul.bf16.vlgmr.msrb.gmra.mxu1 %v6935_v15  ;;  %v6978_v33 = vpack.c.bf16 %v651_v60, %v649_v56  ;;  %v623_v23 = vadd.f32 %v6902_v58, %v584_v18  ;;  %v622_v2 = vadd.f32 %v6904_v32, %v583_v36  ;;  %v5896_v60 = vld [vmem:[#allocation7 + $0x18c] sm:$0xf] }
 0x17a   :  { %1375 = vmatpush.bf16.msra.mxu0 %v4958_v4  ;;  %1424 = vmatpush.bf16.msra.mxu1 %v5086_v49  ;;  %v650_v44 = vmax.f32 %v618_v63, 0.0  ;;  %v652_v27 = vmax.f32 %v620_v10, 0.0  ;;  %v653_v11 = vmax.f32 %v621_v39, 0.0  ;;  %v624_v34 = vadd.f32 %v6904_v32, %v585_v20 }
 0x17b   :  { %v655_v37 = vmax.f32 %v623_v23, 0.0  ;;  %v654_v50 = vmax.f32 %v622_v2, 0.0  ;;  %v625_v47 = vadd.f32 %v6902_v58, %v586_v35  ;;  %v627_v52 = vadd.f32 %v6902_v58, %v588_v25 }
 0x17c   :  { %v6985_v54 = vpack.c.bf16 %v652_v27, %v650_v44  ;;  %v656_v19 = vmax.f32 %v624_v34, 0.0  ;;  %v626_v55 = vadd.f32 %v6904_v32, %v587_v14  ;;  %v628_v18 = vadd.f32 %v6904_v32, %v589_v43  ;;  %v5898_v14 = vld [vmem:[#allocation7 + $0x194] sm:$0xf0]  ;;  %v5864_v43 = vld [vmem:[#allocation7 + $0x8c] sm:$0xf] }
 0x17d   :  { %v6989_v24 = vpack.c.bf16 %v655_v37, %v653_v11  ;;  %v657_v36 = vmax.f32 %v625_v47, 0.0  ;;  %v659_v28 = vmax.f32 %v627_v52, 0.0  ;;  %v629_v20 = vadd.f32 %v6902_v58, %v6908_v62  ;;  %v5862_v47 = vld [vmem:[#allocation7 + $0x74] sm:$0xf0]  ;;  %v5049_v52 = vld [vmem:[#allocation7 + $0x168] sm:$0xf] }
 0x17e   :  { %v6993_v21 = vpack.c.bf16 %v656_v19, %v654_v50  ;;  %v658_v26 = vmax.f32 %v626_v55, 0.0  ;;  %v660_v17 = vmax.f32 %v628_v18, 0.0  ;;  %v631_v35 = vadd.f32 %v6902_v58, %v6889_v59  ;;  %v5894_v55 = vld [vmem:[#allocation7 + $0x174] sm:$0xf0]  ;;  %v5860_v18 = vld [vmem:[#allocation7 + $0x6c] sm:$0xf] }
 0x17f   :  { %v664_v25 = vmax.f32 %v6917_v42, 0.0  ;;  %v6998_v45 = vpack.c.bf16 %v659_v28, %v657_v36  ;;  %v661_v40 = vmax.f32 %v629_v20, 0.0  ;;  %v630_v48 = vadd.f32 %v6904_v32, %v6912_v0  ;;  %v4937_v42 = vld [vmem:[#allocation7 + $0x88] sm:$0xf]  ;;  %v5866_v0 = vld [vmem:[#allocation7 + $0x94] sm:$0xf0] }
 0x180   :  { %v7002_v12 = vpack.c.bf16 %v639_v46, %v637_v41  ;;  %v7004_v6 = vpack.c.bf16 %v660_v17, %v658_v26  ;;  %v663_v62 = vmax.f32 %v631_v35, 0.0  ;;  %v7006_v30 = vpack.c.bf16 %v640_v53, %v638_v29  ;;  %v5065_v41 = vld [vmem:[#allocation7 + $0x188] sm:$0xf]  ;;  %v4939_v46 = vld [vmem:[#allocation7 + $0x98] sm:$0xf0] }
 0x181   :  { %v662_v22 = vmax.f32 %v630_v48, 0.0  ;;  %v4938_v51 = vor.u32 %v5866_v0, %v4937_v42  ;;  %v5066_v49 = vor.u32 %v5898_v14, %v5065_v41  ;;  %v4942_v56 = vor.u32 %v5864_v43, %v4939_v46  ;;  %v5067_v29 = vld [vmem:[#allocation7 + $0x198] sm:$0xf0]  ;;  %v5892_v26 = vld [vmem:[#allocation7 + $0x16c] sm:$0xf] }
 0x182   :  { %v7010_v59 = vpack.c.bf16 %v663_v62, %v661_v40  ;;  %v570_v63 = vmul.f32 %v6882_v3, %v6675_v57  ;;  %v572_v10 = vmul.f32 %v6882_v3, %v6693_v1  ;;  %v5070_v39 = vor.u32 %v5896_v60, %v5067_v29  ;;  %v4923_v36 = vld [vmem:[#allocation7 + $0x78] sm:$0xf0]  ;;  %v5890_v43 = vld [vmem:[#allocation7 + $0x154] sm:$0xf0]  ;;  %v5856_v46 = vld [vmem:[#allocation7 + $0x4c] sm:$0xf] }
 0x183   :  { %v7014_v4 = vpack.c.bf16 %v664_v25, %v662_v22  ;;  %1278 = vmatpush.bf16.msrb.mxu2 %v4938_v51  ;;  %v571_v53 = vmul.f32 %v6885_v7, %v6685_v61  ;;  %v573_v23 = vmul.f32 %v6885_v7, %v6699_v5  ;;  %1327 = vmatpush.bf16.msrb.mxu3 %v5066_v49  ;;  %v4921_v5 = vld [vmem:[#allocation7 + $0x68] sm:$0xf]  ;;  %v5051_v17 = vld [vmem:[#allocation7 + $0x178] sm:$0xf0]  ;;  %v5888_v29 = vld [vmem:[#allocation7 + $0x14c] sm:$0xf] }
 0x184   :  { %1376 = vmatpush.bf16.msra.mxu0 %v4942_v56  ;;  %v609_v2 = vadd.f32 %v6902_v58, %v570_v63  ;;  %v611_v44 = vadd.f32 %v6902_v58, %v572_v10  ;;  %1425 = vmatpush.bf16.msra.mxu1 %v5070_v39  ;;  %v4922_v19 = vor.u32 %v5862_v47, %v4921_v5  ;;  %v4907_v49 = vld [vmem:[#allocation7 + $0x58] sm:$0xf0]  ;;  %v4889_v39 = vld [vmem:[#allocation7 + $0x28] sm:$0xf] }
 0x185   :  { %v610_v57 = vadd.f32 %v6904_v32, %v571_v53  ;;  %v612_v27 = vadd.f32 %v6904_v32, %v573_v23  ;;  %v5050_v28 = vor.u32 %v5894_v55, %v5049_v52  ;;  %v4926_v20 = vor.u32 %v5860_v18, %v4923_v36  ;;  %v5035_v63 = vld [vmem:[#allocation7 + $0x158] sm:$0xf0]  ;;  %v5854_v53 = vld [vmem:[#allocation7 + $0x34] sm:$0xf0]  ;;  %v5017_v23 = vld [vmem:[#allocation7 + $0x128] sm:$0xf] }
 0x186   :  { %v641_v1 = vmax.f32 %v609_v2, 0.0  ;;  %v643_v11 = vmax.f32 %v611_v44, 0.0  ;;  %v574_v35 = vmul.f32 %v6882_v3, %v6709_v16  ;;  %v576_v25 = vmul.f32 %v6882_v3, %v6723_v13  ;;  %v5886_v44 = vld [vmem:[#allocation7 + $0x134] sm:$0xf0]  ;;  %v4873_v47 = vld [vmem:[#allocation7 + $0x8] sm:$0xf] }
 0x187   :  { %v642_v34 = vmax.f32 %v610_v57, 0.0  ;;  %v644_v37 = vmax.f32 %v612_v27, 0.0  ;;  %1279 = vmatpush.bf16.msrb.mxu2 %v4922_v19  ;;  %v5054_v40 = vor.u32 %v5892_v26, %v5051_v17  ;;  %v575_v48 = vmul.f32 %v6885_v7, %v6713_v9  ;;  %1328 = vmatpush.bf16.msrb.mxu3 %v5050_v28  ;;  %v5852_v57 = vld [vmem:[#allocation7 + $0x2c] sm:$0xf]  ;;  %v4891_v27 = vld [vmem:[#allocation7 + $0x38] sm:$0xf0] }
 0x188   :  { %1092 = vmatmul.bf16.gmra.mxu2 %v7002_v12  ;;  %1190 = vmatmul.bf16.gmra.mxu0 %v7002_v12  ;;  %v7028_v50 = vpack.c.bf16 %v643_v11, %v641_v1  ;;  %v577_v62 = vmul.f32 %v6885_v7, %v6729_v31  ;;  %v613_v22 = vadd.f32 %v6902_v58, %v574_v35  ;;  %v4905_v31 = vld [vmem:[#allocation7 + $0x48] sm:$0xf]  ;;  %v5858_v7 = vld [vmem:[#allocation7 + $0x54] sm:$0xf0]  ;;  %v5848_v36 = vld [vmem:[#allocation7 + $0xc] sm:$0xf] }
 0x189   :  { %1141 = vmatmul.bf16.gmra.mxu3 %v7006_v30  ;;  %1239 = vmatmul.bf16.gmra.mxu1 %v7006_v30  ;;  %v7030_v61 = vpack.c.bf16 %v644_v37, %v642_v34  ;;  %v615_v42 = vadd.f32 %v6902_v58, %v576_v25  ;;  %v614_v16 = vadd.f32 %v6904_v32, %v575_v48  ;;  %v5033_v58 = vld [vmem:[#allocation7 + $0x148] sm:$0xf]  ;;  %v5884_v34 = vld [vmem:[#allocation7 + $0x12c] sm:$0xf]  ;;  %v5019_v37 = vld [vmem:[#allocation7 + $0x138] sm:$0xf0] }
 0x18a   :  { %1377 = vmatpush.bf16.msra.mxu0 %v4926_v20  ;;  %1426 = vmatpush.bf16.msra.mxu1 %v5054_v40  ;;  %v616_v0 = vadd.f32 %v6904_v32, %v577_v62  ;;  %v645_v13 = vmax.f32 %v613_v22, 0.0  ;;  %v4906_v32 = vor.u32 %v5858_v7, %v4905_v31  ;;  %v5034_v56 = vor.u32 %v5890_v43, %v5033_v58  ;;  %v5850_v52 = vld [vmem:[#allocation7 + $0x14] sm:$0xf0]  ;;  %v5001_v19 = vld [vmem:[#allocation7 + $0x108] sm:$0xf] }
 0x18b   :  { %v647_v3 = vmax.f32 %v615_v42, 0.0  ;;  %v646_v41 = vmax.f32 %v614_v16, 0.0  ;;  %v4910_v60 = vor.u32 %v5856_v46, %v4907_v49  ;;  %v5038_v10 = vor.u32 %v5888_v29, %v5035_v63  ;;  %v5882_v18 = vld [vmem:[#allocation7 + $0x114] sm:$0xf0]  ;;  %v4875_v28 = vld [vmem:[#allocation7 + $0x18] sm:$0xf0] }
 0x18c   :  { %v648_v51 = vmax.f32 %v616_v0, 0.0  ;;  %1280 = vmatpush.bf16.msrb.mxu2 %v4906_v32  ;;  %1329 = vmatpush.bf16.msrb.mxu3 %v5034_v56  ;;  %v4890_v2 = vor.u32 %v5854_v53, %v4889_v39  ;;  %v5018_v1 = vor.u32 %v5886_v44, %v5017_v23  ;;  %v4894_v11 = vor.u32 %v5852_v57, %v4891_v27  ;;  %v5880_v17 = vld [vmem:[#allocation7 + $0x10c] sm:$0xf]  ;;  %v5003_v35 = vld [vmem:[#allocation7 + $0x118] sm:$0xf0] }
 0x18d   :  { %v7048_v14 = vpack.c.bf16 %v647_v3, %v645_v13  ;;  %v5022_v5 = vor.u32 %v5884_v34, %v5019_v37  ;;  %v4874_v55 = vor.u32 %v5850_v52, %v4873_v47  ;;  %v5002_v20 = vor.u32 %v5882_v18, %v5001_v19  ;;  %v7072_v40 = vld [vmem:[#allocation11 + $0x8] sm:$0x77] }
 0x18e   :  { %v7050_v9 = vpack.c.bf16 %v648_v51, %v646_v41  ;;  %1378 = vmatpush.bf16.msra.mxu0 %v4910_v60  ;;  %1427 = vmatpush.bf16.msra.mxu1 %v5038_v10  ;;  %v4878_v26 = vor.u32 %v5848_v36, %v4875_v28  ;;  %v5006_v25 = vor.u32 %v5880_v17, %v5003_v35  ;;  %v748_v48 = vperm.slane %v7072_v40, 4 }
 0x18f   :  { %v747_v22 = vperm.slane %v7072_v40, 0 }
 0x190   :  { %1281 = vmatpush.bf16.msrb.mxu2 %v4890_v2  ;;  %1330 = vmatpush.bf16.msrb.mxu3 %v5018_v1  ;;  %v7075_v62 = vperm.slane %v748_v48, 0 }
 0x191   :  { %v7083_v3 = vperm.slane %v747_v22, 0 }
 0x192   :  { %1379 = vmatpush.bf16.msra.mxu0 %v4894_v11  ;;  %1428 = vmatpush.bf16.msra.mxu1 %v5022_v5 }
 0x194   :  { %1282 = vmatpush.bf16.msrb.mxu2 %v4874_v55  ;;  %1331 = vmatpush.bf16.msrb.mxu3 %v5002_v20 }
 0x196   :  { %1380 = vmatpush.bf16.msra.mxu0 %v4878_v26  ;;  %1429 = vmatpush.bf16.msra.mxu1 %v5006_v25 }
 0x198   :  { %1097 = vmatmul.bf16.gmra.mxu2 %v7028_v50  ;;  %1195 = vmatmul.bf16.gmra.mxu0 %v7028_v50 }
 0x199   :  { %1146 = vmatmul.bf16.gmra.mxu3 %v7030_v61  ;;  %1244 = vmatmul.bf16.gmra.mxu1 %v7030_v61 }
 0x1a8   :  { %1102 = vmatmul.bf16.gmra.mxu2 %v7048_v14  ;;  %1200 = vmatmul.bf16.gmra.mxu0 %v7048_v14 }
 0x1a9   :  { %1151 = vmatmul.bf16.gmra.mxu3 %v7050_v9  ;;  %1249 = vmatmul.bf16.gmra.mxu1 %v7050_v9 }
 0x1b8   :  { %1107 = vmatmul.bf16.gmra.mxu2 %v6978_v33  ;;  %1205 = vmatmul.bf16.gmra.mxu0 %v6978_v33 }
 0x1b9   :  { %1156 = vmatmul.bf16.gmra.mxu3 %v6985_v54  ;;  %1254 = vmatmul.bf16.gmra.mxu1 %v6985_v54 }
 0x1c8   :  { %1112 = vmatmul.bf16.gmra.mxu2 %v6989_v24  ;;  %1210 = vmatmul.bf16.gmra.mxu0 %v6989_v24 }
 0x1c9   :  { %1161 = vmatmul.bf16.gmra.mxu3 %v6993_v21  ;;  %1259 = vmatmul.bf16.gmra.mxu1 %v6993_v21 }
 0x1d8   :  { %1117 = vmatmul.bf16.gmra.mxu2 %v6998_v45  ;;  %1215 = vmatmul.bf16.gmra.mxu0 %v6998_v45 }
 0x1d9   :  { %1166 = vmatmul.bf16.gmra.mxu3 %v7004_v6  ;;  %1264 = vmatmul.bf16.gmra.mxu1 %v7004_v6 }
 0x1e8   :  { %1122 = vmatmul.bf16.gmra.mxu2 %v7010_v59  ;;  %1220 = vmatmul.bf16.gmra.mxu0 %v7010_v59 }
 0x1e9   :  { %1171 = vmatmul.bf16.gmra.mxu3 %v7014_v4  ;;  %1269 = vmatmul.bf16.gmra.mxu1 %v7014_v4 }
 0x1f5   :  { %v1186_v42 = vpop.f32.mrf.mxu0 }
 0x1f6   :  { %v1187_v16 = vadd.f32 %v1186_v42, %v7075_v62  ;;  %v1235_v0 = vpop.f32.mrf.mxu1 }
 0x1f8   :  { %v7079_v13 = vadd.f32 %v1235_v0, %v1187_v16  ;;  %1283 = vmatmul.bf16.vlgmr.msrb.gmra.mxu2 %v6927_v38  ;;  %1381 = vmatmul.bf16.vlgmr.msra.gmra.mxu0 %v6927_v38 }
 0x1f9   :  { %1332 = vmatmul.bf16.vlgmr.msrb.gmra.mxu3 %v6935_v15  ;;  %1430 = vmatmul.bf16.vlgmr.msra.gmra.mxu1 %v6935_v15 }
 0x1fb   :  { %v1088_v41 = vpop.f32.mrf.mxu2 }
 0x1fc   :  { %v1089_v51 = vadd.f32 %v1088_v41, %v7083_v3  ;;  %v1137_v31 = vpop.f32.mrf.mxu3 }
 0x1fd   :  { %v1188_v7 = vpop.f32.mrf.mxu0 }
 0x1fe   :  { %v7088_v58 = vadd.f32 %v1137_v31, %v1089_v51  ;;  %v1189_v32 = vadd.f32 %v1188_v7, %v7075_v62  ;;  %v1237_v43 = vpop.f32.mrf.mxu1 }
 0x200   :  { %v7091_v46 = vadd.f32 %v1237_v43, %v1189_v32 }
 0x203   :  { %v1090_v49 = vpop.f32.mrf.mxu2 }
 0x204   :  { %v1091_v38 = vadd.f32 %v1090_v49, %v7083_v3  ;;  %v1139_v56 = vpop.f32.mrf.mxu3 }
 0x205   :  { %v1191_v60 = vpop.f32.mrf.mxu0 }
 0x206   :  { %v7094_v29 = vadd.f32 %v1139_v56, %v1091_v38  ;;  %v1192_v15 = vadd.f32 %v1191_v60, %v7075_v62  ;;  %v1240_v63 = vpop.f32.mrf.mxu1  ;;  %v1564_v60 = vmul.f32 %v7091_v46, %v7091_v46 }
 0x208   :  { %v7097_v10 = vadd.f32 %v1240_v63, %v1192_v15  ;;  %1288 = vmatmul.bf16.gmra.mxu2 %v7002_v12  ;;  %1386 = vmatmul.bf16.gmra.mxu0 %v7002_v12  ;;  %v1563_v15 = vmul.f32 %v7094_v29, %v7094_v29  ;;  %v1559_v63 = vmul.f32 %v7088_v58, %v7088_v58 }
 0x209   :  { %1337 = vmatmul.bf16.gmra.mxu3 %v7006_v30  ;;  %1435 = vmatmul.bf16.gmra.mxu1 %v7006_v30 }
 0x20b   :  { %v1093_v39 = vpop.f32.mrf.mxu2 }
 0x20c   :  { %v1094_v53 = vadd.f32 %v1093_v39, %v7083_v3  ;;  %v1142_v23 = vpop.f32.mrf.mxu3 }
 0x20d   :  { %v1193_v2 = vpop.f32.mrf.mxu0 }
 0x20e   :  { %v7104_v44 = vadd.f32 %v1142_v23, %v1094_v53  ;;  %v1194_v57 = vadd.f32 %v1193_v2, %v7075_v62  ;;  %v1242_v27 = vpop.f32.mrf.mxu1  ;;  %v1492_v23 = vadd.f32 %v7091_v46, %v7079_v13 }
 0x210   :  { %v7107_v1 = vadd.f32 %v1242_v27, %v1194_v57  ;;  %v1567_v39 = vmul.f32 %v7104_v44, %v7104_v44  ;;  %v1471_v57 = vadd.f32 %v7094_v29, %v7088_v58 }
 0x213   :  { %v1095_v11 = vpop.f32.mrf.mxu2 }
 0x214   :  { %v1096_v34 = vadd.f32 %v1095_v11, %v7083_v3  ;;  %v1144_v12 = vpop.f32.mrf.mxu3 }
 0x215   :  { %v1196_v37 = vpop.f32.mrf.mxu0 }
 0x216   :  { %v7110_v5 = vadd.f32 %v1144_v12, %v1096_v34  ;;  %v1197_v30 = vadd.f32 %v1196_v37, %v7075_v62  ;;  %v1245_v47 = vpop.f32.mrf.mxu1  ;;  %v1623_v34 = vadd.f32 %v1563_v15, %v1559_v63  ;;  %v1572_v12 = vmul.f32 %v7107_v1, %v7107_v1 }
 0x218   :  { %v7113_v52 = vadd.f32 %v1245_v47, %v1197_v30  ;;  %1293 = vmatmul.bf16.gmra.mxu2 %v7028_v50  ;;  %1391 = vmatmul.bf16.gmra.mxu0 %v7028_v50  ;;  %v1493_v47 = vadd.f32 %v1492_v23, %v7097_v10 }
 0x219   :  { %1342 = vmatmul.bf16.gmra.mxu3 %v7030_v61  ;;  %1440 = vmatmul.bf16.gmra.mxu1 %v7030_v61 }
 0x21a   :  { %8939 = vst [vmem:[#allocation20_spill] sm:$0xff] %v7113_v52  ;;  %v1494_v63 = vadd.f32 %v1493_v47, %v7107_v1 }
 0x21b   :  { %v1098_v19 = vpop.f32.mrf.mxu2 }
 0x21c   :  { %v1099_v55 = vadd.f32 %v1098_v19, %v7083_v3  ;;  %v1147_v18 = vpop.f32.mrf.mxu3 }
 0x21d   :  { %v1198_v36 = vpop.f32.mrf.mxu0 }
 0x21e   :  { %v7120_v28 = vadd.f32 %v1147_v18, %v1099_v55  ;;  %v1247_v20 = vpop.f32.mrf.mxu1  ;;  %v1199_v53 = vadd.f32 %v1198_v36, %v7075_v62  ;;  %v1472_v55 = vadd.f32 %v1471_v57, %v7104_v44  ;;  %v1624_v36 = vadd.f32 %v1623_v34, %v1567_v39 }
 0x223   :  { %v1100_v26 = vpop.f32.mrf.mxu2 }
 0x224   :  { %v7122_v17 = vpop.f32.mrf.mxu3  ;;  %v1101_v27 = vadd.f32 %v1100_v26, %v7083_v3 }
 0x225   :  { %v1201_v35 = vpop.f32.mrf.mxu0 }
 0x226   :  { %v7124_v25 = vpop.f32.mrf.mxu1  ;;  %v1202_v37 = vadd.f32 %v1201_v35, %v7075_v62  ;;  %v1571_v35 = vmul.f32 %v7110_v5, %v7110_v5  ;;  %v7205_v23 = vadd.f32 %v7122_v17, %v1101_v27  ;;  %v1495_v27 = vadd.f32 %v1494_v63, %v7113_v52 }
 0x228   :  { %1298 = vmatmul.bf16.gmra.mxu2 %v7048_v14  ;;  %1396 = vmatmul.bf16.gmra.mxu0 %v7048_v14  ;;  %8941 = vst [vmem:[#allocation22_spill] sm:$0xff] %v7205_v23  ;;  %v1625_v57 = vadd.f32 %v1624_v36, %v1571_v35 }
 0x229   :  { %1347 = vmatmul.bf16.gmra.mxu3 %v7050_v9  ;;  %1445 = vmatmul.bf16.gmra.mxu1 %v7050_v9 }
 0x22b   :  { %v1103_v50 = vpop.f32.mrf.mxu2 }
 0x22c   :  { %v7130_v61 = vpop.f32.mrf.mxu3  ;;  %v1104_v26 = vadd.f32 %v1103_v50, %v7083_v3 }
 0x22d   :  { %v1203_v48 = vpop.f32.mrf.mxu0 }
 0x22e   :  { %v7132_v22 = vpop.f32.mrf.mxu1  ;;  %v1204_v15 = vadd.f32 %v1203_v48, %v7075_v62  ;;  %v1473_v48 = vadd.f32 %v1472_v55, %v7110_v5 }
 0x233   :  { %v1105_v42 = vpop.f32.mrf.mxu2 }
 0x234   :  { %v7134_v16 = vpop.f32.mrf.mxu3 }
 0x235   :  { %v1206_v0 = vpop.f32.mrf.mxu0 }
 0x236   :  { %v7136_v41 = vpop.f32.mrf.mxu1  ;;  %v1207_v50 = vadd.f32 %v1206_v0, %v7075_v62  ;;  %v7225_v0 = vadd.f32 %v7132_v22, %v1204_v15 }
 0x238   :  { %1303 = vmatmul.bf16.gmra.mxu2 %v6978_v33  ;;  %1401 = vmatmul.bf16.gmra.mxu0 %v6978_v33  ;;  %8944 = vst [vmem:[#allocation25_spill] sm:$0xff] %v7225_v0 }
 0x239   :  { %1352 = vmatmul.bf16.gmra.mxu3 %v6985_v54  ;;  %1450 = vmatmul.bf16.gmra.mxu1 %v6985_v54 }
 0x23b   :  { %v7142_v14 = vpop.f32.mrf.mxu2 }
 0x23c   :  { %v7144_v9 = vpop.f32.mrf.mxu3  ;;  %v1109_v36 = vadd.f32 %v7142_v14, %v7083_v3 }
 0x23d   :  { %v1208_v51 = vpop.f32.mrf.mxu0 }
 0x23e   :  { %v7146_v31 = vpop.f32.mrf.mxu1 }
 0x243   :  { %v7148_v7 = vpop.f32.mrf.mxu2 }
 0x244   :  { %v7150_v32 = vpop.f32.mrf.mxu3 }
 0x245   :  { %v1211_v43 = vpop.f32.mrf.mxu0 }
 0x246   :  { %v7152_v49 = vpop.f32.mrf.mxu1  ;;  %v1212_v22 = vadd.f32 %v1211_v43, %v7075_v62 }
 0x248   :  { %1308 = vmatmul.bf16.gmra.mxu2 %v6989_v24  ;;  %1406 = vmatmul.bf16.gmra.mxu0 %v6989_v24  ;;  %v1560_v24 = vmul.f32 %v7079_v13, %v7079_v13 }
 0x249   :  { %1357 = vmatmul.bf16.gmra.mxu3 %v6993_v21  ;;  %1455 = vmatmul.bf16.gmra.mxu1 %v6993_v21  ;;  %v1568_v21 = vmul.f32 %v7097_v10, %v7097_v10 }
 0x24a   :  { %v1644_v2 = vadd.f32 %v1564_v60, %v1560_v24  ;;  %v7193_v60 = vadd.f32 %v1247_v20, %v1199_v53  ;;  %v7208_v20 = vadd.f32 %v7124_v25, %v1202_v37  ;;  %v1575_v53 = vmul.f32 %v7120_v28, %v7120_v28 }
 0x24b   :  { %v7158_v33 = vpop.f32.mrf.mxu2  ;;  %v7222_v25 = vadd.f32 %v7130_v61, %v1104_v26  ;;  %v7235_v61 = vadd.f32 %v7136_v41, %v1207_v50  ;;  %v1588_v41 = vmul.f32 %v7225_v0, %v7225_v0 }
 0x24c   :  { %v7160_v54 = vpop.f32.mrf.mxu3  ;;  %v1645_v19 = vadd.f32 %v1644_v2, %v1568_v21  ;;  %8940 = vst [vmem:[#allocation21_spill] sm:$0xff] %v7193_v60  ;;  %v1576_v21 = vmul.f32 %v7113_v52, %v7113_v52  ;;  %v1106_v2 = vadd.f32 %v1105_v42, %v7083_v3  ;;  %v1580_v17 = vmul.f32 %v7193_v60, %v7193_v60  ;;  %v5369_v52 = vld [vmem:[#allocation8 + $0x1f0] sm:$0xf] }
 0x24d   :  { %v7162_v38 = vpop.f32.mrf.mxu0  ;;  %8942 = vst [vmem:[#allocation23_spill] sm:$0xff] %v7208_v20  ;;  %v1579_v42 = vmul.f32 %v7205_v23, %v7205_v23  ;;  %v1584_v37 = vmul.f32 %v7208_v20, %v7208_v20  ;;  %v1583_v63 = vmul.f32 %v7222_v25, %v7222_v25 }
 0x24e   :  { %v7164_v56 = vpop.f32.mrf.mxu1  ;;  %v1646_v39 = vadd.f32 %v1645_v19, %v1572_v12  ;;  %8943 = vst [vmem:[#allocation24_spill] sm:$0xff] %v7222_v25  ;;  %v1496_v19 = vadd.f32 %v1495_v27, %v7193_v60  ;;  %v7242_v55 = vadd.f32 %v7134_v16, %v1106_v2  ;;  %v1111_v16 = vadd.f32 %v7148_v7, %v7083_v3  ;;  %v5914_v60 = vld [vmem:[#allocation8 + $0x14] sm:$0xf0] }
 0x24f   :  { %v1214_v14 = vadd.f32 %v7162_v38, %v7075_v62  ;;  %v7262_v2 = vadd.f32 %v7152_v49, %v1212_v22 }
 0x250   :  { %v1647_v34 = vadd.f32 %v1646_v39, %v1576_v21  ;;  %8945 = vst [vmem:[#allocation26_spill] sm:$0xff] %v7242_v55  ;;  %v1497_v50 = vadd.f32 %v1496_v19, %v7208_v20 }
 0x252   :  { %v1648_v15 = vadd.f32 %v1647_v34, %v1580_v17  ;;  %v1587_v17 = vmul.f32 %v7242_v55, %v7242_v55 }
 0x253   :  { %v7184_v11 = vpop.f32.mrf.mxu2 }
 0x254   :  { %v7189_v30 = vpop.f32.mrf.mxu3 }
 0x255   :  { %v1216_v18 = vpop.f32.mrf.mxu0 }
 0x256   :  { %v7197_v24 = vpop.f32.mrf.mxu1  ;;  %v1217_v7 = vadd.f32 %v1216_v18, %v7075_v62 }
 0x258   :  { %1313 = vmatmul.bf16.gmra.mxu2 %v6998_v45  ;;  %1411 = vmatmul.bf16.gmra.mxu0 %v6998_v45  ;;  %v1209_v45 = vadd.f32 %v1208_v51, %v7075_v62  ;;  %v1626_v51 = vadd.f32 %v1625_v57, %v1575_v53  ;;  %v1592_v53 = vmul.f32 %v7235_v61, %v7235_v61 }
 0x259   :  { %1362 = vmatmul.bf16.gmra.mxu3 %v7004_v6  ;;  %1460 = vmatmul.bf16.gmra.mxu1 %v7004_v6  ;;  %v1474_v6 = vadd.f32 %v1473_v48, %v7120_v28  ;;  %v1649_v48 = vadd.f32 %v1648_v15, %v1584_v37  ;;  %v1498_v57 = vadd.f32 %v1497_v50, %v7225_v0  ;;  %v5145_v0 = vld [vmem:[#allocation8 + $0x30] sm:$0xf] }
 0x25a   :  { %v7251_v43 = vadd.f32 %v7146_v31, %v1209_v45  ;;  %v1627_v39 = vadd.f32 %v1626_v51, %v1579_v42  ;;  %v7268_v45 = vadd.f32 %v7144_v9, %v1109_v36  ;;  %v7276_v42 = vadd.f32 %v7150_v32, %v1111_v16 }
 0x25b   :  { %v1118_v12 = vpop.f32.mrf.mxu2  ;;  %v1475_v21 = vadd.f32 %v1474_v6, %v7205_v23  ;;  %v1650_v27 = vadd.f32 %v1649_v48, %v1588_v41  ;;  %v1114_v6 = vadd.f32 %v7158_v33, %v7083_v3  ;;  %v7281_v9 = vadd.f32 %v7164_v56, %v1214_v14 }
 0x25c   :  { %v7238_v47 = vpop.f32.mrf.mxu3  ;;  %v1628_v38 = vadd.f32 %v1627_v39, %v1583_v63  ;;  %v1596_v34 = vmul.f32 %v7251_v43, %v7251_v43  ;;  %v1499_v18 = vadd.f32 %v1498_v57, %v7235_v61  ;;  %v1600_v51 = vmul.f32 %v7262_v2, %v7262_v2 }
 0x25d   :  { %v1218_v26 = vpop.f32.mrf.mxu0  ;;  %v1476_v31 = vadd.f32 %v1475_v21, %v7222_v25  ;;  %v1651_v22 = vadd.f32 %v1650_v27, %v1592_v53  ;;  %v1116_v63 = vadd.f32 %v7184_v11, %v7083_v3  ;;  %v7291_v33 = vadd.f32 %v7197_v24, %v1217_v7 }
 0x25e   :  { %v1267_v35 = vpop.f32.mrf.mxu1  ;;  %v1219_v19 = vadd.f32 %v1218_v26, %v7075_v62  ;;  %v1629_v15 = vadd.f32 %v1628_v38, %v1587_v17  ;;  %v1591_v41 = vmul.f32 %v7268_v45, %v7268_v45  ;;  %v1500_v21 = vadd.f32 %v1499_v18, %v7251_v43 }
 0x25f   :  { %v1477_v49 = vadd.f32 %v1476_v31, %v7242_v55  ;;  %v1652_v39 = vadd.f32 %v1651_v22, %v1596_v34  ;;  %v1595_v14 = vmul.f32 %v7276_v42, %v7276_v42  ;;  %v7300_v50 = vadd.f32 %v7160_v54, %v1114_v6 }
 0x260   :  { %v1604_v11 = vmul.f32 %v7281_v9, %v7281_v9  ;;  %v1119_v24 = vadd.f32 %v1118_v12, %v7083_v3  ;;  %v1501_v48 = vadd.f32 %v1500_v21, %v7262_v2  ;;  %v7306_v31 = vadd.f32 %v1267_v35, %v1219_v19 }
 0x261   :  { %v1478_v32 = vadd.f32 %v1477_v49, %v7268_v45  ;;  %v1653_v53 = vadd.f32 %v1652_v39, %v1600_v51  ;;  %v7311_v17 = vadd.f32 %v7189_v30, %v1116_v63  ;;  %v1608_v54 = vmul.f32 %v7291_v33, %v7291_v33  ;;  %v118_v49 = vld [vmem:[#allocation11 + $0x10] sm:$0x77] }
 0x262   :  { %8946 = vst [vmem:[#allocation27_spill] sm:$0xff] %v7306_v31  ;;  %v1630_v12 = vadd.f32 %v1629_v15, %v1591_v41  ;;  %v1502_v35 = vadd.f32 %v1501_v48, %v7281_v9  ;;  %v7325_v27 = vadd.f32 %v7238_v47, %v1119_v24  ;;  %v750_v39 = vperm.slane %v118_v49, 4 }
 0x263   :  { %v1120_v37 = vpop.f32.mrf.mxu2  ;;  %v1479_v57 = vadd.f32 %v1478_v32, %v7276_v42  ;;  %v1654_v30 = vadd.f32 %v1653_v53, %v1604_v11  ;;  %v1603_v19 = vmul.f32 %v7311_v17, %v7311_v17 }
 0x264   :  { %v1169_v36 = vpop.f32.mrf.mxu3  ;;  %v1121_v7 = vadd.f32 %v1120_v37, %v7083_v3  ;;  %v1631_v6 = vadd.f32 %v1630_v12, %v1595_v14  ;;  %v1503_v37 = vadd.f32 %v1502_v35, %v7291_v33  ;;  %v1607_v14 = vmul.f32 %v7325_v27, %v7325_v27 }
 0x265   :  { %v1221_v56 = vpop.f32.mrf.mxu0  ;;  %v1480_v51 = vadd.f32 %v1479_v57, %v7300_v50  ;;  %v1655_v15 = vadd.f32 %v1654_v30, %v1608_v54  ;;  %v7354_v57 = vperm.slane %v750_v39, 0 }
 0x266   :  { %v1222_v16 = vadd.f32 %v1221_v56, %v7075_v62  ;;  %v1270_v26 = vpop.f32.mrf.mxu1  ;;  %v7334_v32 = vadd.f32 %v1169_v36, %v1121_v7  ;;  %v1504_v63 = vadd.f32 %v1503_v37, %v7306_v31 }
 0x268   :  { %1318 = vmatmul.bf16.gmra.mxu2 %v7010_v59  ;;  %1416 = vmatmul.bf16.gmra.mxu0 %v7010_v59  ;;  %v7319_v38 = vadd.f32 %v1270_v26, %v1222_v16  ;;  %v1599_v59 = vmul.f32 %v7300_v50, %v7300_v50  ;;  %v1481_v26 = vadd.f32 %v1480_v51, %v7311_v17 }
 0x269   :  { %1367 = vmatmul.bf16.gmra.mxu3 %v7014_v4  ;;  %1465 = vmatmul.bf16.gmra.mxu1 %v7014_v4  ;;  %v1612_v4 = vmul.f32 %v7306_v31, %v7306_v31  ;;  %v5305_v31 = vld [vmem:[#allocation8 + $0x170] sm:$0xf] }
 0x26a   :  { %8947 = vst [vmem:[#allocation28_spill] sm:$0xff] %v7319_v38  ;;  %v1616_v56 = vmul.f32 %v7319_v38, %v7319_v38  ;;  %v1632_v16 = vadd.f32 %v1631_v6, %v1599_v59  ;;  %v1505_v24 = vadd.f32 %v1504_v63, %v7319_v38  ;;  %v1482_v54 = vadd.f32 %v1481_v26, %v7325_v27  ;;  %v5916_v38 = vld [vmem:[#allocation8 + $0x24] sm:$0xf0] }
 0x26b   :  { %v1123_v34 = vpop.f32.mrf.mxu2  ;;  %v1656_v36 = vadd.f32 %v1655_v15, %v1612_v4 }
 0x26c   :  { %v1124_v18 = vadd.f32 %v1123_v34, %v7083_v3  ;;  %v1172_v22 = vpop.f32.mrf.mxu3  ;;  %v1633_v53 = vadd.f32 %v1632_v16, %v1603_v19  ;;  %v1483_v30 = vadd.f32 %v1482_v54, %v7334_v32 }
 0x26d   :  { %v1223_v47 = vpop.f32.mrf.mxu0  ;;  %v1657_v7 = vadd.f32 %v1656_v36, %v1616_v56 }
 0x26e   :  { %v1224_v41 = vadd.f32 %v1223_v47, %v7075_v62  ;;  %v1272_v21 = vpop.f32.mrf.mxu1  ;;  %v7343_v11 = vadd.f32 %v1172_v22, %v1124_v18  ;;  %v1611_v62 = vmul.f32 %v7334_v32, %v7334_v32  ;;  %v1634_v59 = vadd.f32 %v1633_v53, %v1607_v14 }
 0x26f   :  { %v749_v47 = vperm.slane %v118_v49, 0 }
 0x270   :  { %8948 = vst [vmem:[#allocation29_spill] sm:$0xff] %v7343_v11  ;;  %v7346_v48 = vadd.f32 %v1272_v21, %v1224_v41  ;;  %v1615_v34 = vmul.f32 %v7343_v11, %v7343_v11  ;;  %v1635_v51 = vadd.f32 %v1634_v59, %v1611_v62  ;;  %v1484_v19 = vadd.f32 %v1483_v30, %v7343_v11 }
 0x271   :  { %v7369_v53 = vperm.slane %v749_v47, 0 }
 0x272   :  { %v1506_v12 = vadd.f32 %v1505_v24, %v7346_v48  ;;  %v1620_v35 = vmul.f32 %v7346_v48, %v7346_v48  ;;  %v1636_v16 = vadd.f32 %v1635_v51, %v1615_v34 }
 0x273   :  { %v1125_v6 = vpop.f32.mrf.mxu2 }
 0x274   :  { %v1507_v37 = vrot.slane %v1506_v12, 4  ;;  %v1658_v4 = vadd.f32 %v1657_v7, %v1620_v35  ;;  %v1126_v18 = vadd.f32 %v1125_v6, %v7083_v3  ;;  %v1174_v22 = vpop.f32.mrf.mxu3 }
 0x275   :  { %v1382_v15 = vpop.f32.mrf.mxu0 }
 0x276   :  { %v1508_v63 = vadd.f32 %v1507_v37, %v1506_v12  ;;  %v1659_v56 = vrot.slane %v1658_v4, 4  ;;  %v7361_v41 = vadd.f32 %v1174_v22, %v1126_v18  ;;  %v1383_v21 = vadd.f32 %v1382_v15, %v7354_v57  ;;  %v1431_v39 = vpop.f32.mrf.mxu1 }
 0x278   :  { %v1509_v26 = vrot.slane %v1508_v63, 2  ;;  %v1660_v14 = vadd.f32 %v1659_v56, %v1658_v4  ;;  %v1485_v36 = vadd.f32 %v1484_v19, %v7361_v41  ;;  %v1619_v3 = vmul.f32 %v7361_v41, %v7361_v41 }
 0x279   :  { %v7367_v24 = vadd.f32 %v1431_v39, %v1383_v21 }
 0x27a   :  { %v1510_v49 = vadd.f32 %v1509_v26, %v1508_v63  ;;  %v1661_v54 = vrot.slane %v1660_v14, 2  ;;  %v1486_v62 = vrot.slane %v1485_v36, 4  ;;  %v1637_v7 = vadd.f32 %v1636_v16, %v1619_v3 }
 0x27b   :  { %8949 = vst [vmem:[#allocation30_spill] sm:$0xff] %v7367_v24  ;;  %v1284_v12 = vpop.f32.mrf.mxu2 }
 0x27c   :  { %v1511_v35 = vrot.slane %v1510_v49, 1  ;;  %v1662_v59 = vadd.f32 %v1661_v54, %v1660_v14  ;;  %v1487_v30 = vadd.f32 %v1486_v62, %v1485_v36  ;;  %v1638_v34 = vrot.slane %v1637_v7, 4  ;;  %v1333_v6 = vpop.f32.mrf.mxu3 }
 0x27d   :  { %v1285_v37 = vadd.f32 %v1284_v12, %v7369_v53  ;;  %v7372_v4 = vpop.f32.mrf.mxu0 }
 0x27e   :  { %v1512_v18 = vadd.f32 %v1511_v35, %v1510_v49  ;;  %v1663_v22 = vrot.slane %v1662_v59, 1  ;;  %v1488_v51 = vrot.slane %v1487_v30, 2  ;;  %v1639_v19 = vadd.f32 %v1638_v34, %v1637_v7  ;;  %v7374_v15 = vpop.f32.mrf.mxu1 }
 0x27f   :  { %v7376_v47 = vadd.f32 %v1333_v6, %v1285_v37  ;;  %v5177_v6 = vld [vmem:[#allocation8 + $0x70] sm:$0xf]  ;;  %v5926_v37 = vld [vmem:[#allocation8 + $0x74] sm:$0xf0] }
 0x280   :  { %v7379_v63 = vmul.f32 %v1512_v18, %v6856_v8  ;;  %v1664_v56 = vadd.f32 %v1663_v22, %v1662_v59  ;;  %v1489_v21 = vadd.f32 %v1488_v51, %v1487_v30  ;;  %v1640_v39 = vrot.slane %v1639_v19, 2  ;;  %v5241_v51 = vld [vmem:[#allocation8 + $0xf0] sm:$0xf] }
 0x281   :  { %v5178_v22 = vor.u32 %v5926_v37, %v5177_v6 }
 0x282   :  { %v1708_v16 = vmul.f32 %v1664_v56, %v6856_v8  ;;  %v1712_v26 = vmul.f32 %v7379_v63, %v7379_v63  ;;  %v1490_v14 = vrot.slane %v1489_v21, 1  ;;  %v1641_v36 = vadd.f32 %v1640_v39, %v1639_v19  ;;  %v5942_v19 = vld [vmem:[#allocation8 + $0xf4] sm:$0xf0] }
 0x283   :  { %v7384_v3 = vpop.f32.mrf.mxu2  ;;  %2430 = vmatpush.bf16.msra.mxu2 %v5178_v22  ;;  %v5225_v22 = vld [vmem:[#allocation8 + $0xd0] sm:$0xf] }
 0x284   :  { %v1716_v49 = vsub.f32 %v1708_v16, %v1712_v26  ;;  %v1491_v54 = vadd.f32 %v1490_v14, %v1489_v21  ;;  %v1642_v62 = vrot.slane %v1641_v36, 1  ;;  %v7386_v7 = vpop.f32.mrf.mxu3  ;;  %v5242_v26 = vor.u32 %v5942_v19, %v5241_v51 }
 0x285   :  { %v1387_v12 = vpop.f32.mrf.mxu0 }
 0x286   :  { %v1720_v35 = vmax.f32 %v1716_v49, 0.0  ;;  %v7389_v59 = vmul.f32 %v1491_v54, %v6856_v8  ;;  %v1643_v30 = vadd.f32 %v1642_v62, %v1641_v36  ;;  %v1436_v34 = vpop.f32.mrf.mxu1  ;;  %v1388_v18 = vadd.f32 %v1387_v12, %v7354_v57  ;;  %v5169_v36 = vld [vmem:[#allocation8 + $0x60] sm:$0xf]  ;;  %v5924_v49 = vld [vmem:[#allocation8 + $0x64] sm:$0xf0]  ;;  %2479 = vmatpush.bf16.msra.mxu3 %v5242_v26 }
 0x287   :  { %v5233_v54 = vld [vmem:[#allocation8 + $0xe0] sm:$0xf]  ;;  %v5170_v12 = vor.u32 %v5924_v49, %v5169_v36  ;;  %v5938_v26 = vld [vmem:[#allocation8 + $0xd4] sm:$0xf0]  ;;  %v5920_v49 = vld [vmem:[#allocation8 + $0x44] sm:$0xf0] }
 0x288   :  { %v7392_v56 = vadd.f32 1e-05, %v1720_v35  ;;  %v1707_v21 = vmul.f32 %v1643_v30, %v6856_v8  ;;  %v1711_v39 = vmul.f32 %v7389_v59, %v7389_v59  ;;  %v7397_v16 = vadd.f32 %v1436_v34, %v1388_v18  ;;  %v5940_v35 = vld [vmem:[#allocation8 + $0xe4] sm:$0xf0]  ;;  %v5161_v34 = vld [vmem:[#allocation8 + $0x50] sm:$0xf] }
 0x289   :  { %v5234_v8 = vor.u32 %v5940_v35, %v5233_v54  ;;  %2431 = vmatpush.bf16.msra.mxu2 %v5170_v12  ;;  %v5922_v18 = vld [vmem:[#allocation8 + $0x54] sm:$0xf0]  ;;  %v5153_v36 = vld [vmem:[#allocation8 + $0x40] sm:$0xf]  ;;  %v5936_v12 = vld [vmem:[#allocation8 + $0xc4] sm:$0xf0] }
 0x28a   :  { %6111 = vrsqrt.f32 %v7392_v56  ;;  %v1715_v14 = vsub.f32 %v1707_v21, %v1711_v39  ;;  %v5162_v39 = vor.u32 %v5922_v18, %v5161_v34  ;;  %v5217_v54 = vld [vmem:[#allocation8 + $0xc0] sm:$0xf]  ;;  %vm1743_vm9 = vweird.f32 %v7392_v56 }
 0x28b   :  { %v1289_v62 = vpop.f32.mrf.mxu2  ;;  %2480 = vmatpush.bf16.msra.mxu3 %v5234_v8  ;;  %v5218_v34 = vor.u32 %v5936_v12, %v5217_v54  ;;  %v5209_v8 = vld [vmem:[#allocation8 + $0xb0] sm:$0xf]  ;;  %v1768_v12 = vperm.slane %v7072_v40, 5 }
 0x28c   :  { %v1719_v6 = vmax.f32 %v1715_v14, 0.0  ;;  %v1290_v30 = vadd.f32 %v1289_v62, %v7369_v53  ;;  %v1338_v37 = vpop.f32.mrf.mxu3  ;;  %v5226_v14 = vor.u32 %v5938_v26, %v5225_v22  ;;  %v5934_v22 = vld [vmem:[#allocation8 + $0xb4] sm:$0xf0] }
 0x28d   :  { %v7401_v55 = vpop.f32.mrf.mxu0  ;;  %2432 = vmatpush.bf16.msra.mxu2 %v5162_v39  ;;  %v5210_v54 = vor.u32 %v5934_v22, %v5209_v8  ;;  %v5193_v22 = vld [vmem:[#allocation8 + $0x90] sm:$0xf] }
 0x28e   :  { %v7403_v51 = vadd.f32 1e-05, %v1719_v6  ;;  %v7405_v19 = vadd.f32 %v1338_v37, %v1290_v30  ;;  %v7407_v21 = vpop.f32.mrf.mxu1  ;;  %v5154_v6 = vor.u32 %v5920_v49, %v5153_v36  ;;  %v5918_v30 = vld [vmem:[#allocation8 + $0x34] sm:$0xf0]  ;;  %v5137_v49 = vld [vmem:[#allocation8 + $0x20] sm:$0xf] }
 0x28f   :  { %8951 = vst [vmem:[#allocation32_spill] sm:$0xff] %v7407_v21  ;;  %2481 = vmatpush.bf16.msra.mxu3 %v5226_v14 }
 0x290   :  { %8950 = vst [vmem:[#allocation31_spill] sm:$0xff] %v7405_v19  ;;  %v6112_v62 = vpop.eup %6111  ;;  %6113 = vrsqrt.f32 %v7403_v51  ;;  %v5146_v19 = vor.u32 %v5918_v30, %v5145_v0  ;;  %v5932_v0 = vld [vmem:[#allocation8 + $0xa4] sm:$0xf0]  ;;  %vm1733_vm12 = vweird.f32 %v7403_v51 }
 0x291   :  { %v1738_v35 = vmul.f32 %v6112_v62, %v7392_v56  ;;  %2433 = vmatpush.bf16.msra.mxu2 %v5154_v6  ;;  %vm1744_vm8 = vweird.f32 %v6112_v62  ;;  %v5201_v6 = vld [vmem:[#allocation8 + $0xa0] sm:$0xf]  ;;  %v5958_v56 = vld [vmem:[#allocation8 + $0x174] sm:$0xf0] }
 0x292   :  { %vm1745_vm10 = vmor %vm1743_vm9, %vm1744_vm8  ;;  %v5202_v8 = vor.u32 %v5932_v0, %v5201_v6  ;;  %v1767_v6 = vperm.slane %v7072_v40, 1  ;;  %v5121_v0 = vld [vmem:[#allocation8] sm:$0xf] }
 0x293   :  { %v1739_v37 = vmul.f32 %v6112_v62, %v1738_v35  ;;  %v7411_v20 = vpop.f32.mrf.mxu2  ;;  %2482 = vmatpush.bf16.msra.mxu3 %v5218_v34 }
 0x294   :  { %v7413_v18 = vpop.f32.mrf.mxu3 }
 0x295   :  { %8952 = vst [vmem:[#allocation33_spill] sm:$0xff] %v7413_v18  ;;  %v1740_v26 = vmul.f32 0.5, %v1739_v37  ;;  %v1392_v25 = vpop.f32.mrf.mxu0  ;;  %2434 = vmatpush.bf16.msra.mxu2 %v5146_v19  ;;  %v5138_v18 = vor.u32 %v5916_v38, %v5137_v49  ;;  %v5974_v49 = vld [vmem:[#allocation8 + $0x1f4] sm:$0xf0] }
 0x296   :  { %v7415_v21 = vpop.eup %6113  ;;  %v1393_v39 = vadd.f32 %v1392_v25, %v7354_v57  ;;  %v1441_v36 = vpop.f32.mrf.mxu1 }
 0x297   :  { %v1741_v35 = vsub.f32 1.5, %v1740_v26  ;;  %v1728_v14 = vmul.f32 %v7415_v21, %v7403_v51  ;;  %v5129_v26 = vld [vmem:[#allocation8 + $0x10] sm:$0xf]  ;;  %2483 = vmatpush.bf16.msra.mxu3 %v5210_v54  ;;  %vm1734_vm11 = vweird.f32 %v7415_v21 }
 0x298   :  { %v7421_v37 = vadd.f32 %v1441_v36, %v1393_v39  ;;  %v5930_v39 = vld [vmem:[#allocation8 + $0x94] sm:$0xf0]  ;;  %v5130_v19 = vor.u32 %v5914_v60, %v5129_v26  ;;  %v5370_v60 = vor.u32 %v5974_v49, %v5369_v52  ;;  %vm1735_vm13 = vmor %vm1733_vm12, %vm1734_vm11  ;;  %v5928_v26 = vld [vmem:[#allocation8 + $0x84] sm:$0xf0] }
 0x299   :  { %v1742_v30 = vmul.f32 %v6112_v62, %v1741_v35  ;;  %v1729_v25 = vmul.f32 %v7415_v21, %v1728_v14  ;;  %2435 = vmatpush.bf16.msra.mxu2 %v5138_v18 }
 0x29a   :  { %8953 = vst [vmem:[#allocation34_spill] sm:$0xff] %v7421_v37  ;;  %2577 = vmatpush.bf16.msrb.mxu1 %v5370_v60  ;;  %v5956_v60 = vld [vmem:[#allocation8 + $0x164] sm:$0xf0] }
 0x29b   :  { %v1746_v23 = vsel %vm1745_vm10, %v6112_v62, %v1742_v30  ;;  %v1730_v11 = vmul.f32 0.5, %v1729_v25  ;;  %v1294_v34 = vpop.f32.mrf.mxu2  ;;  %v5306_v62 = vor.u32 %v5958_v56, %v5305_v31  ;;  %v5912_v30 = vld [vmem:[#allocation8 + $0x4] sm:$0xf0]  ;;  %2484 = vmatpush.bf16.msra.mxu3 %v5202_v8  ;;  %v5194_v25 = vor.u32 %v5930_v39, %v5193_v22 }
 0x29c   :  { %v1776_v36 = vmul.f32 %v1768_v12, %v1746_v23  ;;  %v1295_v37 = vadd.f32 %v1294_v34, %v7369_v53  ;;  %v1343_v35 = vpop.f32.mrf.mxu3 }
 0x29d   :  { %v1731_v14 = vsub.f32 1.5, %v1730_v11  ;;  %v7427_v38 = vpop.f32.mrf.mxu0  ;;  %2528 = vmatpush.bf16.msrb.mxu0 %v5306_v62  ;;  %2436 = vmatpush.bf16.msra.mxu2 %v5130_v19 }
 0x29e   :  { %v7429_v54 = vperm.slane %v1776_v36, 0  ;;  %v7432_v23 = vadd.f32 %v1343_v35, %v1295_v37  ;;  %v7434_v12 = vpop.f32.mrf.mxu1  ;;  %v1780_v31 = vmul.f32 %v1776_v36, %v7379_v63  ;;  %v5185_v37 = vld [vmem:[#allocation8 + $0x80] sm:$0xf]  ;;  %v5122_v35 = vor.u32 %v5912_v30, %v5121_v0 }
 0x29f   :  { %v1732_v11 = vmul.f32 %v7415_v21, %v1731_v14  ;;  %2485 = vmatpush.bf16.msra.mxu3 %v5194_v25  ;;  %v5186_v52 = vor.u32 %v5928_v26, %v5185_v37  ;;  %v5297_v25 = vld [vmem:[#allocation8 + $0x160] sm:$0xf] }
 0x2a0   :  { %v7441_v18 = vmul.f32 %v7429_v54, %v7346_v48  ;;  %v1787_v63 = vrot.slane %v1780_v31, 4  ;;  %v5361_v31 = vld [vmem:[#allocation8 + $0x1e0] sm:$0xf] }
 0x2a1   :  { %v1736_v34 = vsel %vm1735_vm13, %v7415_v21, %v1732_v11  ;;  %2437 = vmatpush.bf16.msra.mxu2 %v5122_v35  ;;  %v1802_v11 = vmul.f32 %v7429_v54, %v7079_v13  ;;  %v5298_v35 = vor.u32 %v5956_v60, %v5297_v25 }
 0x2a2   :  { %v1775_v51 = vmul.f32 %v1767_v6, %v1736_v34 }
 0x2a3   :  { %v7446_v8 = vpop.f32.mrf.mxu2  ;;  %2486 = vmatpush.bf16.msra.mxu3 %v5186_v52  ;;  %2529 = vmatpush.bf16.msrb.mxu0 %v5298_v35 }
 0x2a4   :  { %v1779_v22 = vmul.f32 %v1775_v51, %v7389_v59  ;;  %v7449_v48 = vperm.slane %v1775_v51, 0  ;;  %v7451_v39 = vpop.f32.mrf.mxu3 }
 0x2a5   :  { %v7453_v36 = vpop.f32.mrf.mxu0 }
 0x2a6   :  { %v1789_v21 = vsel %vm555_vm7, %v1779_v22, %v1787_v63  ;;  %v7458_v56 = vmul.f32 %v7449_v48, %v7361_v41  ;;  %v7460_v14 = vpop.f32.mrf.mxu1  ;;  %v1801_v30 = vmul.f32 %v7449_v48, %v7088_v58  ;;  %v1806_v41 = vmul.f32 %v7429_v54, %v7091_v46  ;;  %v5972_v58 = vld [vmem:[#allocation8 + $0x1e4] sm:$0xf0] }
 0x2a7   :  { %v1791_v19 = vrot.slane %v1789_v21, 6  ;;  %v1805_v34 = vmul.f32 %v7449_v48, %v7094_v29  ;;  %v5362_v13 = vor.u32 %v5972_v58, %v5361_v31  ;;  %v1385_v29 = vadd.f32 %v7372_v4, %v7354_v57 }
 0x2a8   :  { %v1287_v4 = vadd.f32 %v7384_v3, %v7369_v53  ;;  %v1813_v35 = vmul.f32 %v7449_v48, %v7110_v5  ;;  %v1810_v58 = vmul.f32 %v7429_v54, %v7097_v10  ;;  %v1833_v5 = vmul.f32 %v7449_v48, %v7268_v45 }
 0x2a9   :  { %v1795_v62 = vsub.f32 %v7072_v40, %v1791_v19  ;;  %2578 = vmatpush.bf16.msrb.mxu1 %v5362_v13  ;;  %v7504_v31 = vadd.f32 %v7374_v15, %v1385_v29  ;;  %v1814_v13 = vmul.f32 %v7429_v54, %v7107_v1  ;;  %v1837_v10 = vmul.f32 %v7449_v48, %v7276_v42  ;;  %v5289_v42 = vld [vmem:[#allocation8 + $0x150] sm:$0xf] }
 0x2aa   :  { %v7530_v1 = vmul.f32 %v7376_v47, %v7376_v47 }
 0x2ab   :  { %v1867_v59 = vperm.slane %v1795_v62, 2  ;;  %v1868_v49 = vperm.slane %v1795_v62, 6  ;;  %v7463_v6 = vpop.f32.mrf.mxu2  ;;  %8957 = vst [vmem:[#allocation38_spill] sm:$0xff] %v7504_v31 }
 0x2ac   :  { %v7465_v0 = vpop.f32.mrf.mxu3 }
 0x2ad   :  { %v7473_v37 = vperm.slane %v1867_v59, 2  ;;  %v7475_v40 = vperm.slane %v1868_v49, 2  ;;  %v7477_v26 = vpop.f32.mrf.mxu0 }
 0x2ae   :  { %v7481_v51 = vpop.f32.mrf.mxu1 }
 0x2af   :  { %v1879_v52 = vadd.f32 %v7473_v37, %v1801_v30  ;;  %v1883_v46 = vadd.f32 %v7473_v37, %v1805_v34  ;;  %v1880_v63 = vadd.f32 %v7475_v40, %v1802_v11  ;;  %v1884_v22 = vadd.f32 %v7475_v40, %v1806_v41 }
 0x2b0   :  { %v1809_v34 = vmul.f32 %v7449_v48, %v7104_v44  ;;  %v1891_v3 = vadd.f32 %v7473_v37, %v1813_v35  ;;  %v1892_v44 = vadd.f32 %v7475_v40, %v1814_v13  ;;  %v1911_v29 = vadd.f32 %v7473_v37, %v1833_v5 }
 0x2b1   :  { %v1943_v21 = vmax.f32 %v1879_v52, 0.0  ;;  %v1947_v19 = vmax.f32 %v1883_v46, 0.0  ;;  %v1944_v62 = vmax.f32 %v1880_v63, 0.0  ;;  %v1948_v59 = vmax.f32 %v1884_v22, 0.0 }
 0x2b2   :  { %v7518_v52 = vmul.f32 %v7367_v24, %v7367_v24  ;;  %v1887_v15 = vadd.f32 %v7473_v37, %v1809_v34  ;;  %v1888_v46 = vadd.f32 %v7475_v40, %v1810_v58  ;;  %v7534_v63 = vadd.f32 %v7504_v31, %v7367_v24 }
 0x2b3   :  { %v7489_v49 = vpop.f32.mrf.mxu2  ;;  %v7491_v25 = vpack.c.bf16 %v1947_v19, %v1943_v21  ;;  %v7493_v30 = vpack.c.bf16 %v1948_v59, %v1944_v62  ;;  %v7538_v22 = vmul.f32 %v7504_v31, %v7504_v31  ;;  %v7541_v21 = vadd.f32 %v7386_v7, %v1287_v4  ;;  %v5954_v62 = vld [vmem:[#allocation8 + $0x154] sm:$0xf0]  ;;  %v5353_v59 = vld [vmem:[#allocation8 + $0x1d0] sm:$0xf] }
 0x2b4   :  { %v7495_v60 = vpop.f32.mrf.mxu3  ;;  %v1915_v34 = vadd.f32 %v7473_v37, %v1837_v10  ;;  %v1834_v35 = vmul.f32 %v7429_v54, %v7235_v61  ;;  %v1838_v58 = vmul.f32 %v7429_v54, %v7251_v43  ;;  %v1951_v7 = vmax.f32 %v1887_v15, 0.0 }
 0x2b5   :  { %8954 = vst [vmem:[#allocation35_spill] sm:$0xff] %v7491_v25  ;;  %v7497_v11 = vpop.f32.mrf.mxu0  ;;  %2438 = vmatmul.bf16.vlgmr.msra.gmra.mxu2 %v7491_v25  ;;  %2487 = vmatmul.bf16.vlgmr.msra.gmra.mxu3 %v7493_v30  ;;  %v1955_v4 = vmax.f32 %v1891_v3, 0.0  ;;  %v5970_v25 = vld [vmem:[#allocation8 + $0x1d4] sm:$0xf0]  ;;  %v1841_v31 = vmul.f32 %v7449_v48, %v7300_v50  ;;  %v1952_v5 = vmax.f32 %v1888_v46, 0.0  ;;  %v1845_v15 = vmul.f32 %v7449_v48, %v7311_v17 }
 0x2b6   :  { %8955 = vst [vmem:[#allocation36_spill] sm:$0xff] %v7493_v30  ;;  %v7501_v41 = vpop.f32.mrf.mxu1  ;;  %v5290_v30 = vor.u32 %v5954_v62, %v5289_v42  ;;  %v5354_v10 = vor.u32 %v5970_v25, %v5353_v59  ;;  %v1979_v61 = vmax.f32 %v1915_v34, 0.0  ;;  %v1916_v43 = vadd.f32 %v7475_v40, %v1838_v58 }
 0x2b7   :  { %8956 = vst [vmem:[#allocation37_spill] sm:$0xff] %v7495_v60  ;;  %v1912_v60 = vadd.f32 %v7475_v40, %v1834_v35  ;;  %v7565_v3 = vmul.f32 %v7541_v21, %v7541_v21  ;;  %v1919_v50 = vadd.f32 %v7473_v37, %v1841_v31  ;;  %v1842_v25 = vmul.f32 %v7429_v54, %v7262_v2 }
 0x2b8   :  { %2530 = vmatpush.bf16.msrb.mxu0 %v5290_v30  ;;  %2579 = vmatpush.bf16.msrb.mxu1 %v5354_v10  ;;  %v1846_v30 = vmul.f32 %v7429_v54, %v7281_v9  ;;  %v1980_v42 = vmax.f32 %v1916_v43, 0.0  ;;  %v1923_v62 = vadd.f32 %v7473_v37, %v1845_v15  ;;  %v7577_v17 = vmul.f32 %v7397_v16, %v7397_v16  ;;  %v8966_v15 = vld [vmem:[#allocation20_spill] sm:$0xff] }
 0x2b9   :  { %v7579_v59 = vpack.c.bf16 %v1955_v4, %v1951_v7  ;;  %v1983_v31 = vmax.f32 %v1919_v50, 0.0  ;;  %v1390_v35 = vadd.f32 %v7401_v55, %v7354_v57  ;;  %v1292_v58 = vadd.f32 %v7411_v20, %v7369_v53 }
 0x2ba   :  { %v1987_v9 = vmax.f32 %v1923_v62, 0.0  ;;  %v1853_v4 = vmul.f32 %v7449_v48, %v7334_v32  ;;  %v1850_v20 = vmul.f32 %v7429_v54, %v7291_v33  ;;  %v1818_v32 = vmul.f32 %v7429_v54, %v8966_v15  ;;  %v8969_v33 = vld [vmem:[#allocation29_spill] sm:$0xff] }
 0x2bb   :  { %v7543_v19 = vpop.f32.mrf.mxu2  ;;  %8961 = vst [vmem:[#allocation42_spill] sm:$0xff] %v7579_v59 }
 0x2bc   :  { %8958 = vst [vmem:[#allocation39_spill] sm:$0xff] %v7543_v19  ;;  %v7545_v45 = vpop.f32.mrf.mxu3  ;;  %v1975_v19 = vmax.f32 %v1911_v29, 0.0  ;;  %v7603_v10 = vpack.c.bf16 %v1987_v9, %v1983_v31  ;;  %v1928_v62 = vadd.f32 %v7475_v40, %v1850_v20  ;;  %v1857_v31 = vmul.f32 %v7449_v48, %v8969_v33  ;;  %v8970_v9 = vld [vmem:[#allocation22_spill] sm:$0xff] }
 0x2bd   :  { %8959 = vst [vmem:[#allocation40_spill] sm:$0xff] %v7545_v45  ;;  %v7553_v13 = vpop.f32.mrf.mxu0  ;;  %v1956_v45 = vmax.f32 %v1892_v44, 0.0  ;;  %v1976_v44 = vmax.f32 %v1912_v60, 0.0  ;;  %v1924_v60 = vadd.f32 %v7475_v40, %v1846_v30 }
 0x2be   :  { %v7557_v24 = vpop.f32.mrf.mxu1  ;;  %v7572_v46 = vpack.c.bf16 %v1979_v61, %v1975_v19  ;;  %v1920_v19 = vadd.f32 %v7475_v40, %v1842_v25  ;;  %8965 = vst [vmem:[#allocation46_spill] sm:$0xff] %v7603_v10  ;;  %v1931_v25 = vadd.f32 %v7473_v37, %v1853_v4  ;;  %v5952_v10 = vld [vmem:[#allocation8 + $0x144] sm:$0xf0] }
 0x2bf   :  { %v7581_v29 = vpack.c.bf16 %v1956_v45, %v1952_v5  ;;  %v7585_v2 = vpack.c.bf16 %v1980_v42, %v1976_v44  ;;  %v1849_v45 = vmul.f32 %v7449_v48, %v7325_v27  ;;  %v1988_v61 = vmax.f32 %v1924_v60, 0.0  ;;  %v8968_v44 = vld [vmem:[#allocation27_spill] sm:$0xff]  ;;  %v8971_v60 = vld [vmem:[#allocation21_spill] sm:$0xff] }
 0x2c0   :  { %8960 = vst [vmem:[#allocation41_spill] sm:$0xff] %v7572_v46  ;;  %v1984_v55 = vmax.f32 %v1920_v19, 0.0  ;;  %v1817_v27 = vmul.f32 %v7449_v48, %v7120_v28  ;;  %v1854_v42 = vmul.f32 %v7429_v54, %v8968_v44  ;;  %v1821_v28 = vmul.f32 %v7449_v48, %v8970_v9 }
 0x2c1   :  { %8962 = vst [vmem:[#allocation43_spill] sm:$0xff] %v7581_v29  ;;  %v1927_v50 = vadd.f32 %v7473_v37, %v1849_v45  ;;  %v1822_v45 = vmul.f32 %v7429_v54, %v8971_v60  ;;  %v1995_v4 = vmax.f32 %v1931_v25, 0.0  ;;  %v1935_v44 = vadd.f32 %v7473_v37, %v1857_v31  ;;  %v8974_v60 = vld [vmem:[#allocation28_spill] sm:$0xff] }
 0x2c2   :  { %8963 = vst [vmem:[#allocation44_spill] sm:$0xff] %v7585_v2  ;;  %v7615_v30 = vpack.c.bf16 %v1988_v61, %v1984_v55  ;;  %v1895_v19 = vadd.f32 %v7473_v37, %v1817_v27  ;;  %v1932_v55 = vadd.f32 %v7475_v40, %v1854_v42  ;;  %v1992_v61 = vmax.f32 %v1928_v62, 0.0  ;;  %v8975_v62 = vld [vmem:[#allocation32_spill] sm:$0xff] }
 0x2c3   :  { %v7583_v34 = vpop.f32.mrf.mxu2  ;;  %v1991_v15 = vmax.f32 %v1927_v50, 0.0  ;;  %v1899_v20 = vadd.f32 %v7473_v37, %v1821_v28  ;;  %v1900_v33 = vadd.f32 %v7475_v40, %v1822_v45  ;;  %v1939_v9 = vadd.f32 %v7473_v37, %v7458_v56  ;;  %v8976_v28 = vld [vmem:[#allocation33_spill] sm:$0xff]  ;;  %v5281_v56 = vld [vmem:[#allocation8 + $0x140] sm:$0xf] }
 0x2c4   :  { %v7593_v7 = vpop.f32.mrf.mxu3  ;;  %8967 = vst [vmem:[#allocation20_spill] sm:$0xff] %v7615_v30  ;;  %v1996_v50 = vmax.f32 %v1932_v55, 0.0  ;;  %v1999_v25 = vmax.f32 %v1935_v44, 0.0  ;;  %v1858_v42 = vmul.f32 %v7429_v54, %v8974_v60  ;;  %v7641_v31 = vadd.f32 %v8975_v62, %v1390_v35  ;;  %v5968_v60 = vld [vmem:[#allocation8 + $0x1c4] sm:$0xf0] }
 0x2c5   :  { %8964 = vst [vmem:[#allocation45_spill] sm:$0xff] %v7593_v7  ;;  %v7599_v5 = vpop.f32.mrf.mxu0  ;;  %2443 = vmatmul.bf16.gmra.mxu2 %v7579_v59  ;;  %2492 = vmatmul.bf16.gmra.mxu3 %v7581_v29  ;;  %v1896_v29 = vadd.f32 %v7475_v40, %v1818_v32  ;;  %v7636_v59 = vpack.c.bf16 %v1995_v4, %v1991_v15  ;;  %v5345_v15 = vld [vmem:[#allocation8 + $0x1c0] sm:$0xf]  ;;  %v2003_v62 = vmax.f32 %v1939_v9, 0.0  ;;  %v1964_v7 = vmax.f32 %v1900_v33, 0.0 }
 0x2c6   :  { %v7607_v43 = vpop.f32.mrf.mxu1  ;;  %v7644_v30 = vadd.f32 %v8976_v28, %v1292_v58  ;;  %v1395_v32 = vadd.f32 %v7427_v38, %v7354_v57  ;;  %v1940_v4 = vadd.f32 %v7475_v40, %v7441_v18  ;;  %v5282_v44 = vor.u32 %v5952_v10, %v5281_v56  ;;  %v8979_v9 = vld [vmem:[#allocation31_spill] sm:$0xff]  ;;  %v8980_v56 = vld [vmem:[#allocation34_spill] sm:$0xff] }
 0x2c7   :  { %8973 = vst [vmem:[#allocation29_spill] sm:$0xff] %v7636_v59  ;;  %v7654_v35 = vpack.c.bf16 %v1996_v50, %v1992_v61  ;;  %v1936_v58 = vadd.f32 %v7475_v40, %v1858_v42  ;;  %v1959_v38 = vmax.f32 %v1895_v19, 0.0  ;;  %v1963_v59 = vmax.f32 %v1899_v20, 0.0 }
 0x2c8   :  { %v5346_v2 = vor.u32 %v5968_v60, %v5345_v15  ;;  %v2004_v46 = vmax.f32 %v1940_v4, 0.0  ;;  %2531 = vmatpush.bf16.msrb.mxu0 %v5282_v44  ;;  %v1686_v10 = vadd.f32 %v7538_v22, %v7518_v52  ;;  %v1513_v61 = vadd.f32 %v7541_v21, %v7376_v47 }
 0x2c9   :  { %8978 = vst [vmem:[#allocation21_spill] sm:$0xff] %v7654_v35  ;;  %v2000_v18 = vmax.f32 %v1936_v58, 0.0  ;;  %v1569_v50 = vmul.f32 %v8979_v9, %v8979_v9  ;;  %v1574_v19 = vmul.f32 %v7641_v31, %v7641_v31  ;;  %v1535_v20 = vadd.f32 %v7534_v63, %v7397_v16 }
 0x2ca   :  { %2580 = vmatpush.bf16.msrb.mxu1 %v5346_v2  ;;  %v1297_v33 = vadd.f32 %v7446_v8, %v7369_v53  ;;  %v1687_v22 = vadd.f32 %v1686_v10, %v7577_v17  ;;  %v1573_v42 = vmul.f32 %v7644_v30, %v7644_v30  ;;  %v1398_v2 = vadd.f32 %v7453_v36, %v7354_v57  ;;  %v8981_v10 = vld [vmem:[#allocation24_spill] sm:$0xff] }
 0x2cb   :  { %v7634_v27 = vpop.f32.mrf.mxu2  ;;  %v7675_v52 = vpack.c.bf16 %v2004_v46, %v2000_v18  ;;  %v7686_v63 = vadd.f32 %v7434_v12, %v1395_v32  ;;  %v7690_v8 = vpack.c.bf16 %v1963_v59, %v1959_v38  ;;  %v1536_v15 = vadd.f32 %v1535_v20, %v7641_v31 }
 0x2cc   :  { %8972 = vst [vmem:[#allocation27_spill] sm:$0xff] %v7634_v27  ;;  %v7648_v45 = vpop.f32.mrf.mxu3  ;;  %v7659_v27 = vpack.c.bf16 %v2003_v62, %v1999_v25  ;;  %v1514_v25 = vadd.f32 %v1513_v61, %v8979_v9  ;;  %v1688_v4 = vadd.f32 %v1687_v22, %v1574_v19  ;;  %v1300_v44 = vadd.f32 %v7463_v6, %v7369_v53  ;;  %v8983_v19 = vld [vmem:[#allocation25_spill] sm:$0xff] }
 0x2cd   :  { %8977 = vst [vmem:[#allocation22_spill] sm:$0xff] %v7648_v45  ;;  %v7652_v55 = vpop.f32.mrf.mxu0  ;;  %v1960_v45 = vmax.f32 %v1896_v29, 0.0  ;;  %v1665_v29 = vadd.f32 %v7565_v3, %v7530_v1  ;;  %v1578_v1 = vmul.f32 %v8980_v56, %v8980_v56  ;;  %v7701_v12 = vadd.f32 %v7451_v39, %v1297_v33 }
 0x2ce   :  { %v7657_v28 = vpop.f32.mrf.mxu1  ;;  %v1515_v60 = vadd.f32 %v1514_v25, %v7644_v30  ;;  %v1400_v59 = vadd.f32 %v7477_v26, %v7354_v57  ;;  %v7710_v6 = vadd.f32 %v7460_v14, %v1398_v2  ;;  %v1537_v39 = vadd.f32 %v1536_v15, %v8980_v56 }
 0x2cf   :  { %v7692_v46 = vpack.c.bf16 %v1964_v7, %v1960_v45  ;;  %v1666_v17 = vadd.f32 %v1665_v29, %v1569_v50  ;;  %v1577_v45 = vmul.f32 %v7432_v23, %v7432_v23  ;;  %v1689_v58 = vadd.f32 %v1688_v4, %v1578_v1  ;;  %v8982_v50 = vld [vmem:[#allocation23_spill] sm:$0xff] }
 0x2d0   :  { %v1516_v38 = vadd.f32 %v1515_v60, %v7432_v23  ;;  %v1582_v26 = vmul.f32 %v7686_v63, %v7686_v63  ;;  %v7719_v18 = vadd.f32 %v7465_v0, %v1300_v44  ;;  %v1825_v61 = vmul.f32 %v7449_v48, %v8981_v10  ;;  %v8985_v0 = vld [vmem:[#allocation26_spill] sm:$0xff] }
 0x2d1   :  { %v1667_v7 = vadd.f32 %v1666_v17, %v1573_v42  ;;  %v1826_v14 = vmul.f32 %v7429_v54, %v8982_v50  ;;  %v1830_v29 = vmul.f32 %v7429_v54, %v8983_v19  ;;  %v1581_v20 = vmul.f32 %v7701_v12, %v7701_v12  ;;  %v8987_v50 = vld [vmem:[#allocation39_spill] sm:$0xff] }
 0x2d2   :  { %v7730_v33 = vadd.f32 %v7481_v51, %v1400_v59  ;;  %v1403_v22 = vadd.f32 %v7497_v11, %v7354_v57  ;;  %v1829_v25 = vmul.f32 %v7449_v48, %v8985_v0  ;;  %v1586_v2 = vmul.f32 %v7710_v6, %v7710_v6 }
 0x2d3   :  { %v7688_v3 = vpop.f32.mrf.mxu2  ;;  %v1668_v42 = vadd.f32 %v1667_v7, %v1577_v45  ;;  %v1302_v1 = vadd.f32 %v7489_v49, %v7369_v53  ;;  %v1903_v54 = vadd.f32 %v7473_v37, %v1825_v61  ;;  %v1538_v17 = vadd.f32 %v1537_v39, %v7686_v63 }
 0x2d4   :  { %v7697_v36 = vpop.f32.mrf.mxu3  ;;  %8984 = vst [vmem:[#allocation28_spill] sm:$0xff] %v7730_v33  ;;  %v1907_v51 = vadd.f32 %v7473_v37, %v1829_v25  ;;  %v1904_v4 = vadd.f32 %v7475_v40, %v1826_v14  ;;  %v1908_v11 = vadd.f32 %v7475_v40, %v1830_v29  ;;  %v1690_v44 = vadd.f32 %v1689_v58, %v1582_v26 }
 0x2d5   :  { %v1412_v32 = vpop.f32.mrf.mxu0  ;;  %2448 = vmatmul.bf16.gmra.mxu2 %v7690_v8  ;;  %2497 = vmatmul.bf16.gmra.mxu3 %v7692_v46  ;;  %v1517_v48 = vadd.f32 %v1516_v38, %v7701_v12  ;;  %v1585_v60 = vmul.f32 %v7719_v18, %v7719_v18  ;;  %v1405_v49 = vadd.f32 %v7553_v13, %v7354_v57  ;;  %v8986_v38 = vld [vmem:[#allocation37_spill] sm:$0xff]  ;;  %v1967_v61 = vmax.f32 %v1903_v54, 0.0 }
 0x2d6   :  { %v7712_v62 = vpop.f32.mrf.mxu1  ;;  %v1669_v7 = vadd.f32 %v1668_v42, %v1581_v20  ;;  %v1539_v45 = vadd.f32 %v1538_v17, %v7710_v6  ;;  %v1590_v37 = vmul.f32 %v7730_v33, %v7730_v33  ;;  %v7756_v39 = vadd.f32 %v7501_v41, %v1403_v22 }
 0x2d7   :  { %v1691_v58 = vadd.f32 %v1690_v44, %v1586_v2  ;;  %v7759_v26 = vadd.f32 %v8986_v38, %v1302_v1  ;;  %v1408_v10 = vadd.f32 %v7599_v5, %v7354_v57  ;;  %v1305_v14 = vadd.f32 %v8987_v50, %v7369_v53 }
 0x2d8   :  { %v1971_v19 = vmax.f32 %v1907_v51, 0.0  ;;  %v1968_v29 = vmax.f32 %v1904_v4, 0.0  ;;  %v1972_v20 = vmax.f32 %v1908_v11, 0.0  ;;  %v1518_v0 = vadd.f32 %v1517_v48, %v7719_v18  ;;  %v8989_v11 = vld [vmem:[#allocation27_spill] sm:$0xff] }
 0x2d9   :  { %v1670_v41 = vadd.f32 %v1669_v7, %v1585_v60  ;;  %v7767_v22 = vadd.f32 %v7557_v24, %v1405_v49  ;;  %v1410_v25 = vadd.f32 %v7652_v55, %v7354_v57  ;;  %v1540_v42 = vadd.f32 %v1539_v45, %v7730_v33  ;;  %v8988_v55 = vld [vmem:[#allocation40_spill] sm:$0xff]  ;;  %v7909_v33 = vld [vmem:[#allocation11 + $0x10] sm:$0x77] }
 0x2da   :  { %v1692_v5 = vadd.f32 %v1691_v58, %v1590_v37  ;;  %v1594_v2 = vmul.f32 %v7756_v39, %v7756_v39  ;;  %v1307_v1 = vadd.f32 %v7583_v34, %v7369_v53  ;;  %v1519_v54 = vadd.f32 %v1518_v0, %v7759_v26  ;;  %v8992_v58 = vld [vmem:[#allocation45_spill] sm:$0xff] }
 0x2db   :  { %v1314_v15 = vpop.f32.mrf.mxu2  ;;  %v1589_v17 = vmul.f32 %v7759_v26, %v7759_v26  ;;  %v7780_v24 = vadd.f32 %v7607_v43, %v1408_v10  ;;  %v1413_v51 = vadd.f32 %v1412_v32, %v7354_v57  ;;  %v7784_v4 = vadd.f32 %v8988_v55, %v1305_v14 }
 0x2dc   :  { %v7750_v59 = vpop.f32.mrf.mxu3  ;;  %v1310_v44 = vadd.f32 %v8989_v11, %v7369_v53  ;;  %v7788_v60 = vpack.c.bf16 %v1971_v19, %v1967_v61  ;;  %v7790_v34 = vpack.c.bf16 %v1972_v20, %v1968_v29  ;;  %v1541_v49 = vadd.f32 %v1540_v42, %v7756_v39  ;;  %v8993_v20 = vld [vmem:[#allocation22_spill] sm:$0xff] }
 0x2dd   :  { %v1414_v40 = vpop.f32.mrf.mxu0  ;;  %v1598_v7 = vmul.f32 %v7767_v22, %v7767_v22  ;;  %v7796_v43 = vadd.f32 %v7657_v28, %v1410_v25  ;;  %v1693_v37 = vadd.f32 %v1692_v5, %v1594_v2  ;;  %v7800_v38 = vadd.f32 %v8992_v58, %v1307_v1 }
 0x2de   :  { %v1463_v13 = vpop.f32.mrf.mxu1  ;;  %8990 = vst [vmem:[#allocation32_spill] sm:$0xff] %v7788_v60  ;;  %v1415_v32 = vadd.f32 %v1414_v40, %v7354_v57  ;;  %v1312_v10 = vadd.f32 %v7688_v3, %v7369_v53  ;;  %v1542_v50 = vadd.f32 %v1541_v49, %v7767_v22  ;;  %v1602_v28 = vmul.f32 %v7780_v24, %v7780_v24 }
 0x2df   :  { %8991 = vst [vmem:[#allocation33_spill] sm:$0xff] %v7790_v34  ;;  %v7810_v40 = vadd.f32 %v7712_v62, %v1413_v51  ;;  %v1671_v29 = vadd.f32 %v1670_v41, %v1589_v17  ;;  %v1593_v3 = vmul.f32 %v7784_v4, %v7784_v4  ;;  %v7816_v0 = vadd.f32 %v8993_v20, %v1310_v44 }
 0x2e0   :  { %v1315_v25 = vadd.f32 %v1314_v15, %v7369_v53  ;;  %v1694_v42 = vadd.f32 %v1693_v37, %v1598_v7  ;;  %v1543_v5 = vadd.f32 %v1542_v50, %v7780_v24  ;;  %v1606_v2 = vmul.f32 %v7796_v43, %v7796_v43 }
 0x2e1   :  { %v7822_v62 = vadd.f32 %v1463_v13, %v1415_v32  ;;  %v1520_v1 = vadd.f32 %v1519_v54, %v7784_v4  ;;  %v1597_v41 = vmul.f32 %v7800_v38, %v7800_v38  ;;  %v7828_v17 = vadd.f32 %v7697_v36, %v1312_v10 }
 0x2e2   :  { %v1695_v55 = vadd.f32 %v1694_v42, %v1602_v28  ;;  %v1544_v15 = vadd.f32 %v1543_v5, %v7796_v43  ;;  %v1610_v11 = vmul.f32 %v7810_v40, %v7810_v40  ;;  %v1672_v13 = vadd.f32 %v1671_v29, %v1593_v3 }
 0x2e3   :  { %v1316_v48 = vpop.f32.mrf.mxu2  ;;  %v1521_v49 = vadd.f32 %v1520_v1, %v7800_v38  ;;  %v1601_v54 = vmul.f32 %v7816_v0, %v7816_v0  ;;  %v7840_v7 = vadd.f32 %v7750_v59, %v1315_v25  ;;  %v1614_v37 = vmul.f32 %v7822_v62, %v7822_v62 }
 0x2e4   :  { %v1365_v45 = vpop.f32.mrf.mxu3  ;;  %v1317_v51 = vadd.f32 %v1316_v48, %v7369_v53  ;;  %v1696_v32 = vadd.f32 %v1695_v55, %v1606_v2  ;;  %v1545_v48 = vadd.f32 %v1544_v15, %v7810_v40  ;;  %v1605_v28 = vmul.f32 %v7828_v17, %v7828_v17 }
 0x2e5   :  { %v1417_v61 = vpop.f32.mrf.mxu0  ;;  %2453 = vmatmul.bf16.gmra.mxu2 %v7788_v60  ;;  %2502 = vmatmul.bf16.gmra.mxu3 %v7790_v34  ;;  %v1522_v50 = vadd.f32 %v1521_v49, %v7816_v0  ;;  %v1609_v42 = vmul.f32 %v7840_v7, %v7840_v7  ;;  %v5235_v34 = vld [vmem:[#allocation8 + $0xe8] sm:$0xf0] }
 0x2e6   :  { %v1418_v14 = vadd.f32 %v1417_v61, %v7354_v57  ;;  %v1466_v19 = vpop.f32.mrf.mxu1  ;;  %v1673_v61 = vadd.f32 %v1672_v13, %v1597_v41  ;;  %v1546_v29 = vadd.f32 %v1545_v48, %v7822_v62 }
 0x2e7   :  { %v1523_v1 = vadd.f32 %v1522_v50, %v7828_v17 }
 0x2e8   :  { %v7834_v44 = vadd.f32 %v1466_v19, %v1418_v14  ;;  %v7849_v14 = vadd.f32 %v1365_v45, %v1317_v51  ;;  %v1697_v19 = vadd.f32 %v1696_v32, %v1610_v11  ;;  %v1674_v25 = vadd.f32 %v1673_v61, %v1601_v54 }
 0x2ea   :  { %v1618_v3 = vmul.f32 %v7834_v44, %v7834_v44  ;;  %v1698_v45 = vadd.f32 %v1697_v19, %v1614_v37  ;;  %v1547_v41 = vadd.f32 %v1546_v29, %v7834_v44  ;;  %v1675_v55 = vadd.f32 %v1674_v25, %v1605_v28  ;;  %v8994_v28 = vld [vmem:[#allocation41_spill] sm:$0xff] }
 0x2eb   :  { %v1319_v36 = vpop.f32.mrf.mxu2  ;;  %v1613_v15 = vmul.f32 %v7849_v14, %v7849_v14 }
 0x2ec   :  { %v1320_v58 = vadd.f32 %v1319_v36, %v7369_v53  ;;  %v1368_v10 = vpop.f32.mrf.mxu3  ;;  %v1699_v11 = vadd.f32 %v1698_v45, %v1618_v3  ;;  %v1676_v54 = vadd.f32 %v1675_v55, %v1609_v42 }
 0x2ed   :  { %v1419_v59 = vpop.f32.mrf.mxu0 }
 0x2ee   :  { %v1420_v20 = vadd.f32 %v1419_v59, %v7354_v57  ;;  %v7857_v5 = vadd.f32 %v1368_v10, %v1320_v58  ;;  %v1468_v2 = vpop.f32.mrf.mxu1  ;;  %v1524_v57 = vadd.f32 %v1523_v1, %v7840_v7  ;;  %v1677_v61 = vadd.f32 %v1676_v54, %v1613_v15  ;;  %v8995_v59 = vld [vmem:[#allocation44_spill] sm:$0xff] }
 0x2f0   :  { %v7861_v51 = vadd.f32 %v1468_v2, %v1420_v20  ;;  %v1617_v36 = vmul.f32 %v7857_v5, %v7857_v5  ;;  %v1525_v48 = vadd.f32 %v1524_v57, %v7849_v14 }
 0x2f2   :  { %v1548_v13 = vadd.f32 %v1547_v41, %v7861_v51  ;;  %v1622_v49 = vmul.f32 %v7861_v51, %v7861_v51  ;;  %v1526_v19 = vadd.f32 %v1525_v48, %v7857_v5  ;;  %v1678_v25 = vadd.f32 %v1677_v61, %v1617_v36  ;;  %v8996_v36 = vld [vmem:[#allocation19_spill] sm:$0xff] }
 0x2f3   :  { %v1321_v32 = vpop.f32.mrf.mxu2 }
 0x2f4   :  { %v1549_v37 = vrot.slane %v1548_v13, 4  ;;  %v1700_v58 = vadd.f32 %v1699_v11, %v1622_v49  ;;  %v1322_v10 = vadd.f32 %v1321_v32, %v7369_v53  ;;  %v1370_v50 = vpop.f32.mrf.mxu3 }
 0x2f5   :  { %2458 = vmatmul.bf16.gmra.mxu2 %v8994_v28  ;;  %2507 = vmatmul.bf16.gmra.mxu3 %v8995_v59  ;;  %v5923_v59 = vld [vmem:[#allocation8 + $0x64] sm:$0xf] }
 0x2f6   :  { %v1550_v29 = vadd.f32 %v1549_v37, %v1548_v13  ;;  %v1701_v3 = vrot.slane %v1700_v58, 4  ;;  %v7876_v20 = vadd.f32 %v1370_v50, %v1322_v10  ;;  %v5939_v28 = vld [vmem:[#allocation8 + $0xe4] sm:$0xf] }
 0x2f8   :  { %v1551_v42 = vrot.slane %v1550_v29, 2  ;;  %v1702_v2 = vadd.f32 %v1701_v3, %v1700_v58  ;;  %v1527_v1 = vadd.f32 %v1526_v19, %v7876_v20  ;;  %v1621_v53 = vmul.f32 %v7876_v20, %v7876_v20 }
 0x2fa   :  { %v1552_v45 = vadd.f32 %v1551_v42, %v1550_v29  ;;  %v1703_v41 = vrot.slane %v1702_v2, 2  ;;  %v1528_v55 = vrot.slane %v1527_v1, 4  ;;  %v1679_v15 = vadd.f32 %v1678_v25, %v1621_v53  ;;  %v8997_v53 = vld [vmem:[#allocation46_spill] sm:$0xff] }
 0x2fc   :  { %v1553_v57 = vrot.slane %v1552_v45, 1  ;;  %v1704_v11 = vadd.f32 %v1703_v41, %v1702_v2  ;;  %v1529_v49 = vadd.f32 %v1528_v55, %v1527_v1  ;;  %v1680_v54 = vrot.slane %v1679_v15, 4 }
 0x2fe   :  { %v1554_v13 = vadd.f32 %v1553_v57, %v1552_v45  ;;  %v1705_v32 = vrot.slane %v1704_v11, 1  ;;  %v1530_v48 = vrot.slane %v1529_v49, 2  ;;  %v1681_v37 = vadd.f32 %v1680_v54, %v1679_v15  ;;  %v8998_v45 = vld [vmem:[#allocation20_spill] sm:$0xff] }
 0x300   :  { %v7882_v10 = vmul.f32 %v1554_v13, %v8996_v36  ;;  %v1706_v58 = vadd.f32 %v1705_v32, %v1704_v11  ;;  %v1531_v61 = vadd.f32 %v1530_v48, %v1529_v49  ;;  %v1682_v50 = vrot.slane %v1681_v37, 2  ;;  %v5273_v32 = vld [vmem:[#allocation8 + $0x130] sm:$0xf]  ;;  %v5950_v48 = vld [vmem:[#allocation8 + $0x134] sm:$0xf0] }
 0x302   :  { %v1710_v19 = vmul.f32 %v1706_v58, %v8996_v36  ;;  %v1714_v29 = vmul.f32 %v7882_v10, %v7882_v10  ;;  %v1532_v3 = vrot.slane %v1531_v61, 1  ;;  %v1683_v25 = vadd.f32 %v1682_v50, %v1681_v37  ;;  %v5337_v37 = vld [vmem:[#allocation8 + $0x1b0] sm:$0xf]  ;;  %v5966_v50 = vld [vmem:[#allocation8 + $0x1b4] sm:$0xf0] }
 0x304   :  { %v1718_v42 = vsub.f32 %v1710_v19, %v1714_v29  ;;  %v1533_v2 = vadd.f32 %v1532_v3, %v1531_v61  ;;  %v1684_v1 = vrot.slane %v1683_v25, 1  ;;  %v5274_v61 = vor.u32 %v5950_v48, %v5273_v32  ;;  %v5265_v19 = vld [vmem:[#allocation8 + $0x120] sm:$0xf]  ;;  %v5948_v3 = vld [vmem:[#allocation8 + $0x124] sm:$0xf0] }
 0x305   :  { %2463 = vmatmul.bf16.gmra.mxu2 %v8997_v53  ;;  %2512 = vmatmul.bf16.gmra.mxu3 %v8998_v45  ;;  %v5338_v29 = vor.u32 %v5966_v50, %v5337_v37  ;;  %v5941_v32 = vld [vmem:[#allocation8 + $0xf4] sm:$0xf]  ;;  %v5243_v48 = vld [vmem:[#allocation8 + $0xf8] sm:$0xf0]  ;;  %v5321_v50 = vld [vmem:[#allocation8 + $0x190] sm:$0xf] }
 0x306   :  { %v1722_v41 = vmax.f32 %v1718_v42, 0.0  ;;  %v7890_v55 = vmul.f32 %v1533_v2, %v8996_v36  ;;  %v1685_v15 = vadd.f32 %v1684_v1, %v1683_v25  ;;  %v5329_v25 = vld [vmem:[#allocation8 + $0x1a0] sm:$0xf]  ;;  %v5964_v42 = vld [vmem:[#allocation8 + $0x1a4] sm:$0xf0]  ;;  %2532 = vmatpush.bf16.msrb.mxu0 %v5274_v61  ;;  %v5266_v1 = vor.u32 %v5948_v3, %v5265_v19 }
 0x307   :  { %2581 = vmatpush.bf16.msrb.mxu1 %v5338_v29  ;;  %v5246_v53 = vor.u32 %v5941_v32, %v5243_v48  ;;  %v5171_v61 = vld [vmem:[#allocation8 + $0x68] sm:$0xf0]  ;;  %v5944_v32 = vld [vmem:[#allocation8 + $0x104] sm:$0xf0] }
 0x308   :  { %v7892_v57 = vadd.f32 1e-05, %v1722_v41  ;;  %v1709_v11 = vmul.f32 %v1685_v15, %v8996_v36  ;;  %v1713_v49 = vmul.f32 %v7890_v55, %v7890_v55  ;;  %v5257_v41 = vld [vmem:[#allocation8 + $0x110] sm:$0xf]  ;;  %v5946_v15 = vld [vmem:[#allocation8 + $0x114] sm:$0xf0]  ;;  %v5174_v3 = vor.u32 %v5923_v59, %v5171_v61 }
 0x309   :  { %v5962_v36 = vld [vmem:[#allocation8 + $0x194] sm:$0xf0]  ;;  %v5258_v19 = vor.u32 %v5946_v15, %v5257_v41  ;;  %v8999_v29 = vld [vmem:[#allocation29_spill] sm:$0xff]  ;;  %2675 = vmatpush.bf16.msrb.mxu3 %v5246_v53  ;;  %v5249_v41 = vld [vmem:[#allocation8 + $0x100] sm:$0xf] }
 0x30a   :  { %6115 = vrsqrt.f32 %v7892_v57  ;;  %v1717_v54 = vsub.f32 %v1709_v11, %v1713_v49  ;;  %v5925_v11 = vld [vmem:[#allocation8 + $0x74] sm:$0xf]  ;;  %2533 = vmatpush.bf16.msrb.mxu0 %v5266_v1  ;;  %vm1763_vm15 = vweird.f32 %v7892_v57  ;;  %v5250_v61 = vor.u32 %v5944_v32, %v5249_v41  ;;  %v5147_v32 = vld [vmem:[#allocation8 + $0x38] sm:$0xf0] }
 0x30b   :  { %v5937_v15 = vld [vmem:[#allocation8 + $0xd4] sm:$0xf] }
 0x30c   :  { %v1721_v13 = vmax.f32 %v1717_v54, 0.0  ;;  %v5330_v54 = vor.u32 %v5964_v42, %v5329_v25  ;;  %v5322_v25 = vor.u32 %v5962_v36, %v5321_v50  ;;  %v5921_v42 = vld [vmem:[#allocation8 + $0x54] sm:$0xf]  ;;  %v5155_v50 = vld [vmem:[#allocation8 + $0x48] sm:$0xf0] }
 0x30d   :  { %v5917_v41 = vld [vmem:[#allocation8 + $0x34] sm:$0xf] }
 0x30e   :  { %v7898_v58 = vadd.f32 1e-05, %v1721_v13  ;;  %v5179_v13 = vld [vmem:[#allocation8 + $0x78] sm:$0xf0]  ;;  %2582 = vmatpush.bf16.msrb.mxu1 %v5330_v54  ;;  %2534 = vmatpush.bf16.msrb.mxu0 %v5258_v19 }
 0x30f   :  { %v5182_v37 = vor.u32 %v5925_v11, %v5179_v13  ;;  %v5163_v11 = vld [vmem:[#allocation8 + $0x58] sm:$0xf0] }
 0x310   :  { %v7900_v2 = vpop.eup %6115  ;;  %6117 = vrsqrt.f32 %v7898_v58  ;;  %v5166_v36 = vor.u32 %v5921_v42, %v5163_v11  ;;  %v5227_v54 = vld [vmem:[#allocation8 + $0xd8] sm:$0xf0]  ;;  %vm1753_vm2 = vweird.f32 %v7898_v58 }
 0x311   :  { %v1758_v49 = vmul.f32 %v7900_v2, %v7892_v57  ;;  %2626 = vmatpush.bf16.msrb.mxu2 %v5182_v37  ;;  %vm1764_vm14 = vweird.f32 %v7900_v2  ;;  %v5919_v37 = vld [vmem:[#allocation8 + $0x44] sm:$0xf] }
 0x312   :  { %2583 = vmatpush.bf16.msrb.mxu1 %v5322_v25  ;;  %vm1765_vm0 = vmor %vm1763_vm15, %vm1764_vm14  ;;  %v5158_v57 = vor.u32 %v5919_v37, %v5155_v50  ;;  %v5935_v25 = vld [vmem:[#allocation8 + $0xc4] sm:$0xf]  ;;  %2535 = vmatpush.bf16.msrb.mxu0 %v5250_v61  ;;  %v5211_v37 = vld [vmem:[#allocation8 + $0xb8] sm:$0xf0] }
 0x313   :  { %v1759_v45 = vmul.f32 %v7900_v2, %v1758_v49  ;;  %v1770_v49 = vperm.slane %v7909_v33, 5  ;;  %v5307_v50 = vld [vmem:[#allocation8 + $0x178] sm:$0xf0]  ;;  %v5973_v61 = vld [vmem:[#allocation8 + $0x1f4] sm:$0xf] }
 0x315   :  { %v1760_v60 = vmul.f32 0.5, %v1759_v45  ;;  %2468 = vmatmul.bf16.gmra.mxu2 %v8999_v29  ;;  %2517 = vmatmul.bf16.gmra.mxu3 %v7654_v35  ;;  %v5238_v45 = vor.u32 %v5939_v28, %v5235_v34  ;;  %v5313_v34 = vld [vmem:[#allocation8 + $0x180] sm:$0xf]  ;;  %v5960_v28 = vld [vmem:[#allocation8 + $0x184] sm:$0xf0] }
 0x316   :  { %v7907_v13 = vpop.eup %6117  ;;  %2627 = vmatpush.bf16.msrb.mxu2 %v5174_v3  ;;  %v5230_v3 = vor.u32 %v5937_v15, %v5227_v54  ;;  %v5314_v42 = vor.u32 %v5960_v28, %v5313_v34  ;;  %v5933_v15 = vld [vmem:[#allocation8 + $0xb4] sm:$0xf]  ;;  %v5915_v28 = vld [vmem:[#allocation8 + $0x24] sm:$0xf] }
 0x317   :  { %v1761_v1 = vsub.f32 1.5, %v1760_v60  ;;  %v1748_v59 = vmul.f32 %v7907_v13, %v7898_v58  ;;  %2676 = vmatpush.bf16.msrb.mxu3 %v5238_v45  ;;  %vm1754_vm1 = vweird.f32 %v7907_v13  ;;  %v5957_v54 = vld [vmem:[#allocation8 + $0x174] sm:$0xf]  ;;  %v5150_v58 = vor.u32 %v5917_v41, %v5147_v32  ;;  %v5203_v41 = vld [vmem:[#allocation8 + $0xa8] sm:$0xf0] }
 0x318   :  { %2584 = vmatpush.bf16.msrb.mxu1 %v5314_v42  ;;  %vm7928_vm3 = vmor %vm1753_vm2, %vm1754_vm1  ;;  %v5131_v32 = vld [vmem:[#allocation8 + $0x18] sm:$0xf0] }
 0x319   :  { %v1762_v48 = vmul.f32 %v7900_v2, %v1761_v1  ;;  %v1749_v60 = vmul.f32 %v7907_v13, %v1748_v59  ;;  %v5219_v1 = vld [vmem:[#allocation8 + $0xc8] sm:$0xf0] }
 0x31a   :  { %2628 = vmatpush.bf16.msrb.mxu2 %v5166_v36  ;;  %v5222_v36 = vor.u32 %v5935_v25, %v5219_v1 }
 0x31b   :  { %v1766_v53 = vsel %vm1765_vm0, %v7900_v2, %v1762_v48  ;;  %v1750_v19 = vmul.f32 0.5, %v1749_v60  ;;  %v1769_v2 = vperm.slane %v7909_v33, 1  ;;  %2677 = vmatpush.bf16.msrb.mxu3 %v5230_v3  ;;  %v5371_v3 = vld [vmem:[#allocation8 + $0x1f8] sm:$0xf0] }
 0x31c   :  { %v1778_v11 = vmul.f32 %v1770_v49, %v1766_v53  ;;  %v5139_v53 = vld [vmem:[#allocation8 + $0x28] sm:$0xf0]  ;;  %v5374_v25 = vor.u32 %v5973_v61, %v5371_v3  ;;  %v5195_v61 = vld [vmem:[#allocation8 + $0x98] sm:$0xf0] }
 0x31d   :  { %v1751_v59 = vsub.f32 1.5, %v1750_v19  ;;  %v5310_v19 = vor.u32 %v5957_v54, %v5307_v50  ;;  %v5142_v1 = vor.u32 %v5915_v28, %v5139_v53  ;;  %v5299_v49 = vld [vmem:[#allocation8 + $0x168] sm:$0xf0]  ;;  %v5929_v50 = vld [vmem:[#allocation8 + $0x94] sm:$0xf] }
 0x31e   :  { %v7923_v35 = vperm.slane %v1778_v11, 0  ;;  %v1782_v48 = vmul.f32 %v1778_v11, %v7882_v10  ;;  %2629 = vmatpush.bf16.msrb.mxu2 %v5158_v57  ;;  %v5214_v10 = vor.u32 %v5933_v15, %v5211_v37  ;;  %2773 = vmatpush.bf16.msra.mxu1 %v5374_v25  ;;  %v5911_v53 = vld [vmem:[#allocation8 + $0x4] sm:$0xf] }
 0x31f   :  { %v1752_v45 = vmul.f32 %v7907_v13, %v1751_v59  ;;  %2678 = vmatpush.bf16.msrb.mxu3 %v5222_v36  ;;  %2724 = vmatpush.bf16.msra.mxu0 %v5310_v19  ;;  %v5931_v59 = vld [vmem:[#allocation8 + $0xa4] sm:$0xf] }
 0x320   :  { %v7935_v60 = vmul.f32 %v7923_v35, %v7861_v51  ;;  %v1788_v51 = vrot.slane %v1782_v48, 4  ;;  %v5971_v36 = vld [vmem:[#allocation8 + $0x1e4] sm:$0xf]  ;;  %v5206_v54 = vor.u32 %v5931_v59, %v5203_v41  ;;  %v9003_v59 = vld [vmem:[#allocation38_spill] sm:$0xff] }
 0x321   :  { %v1756_v34 = vsel %vm7928_vm3, %v7907_v13, %v1752_v45  ;;  %v5913_v13 = vld [vmem:[#allocation8 + $0x14] sm:$0xf]  ;;  %v5927_v25 = vld [vmem:[#allocation8 + $0x84] sm:$0xf]  ;;  %v1808_v41 = vmul.f32 %v7923_v35, %v9003_v59  ;;  %v5355_v59 = vld [vmem:[#allocation8 + $0x1d8] sm:$0xf0] }
 0x322   :  { %v1777_v42 = vmul.f32 %v1769_v2, %v1756_v34  ;;  %2630 = vmatpush.bf16.msrb.mxu2 %v5150_v58  ;;  %v5363_v58 = vld [vmem:[#allocation8 + $0x1e8] sm:$0xf0]  ;;  %v5134_v37 = vor.u32 %v5913_v13, %v5131_v32 }
 0x323   :  { %2679 = vmatpush.bf16.msrb.mxu3 %v5214_v10  ;;  %v5366_v34 = vor.u32 %v5971_v36, %v5363_v58  ;;  %v5187_v10 = vld [vmem:[#allocation8 + $0x88] sm:$0xf0] }
 0x324   :  { %v1781_v11 = vmul.f32 %v1777_v42, %v7890_v55  ;;  %v7941_v57 = vperm.slane %v1777_v42, 0  ;;  %v5955_v55 = vld [vmem:[#allocation8 + $0x164] sm:$0xf]  ;;  %v5198_v42 = vor.u32 %v5929_v50, %v5195_v61 }
 0x325   :  { %2473 = vmatmul.bf16.gmra.mxu2 %v7659_v27  ;;  %2522 = vmatmul.bf16.gmra.mxu3 %v7675_v52  ;;  %v5302_v48 = vor.u32 %v5955_v55, %v5299_v49  ;;  %v7963_v55 = vld [vmem:[#allocation11 + $0x18] sm:$0x77]  ;;  %v5190_v49 = vor.u32 %v5927_v25, %v5187_v10  ;;  %v9005_v10 = vld [vmem:[#allocation36_spill] sm:$0xff] }
 0x326   :  { %v1790_v2 = vsel %vm555_vm7, %v1781_v11, %v1788_v51  ;;  %v7947_v45 = vmul.f32 %v7941_v57, %v7876_v20  ;;  %2631 = vmatpush.bf16.msrb.mxu2 %v5142_v1  ;;  %v5123_v20 = vld [vmem:[#allocation8 + $0x8] sm:$0xf0]  ;;  %2774 = vmatpush.bf16.msra.mxu1 %v5366_v34  ;;  %v9002_v11 = vld [vmem:[#allocation30_spill] sm:$0xff]  ;;  %v1803_v32 = vmul.f32 %v7941_v57, %v7376_v47  ;;  %v2104_v58 = vperm.slane %v7963_v55, 0  ;;  %v9004_v25 = vld [vmem:[#allocation35_spill] sm:$0xff] }
 0x327   :  { %v1792_v15 = vrot.slane %v1790_v2, 6  ;;  %2725 = vmatpush.bf16.msra.mxu0 %v5302_v48  ;;  %2680 = vmatpush.bf16.msrb.mxu3 %v5206_v54  ;;  %v5126_v51 = vor.u32 %v5911_v53, %v5123_v20  ;;  %v1804_v1 = vmul.f32 %v7923_v35, %v9002_v11  ;;  %v1807_v2 = vmul.f32 %v7941_v57, %v7541_v21  ;;  %v5969_v11 = vld [vmem:[#allocation8 + $0x1d4] sm:$0xf] }
 0x328   :  { %v1811_v21 = vmul.f32 %v7941_v57, %v8979_v9  ;;  %v1815_v34 = vmul.f32 %v7941_v57, %v7644_v30  ;;  %v7987_v30 = vperm.slane %v2104_v58, 0 }
 0x329   :  { %v1796_v28 = vsub.f32 %v7909_v33, %v1792_v15 }
 0x32a   :  { %2632 = vmatpush.bf16.msrb.mxu2 %v5134_v37 }
 0x32b   :  { %v1869_v19 = vperm.slane %v1796_v28, 2  ;;  %v1870_v3 = vperm.slane %v1796_v28, 6  ;;  %2681 = vmatpush.bf16.msrb.mxu3 %v5198_v42  ;;  %v1812_v28 = vmul.f32 %v7923_v35, %v7397_v16 }
 0x32d   :  { %v7955_v13 = vperm.slane %v1869_v19, 2  ;;  %v7957_v33 = vperm.slane %v1870_v3, 2  ;;  %v1816_v19 = vmul.f32 %v7923_v35, %v7641_v31  ;;  %v5291_v31 = vld [vmem:[#allocation8 + $0x158] sm:$0xf0] }
 0x32e   :  { %2633 = vmatpush.bf16.msrb.mxu2 %v5126_v51  ;;  %v5953_v51 = vld [vmem:[#allocation8 + $0x154] sm:$0xf] }
 0x32f   :  { %v1881_v36 = vadd.f32 %v7955_v13, %v1803_v32  ;;  %v1885_v15 = vadd.f32 %v7955_v13, %v1807_v2  ;;  %v1882_v54 = vadd.f32 %v7957_v33, %v1804_v1  ;;  %v1886_v48 = vadd.f32 %v7957_v33, %v1808_v41  ;;  %2682 = vmatpush.bf16.msrb.mxu3 %v5190_v49 }
 0x330   :  { %v1889_v3 = vadd.f32 %v7955_v13, %v1811_v21  ;;  %v1893_v42 = vadd.f32 %v7955_v13, %v1815_v34  ;;  %v1890_v9 = vadd.f32 %v7957_v33, %v1812_v28  ;;  %v1894_v16 = vadd.f32 %v7957_v33, %v1816_v19 }
 0x331   :  { %v1945_v37 = vmax.f32 %v1881_v36, 0.0  ;;  %v1949_v47 = vmax.f32 %v1885_v15, 0.0  ;;  %v1946_v50 = vmax.f32 %v1882_v54, 0.0  ;;  %v1950_v61 = vmax.f32 %v1886_v48, 0.0 }
 0x332   :  { %v5294_v1 = vor.u32 %v5953_v51, %v5291_v31  ;;  %v1836_v41 = vmul.f32 %v7923_v35, %v7756_v39  ;;  %v1840_v32 = vmul.f32 %v7923_v35, %v7767_v22  ;;  %v1953_v36 = vmax.f32 %v1889_v3, 0.0 }
 0x333   :  { %v7976_v53 = vpack.c.bf16 %v1949_v47, %v1945_v37  ;;  %v7978_v20 = vpack.c.bf16 %v1950_v61, %v1946_v50  ;;  %v1957_v15 = vmax.f32 %v1893_v42, 0.0  ;;  %v1954_v54 = vmax.f32 %v1890_v9, 0.0 }
 0x334   :  { %v5358_v48 = vor.u32 %v5969_v11, %v5355_v59  ;;  %v1958_v37 = vmax.f32 %v1894_v16, 0.0  ;;  %2726 = vmatpush.bf16.msra.mxu0 %v5294_v1  ;;  %v1835_v47 = vmul.f32 %v7941_v57, %v7784_v4  ;;  %v1839_v50 = vmul.f32 %v7941_v57, %v7800_v38 }
 0x335   :  { %2536 = vmatmul.bf16.vlgmr.msrb.gmra.mxu0 %v7976_v53  ;;  %2585 = vmatmul.bf16.vlgmr.msrb.gmra.mxu1 %v7978_v20  ;;  %v1844_v39 = vmul.f32 %v7923_v35, %v7780_v24  ;;  %v1848_v22 = vmul.f32 %v7923_v35, %v7796_v43  ;;  %v1852_v61 = vmul.f32 %v7923_v35, %v7810_v40 }
 0x336   :  { %2634 = vmatmul.bf16.vlgmr.msrb.gmra.mxu2 %v9004_v25  ;;  %2683 = vmatmul.bf16.vlgmr.msrb.gmra.mxu3 %v9005_v10  ;;  %v1856_v21 = vmul.f32 %v7923_v35, %v7822_v62  ;;  %v1913_v4 = vadd.f32 %v7955_v13, %v1835_v47  ;;  %v1917_v28 = vadd.f32 %v7955_v13, %v1839_v50 }
 0x337   :  { %2775 = vmatpush.bf16.msra.mxu1 %v5358_v48  ;;  %v1860_v38 = vmul.f32 %v7923_v35, %v7834_v44  ;;  %v8015_v19 = vpack.c.bf16 %v1957_v15, %v1953_v36  ;;  %v1914_v24 = vadd.f32 %v7957_v33, %v1836_v41  ;;  %v1843_v43 = vmul.f32 %v7941_v57, %v7816_v0 }
 0x338   :  { %v2439_v2 = vpop.f32.mrf.mxu2  ;;  %v2488_v49 = vpop.f32.mrf.mxu3  ;;  %v1847_v40 = vmul.f32 %v7941_v57, %v7828_v17  ;;  %v8022_v62 = vpack.c.bf16 %v1958_v37, %v1954_v54  ;;  %v1977_v3 = vmax.f32 %v1913_v4, 0.0  ;;  %v1981_v42 = vmax.f32 %v1917_v28, 0.0 }
 0x339   :  { %v2440_v58 = vadd.f32 %v2439_v2, %v7987_v30  ;;  %v1918_v9 = vadd.f32 %v7957_v33, %v1840_v32  ;;  %v1978_v16 = vmax.f32 %v1914_v24, 0.0  ;;  %v1921_v25 = vadd.f32 %v7955_v13, %v1843_v43 }
 0x33a   :  { %v1925_v44 = vadd.f32 %v7955_v13, %v1847_v40  ;;  %v1851_v10 = vmul.f32 %v7941_v57, %v7840_v7  ;;  %v8029_v51 = vpack.c.bf16 %v1981_v42, %v1977_v3  ;;  %v1922_v31 = vadd.f32 %v7957_v33, %v1844_v39  ;;  %v9006_v40 = vld [vmem:[#allocation42_spill] sm:$0xff]  ;;  %v9007_v3 = vld [vmem:[#allocation43_spill] sm:$0xff]  ;;  %v5283_v42 = vld [vmem:[#allocation8 + $0x148] sm:$0xf0] }
 0x33b   :  { %v8009_v34 = vadd.f32 %v2488_v49, %v2440_v58  ;;  %v1982_v0 = vmax.f32 %v1918_v9, 0.0  ;;  %v1855_v17 = vmul.f32 %v7941_v57, %v7849_v14  ;;  %v1985_v59 = vmax.f32 %v1921_v25, 0.0  ;;  %v5967_v9 = vld [vmem:[#allocation8 + $0x1c4] sm:$0xf]  ;;  %v5347_v25 = vld [vmem:[#allocation8 + $0x1c8] sm:$0xf0] }
 0x33c   :  { %v1989_v41 = vmax.f32 %v1925_v44, 0.0  ;;  %v1926_v32 = vadd.f32 %v7957_v33, %v1848_v22  ;;  %v1929_v2 = vadd.f32 %v7955_v13, %v1851_v10  ;;  %v1986_v7 = vmax.f32 %v1922_v31, 0.0 }
 0x33d   :  { %v8037_v36 = vpack.c.bf16 %v1982_v0, %v1978_v16  ;;  %v1933_v15 = vadd.f32 %v7955_v13, %v1855_v17  ;;  %v1930_v14 = vadd.f32 %v7957_v33, %v1852_v61  ;;  %v1934_v50 = vadd.f32 %v7957_v33, %v1856_v21 }
 0x33e   :  { %v8040_v54 = vpack.c.bf16 %v1989_v41, %v1985_v59  ;;  %v1990_v48 = vmax.f32 %v1926_v32, 0.0  ;;  %v1993_v58 = vmax.f32 %v1929_v2, 0.0  ;;  %v1859_v39 = vmul.f32 %v7941_v57, %v7857_v5 }
 0x33f   :  { %v1997_v47 = vmax.f32 %v1933_v15, 0.0  ;;  %v1994_v4 = vmax.f32 %v1930_v14, 0.0  ;;  %v1941_v28 = vadd.f32 %v7955_v13, %v7947_v45  ;;  %v1938_v24 = vadd.f32 %v7957_v33, %v1860_v38  ;;  %v5951_v38 = vld [vmem:[#allocation8 + $0x144] sm:$0xf] }
 0x340   :  { %v2441_v11 = vpop.f32.mrf.mxu2  ;;  %v2490_v1 = vpop.f32.mrf.mxu3  ;;  %v8048_v22 = vpack.c.bf16 %v1990_v48, %v1986_v7  ;;  %v1998_v43 = vmax.f32 %v1934_v50, 0.0  ;;  %v1937_v21 = vadd.f32 %v7955_v13, %v1859_v39  ;;  %v1942_v5 = vadd.f32 %v7957_v33, %v7935_v60 }
 0x341   :  { %v2442_v49 = vadd.f32 %v2441_v11, %v7987_v30  ;;  %v8055_v61 = vpack.c.bf16 %v1997_v47, %v1993_v58  ;;  %v1820_v45 = vmul.f32 %v7923_v35, %v8980_v56  ;;  %v5286_v16 = vor.u32 %v5951_v38, %v5283_v42 }
 0x342   :  { %v8064_v44 = vpack.c.bf16 %v1998_v43, %v1994_v4  ;;  %v2001_v10 = vmax.f32 %v1937_v21, 0.0  ;;  %v2005_v0 = vmax.f32 %v1941_v28, 0.0  ;;  %v1819_v60 = vmul.f32 %v7941_v57, %v7432_v23  ;;  %v5949_v21 = vld [vmem:[#allocation8 + $0x134] sm:$0xf] }
 0x343   :  { %v8043_v37 = vadd.f32 %v2490_v1, %v2442_v49  ;;  %v5350_v11 = vor.u32 %v5967_v9, %v5347_v25  ;;  %v2002_v1 = vmax.f32 %v1938_v24, 0.0  ;;  %v2006_v59 = vmax.f32 %v1942_v5, 0.0  ;;  %2727 = vmatpush.bf16.msra.mxu0 %v5286_v16  ;;  %v5275_v5 = vld [vmem:[#allocation8 + $0x138] sm:$0xf0] }
 0x344   :  { %v1823_v56 = vmul.f32 %v7941_v57, %v7701_v12  ;;  %v1824_v32 = vmul.f32 %v7923_v35, %v7686_v63  ;;  %v8073_v2 = vpack.c.bf16 %v2005_v0, %v2001_v10  ;;  %v1897_v49 = vadd.f32 %v7955_v13, %v1819_v60 }
 0x345   :  { %2541 = vmatmul.bf16.gmra.mxu0 %v8015_v19  ;;  %2590 = vmatmul.bf16.gmra.mxu1 %v8022_v62  ;;  %v8076_v7 = vpack.c.bf16 %v2006_v59, %v2002_v1  ;;  %v1898_v48 = vadd.f32 %v7957_v33, %v1820_v45  ;;  %v5339_v45 = vld [vmem:[#allocation8 + $0x1b8] sm:$0xf0]  ;;  %v1827_v9 = vmul.f32 %v7941_v57, %v7719_v18 }
 0x346   :  { %2639 = vmatmul.bf16.gmra.mxu2 %v9006_v40  ;;  %2688 = vmatmul.bf16.gmra.mxu3 %v9007_v3  ;;  %v1901_v15 = vadd.f32 %v7955_v13, %v1823_v56  ;;  %v1902_v58 = vadd.f32 %v7957_v33, %v1824_v32  ;;  %v1961_v12 = vmax.f32 %v1897_v49, 0.0  ;;  %v5965_v40 = vld [vmem:[#allocation8 + $0x1b4] sm:$0xf]  ;;  %v5278_v3 = vor.u32 %v5949_v21, %v5275_v5 }
 0x347   :  { %2776 = vmatpush.bf16.msra.mxu1 %v5350_v11  ;;  %v1962_v47 = vmax.f32 %v1898_v48, 0.0  ;;  %v5342_v16 = vor.u32 %v5965_v40, %v5339_v45  ;;  %v1831_v10 = vmul.f32 %v7941_v57, %v7759_v26  ;;  %v5267_v48 = vld [vmem:[#allocation8 + $0x128] sm:$0xf0] }
 0x348   :  { %v2444_v31 = vpop.f32.mrf.mxu2  ;;  %v2493_v17 = vpop.f32.mrf.mxu3  ;;  %v1965_v14 = vmax.f32 %v1901_v15, 0.0  ;;  %v1966_v63 = vmax.f32 %v1902_v58, 0.0  ;;  %2728 = vmatpush.bf16.msra.mxu0 %v5278_v3  ;;  %v5947_v15 = vld [vmem:[#allocation8 + $0x124] sm:$0xf]  ;;  %v9011_v45 = vld [vmem:[#allocation41_spill] sm:$0xff] }
 0x349   :  { %v2445_v41 = vadd.f32 %v2444_v31, %v7987_v30  ;;  %v1905_v31 = vadd.f32 %v7955_v13, %v1827_v9  ;;  %v1909_v18 = vadd.f32 %v7955_v13, %v1831_v10  ;;  %v9009_v13 = vld [vmem:[#allocation32_spill] sm:$0xff]  ;;  %v5259_v9 = vld [vmem:[#allocation8 + $0x118] sm:$0xf0] }
 0x34a   :  { %v8086_v24 = vpack.c.bf16 %v1965_v14, %v1961_v12  ;;  %v8088_v43 = vpack.c.bf16 %v1966_v63, %v1962_v47  ;;  %v5963_v58 = vld [vmem:[#allocation8 + $0x1a4] sm:$0xf]  ;;  %v5270_v12 = vor.u32 %v5947_v15, %v5267_v48  ;;  %v5331_v14 = vld [vmem:[#allocation8 + $0x1a8] sm:$0xf0]  ;;  %v5323_v10 = vld [vmem:[#allocation8 + $0x198] sm:$0xf0] }
 0x34b   :  { %v8078_v23 = vadd.f32 %v2493_v17, %v2445_v41  ;;  %2777 = vmatpush.bf16.msra.mxu1 %v5342_v16  ;;  %v1969_v1 = vmax.f32 %v1905_v31, 0.0  ;;  %v1973_v26 = vmax.f32 %v1909_v18, 0.0  ;;  %v5961_v16 = vld [vmem:[#allocation8 + $0x194] sm:$0xf] }
 0x34c   :  { %2729 = vmatpush.bf16.msra.mxu0 %v5270_v12 }
 0x34d   :  { %v8112_v32 = vpack.c.bf16 %v1973_v26, %v1969_v1  ;;  %v9013_v1 = vld [vmem:[#allocation46_spill] sm:$0xff]  ;;  %v9014_v26 = vld [vmem:[#allocation20_spill] sm:$0xff] }
 0x350   :  { %v2446_v50 = vpop.f32.mrf.mxu2  ;;  %v2495_v39 = vpop.f32.mrf.mxu3 }
 0x351   :  { %v2447_v4 = vadd.f32 %v2446_v50, %v7987_v30  ;;  %v5334_v50 = vor.u32 %v5963_v58, %v5331_v14 }
 0x353   :  { %v8084_v28 = vadd.f32 %v2495_v39, %v2447_v4  ;;  %2778 = vmatpush.bf16.msra.mxu1 %v5334_v50 }
 0x355   :  { %2546 = vmatmul.bf16.gmra.mxu0 %v8086_v24  ;;  %2595 = vmatmul.bf16.gmra.mxu1 %v8088_v43 }
 0x356   :  { %2644 = vmatmul.bf16.gmra.mxu2 %v7690_v8  ;;  %2693 = vmatmul.bf16.gmra.mxu3 %v7692_v46  ;;  %v1828_v8 = vmul.f32 %v7923_v35, %v7710_v6  ;;  %v9008_v46 = vld [vmem:[#allocation28_spill] sm:$0xff] }
 0x357   :  { %v1832_v0 = vmul.f32 %v7923_v35, %v9008_v46 }
 0x358   :  { %v2449_v38 = vpop.f32.mrf.mxu2  ;;  %v2498_v42 = vpop.f32.mrf.mxu3  ;;  %v1906_v60 = vadd.f32 %v7957_v33, %v1828_v8 }
 0x359   :  { %v2450_v25 = vadd.f32 %v2449_v38, %v7987_v30  ;;  %v1910_v11 = vadd.f32 %v7957_v33, %v1832_v0  ;;  %v9010_v33 = vld [vmem:[#allocation33_spill] sm:$0xff]  ;;  %v9012_v38 = vld [vmem:[#allocation44_spill] sm:$0xff]  ;;  %v5326_v0 = vor.u32 %v5961_v16, %v5323_v10 }
 0x35a   :  { %v1970_v57 = vmax.f32 %v1906_v60, 0.0 }
 0x35b   :  { %v8104_v17 = vadd.f32 %v2498_v42, %v2450_v25  ;;  %v1974_v59 = vmax.f32 %v1910_v11, 0.0  ;;  %v5945_v42 = vld [vmem:[#allocation8 + $0x114] sm:$0xf]  ;;  %2779 = vmatpush.bf16.msra.mxu1 %v5326_v0 }
 0x35c   :  { %v5262_v25 = vor.u32 %v5945_v42, %v5259_v9 }
 0x35d   :  { %v8114_v49 = vpack.c.bf16 %v1974_v59, %v1970_v57  ;;  %v5943_v57 = vld [vmem:[#allocation8 + $0x104] sm:$0xf]  ;;  %v5251_v59 = vld [vmem:[#allocation8 + $0x108] sm:$0xf0] }
 0x35e   :  { %2730 = vmatpush.bf16.msra.mxu0 %v5262_v25 }
 0x360   :  { %v2451_v6 = vpop.f32.mrf.mxu2  ;;  %v2500_v41 = vpop.f32.mrf.mxu3 }
 0x361   :  { %v2452_v35 = vadd.f32 %v2451_v6, %v7987_v30  ;;  %v5959_v6 = vld [vmem:[#allocation8 + $0x184] sm:$0xf] }
 0x363   :  { %v8110_v56 = vadd.f32 %v2500_v41, %v2452_v35  ;;  %v5254_v41 = vor.u32 %v5943_v57, %v5251_v59  ;;  %v5315_v35 = vld [vmem:[#allocation8 + $0x188] sm:$0xf0] }
 0x364   :  { %v5318_v15 = vor.u32 %v5959_v6, %v5315_v35 }
 0x365   :  { %2551 = vmatmul.bf16.gmra.mxu0 %v8112_v32  ;;  %2600 = vmatmul.bf16.gmra.mxu1 %v8114_v49 }
 0x366   :  { %2649 = vmatmul.bf16.gmra.mxu2 %v9009_v13  ;;  %2698 = vmatmul.bf16.gmra.mxu3 %v9010_v33 }
 0x367   :  { %2731 = vmatpush.bf16.msra.mxu0 %v5254_v41  ;;  %2780 = vmatpush.bf16.msra.mxu1 %v5318_v15 }
 0x368   :  { %v2454_v47 = vpop.f32.mrf.mxu2  ;;  %v2503_v63 = vpop.f32.mrf.mxu3 }
 0x369   :  { %v2455_v39 = vadd.f32 %v2454_v47, %v7987_v30  ;;  %v9015_v47 = vld [vmem:[#allocation21_spill] sm:$0xff] }
 0x36b   :  { %v8121_v4 = vadd.f32 %v2503_v63, %v2455_v39 }
 0x370   :  { %v2456_v21 = vpop.f32.mrf.mxu2  ;;  %v2505_v5 = vpop.f32.mrf.mxu3 }
 0x371   :  { %v2457_v40 = vadd.f32 %v2456_v21, %v7987_v30 }
 0x373   :  { %v8124_v3 = vadd.f32 %v2505_v5, %v2457_v40 }
 0x375   :  { %2556 = vmatmul.bf16.gmra.mxu0 %v8029_v51  ;;  %2605 = vmatmul.bf16.gmra.mxu1 %v8037_v36 }
 0x376   :  { %2654 = vmatmul.bf16.gmra.mxu2 %v9011_v45  ;;  %2703 = vmatmul.bf16.gmra.mxu3 %v9012_v38 }
 0x378   :  { %v2459_v8 = vpop.f32.mrf.mxu2  ;;  %v2508_v46 = vpop.f32.mrf.mxu3 }
 0x379   :  { %v2460_v31 = vadd.f32 %v2459_v8, %v7987_v30  ;;  %v2105_v8 = vperm.slane %v7963_v55, 4 }
 0x37b   :  { %v8131_v18 = vadd.f32 %v2508_v46, %v2460_v31 }
 0x380   :  { %v8133_v60 = vpop.f32.mrf.mxu2  ;;  %v8135_v11 = vpop.f32.mrf.mxu3 }
 0x385   :  { %2561 = vmatmul.bf16.gmra.mxu0 %v8040_v54  ;;  %2610 = vmatmul.bf16.gmra.mxu1 %v8048_v22 }
 0x386   :  { %2659 = vmatmul.bf16.gmra.mxu2 %v9013_v1  ;;  %2708 = vmatmul.bf16.gmra.mxu3 %v9014_v26 }
 0x388   :  { %v2464_v13 = vpop.f32.mrf.mxu2  ;;  %v2513_v33 = vpop.f32.mrf.mxu3 }
 0x389   :  { %v2465_v48 = vadd.f32 %v2464_v13, %v7987_v30 }
 0x38b   :  { %v8142_v58 = vadd.f32 %v2513_v33, %v2465_v48 }
 0x390   :  { %v8144_v12 = vpop.f32.mrf.mxu2  ;;  %v8146_v14 = vpop.f32.mrf.mxu3 }
 0x395   :  { %2566 = vmatmul.bf16.gmra.mxu0 %v8055_v61  ;;  %2615 = vmatmul.bf16.gmra.mxu1 %v8064_v44 }
 0x396   :  { %2664 = vmatmul.bf16.gmra.mxu2 %v8999_v29  ;;  %2713 = vmatmul.bf16.gmra.mxu3 %v9015_v47 }
 0x398   :  { %v2469_v63 = vpop.f32.mrf.mxu2  ;;  %v2518_v39 = vpop.f32.mrf.mxu3 }
 0x399   :  { %v2470_v50 = vadd.f32 %v2469_v63, %v7987_v30 }
 0x39b   :  { %v8153_v21 = vadd.f32 %v2518_v39, %v2470_v50 }
 0x3a0   :  { %v8155_v5 = vpop.f32.mrf.mxu2  ;;  %v8157_v40 = vpop.f32.mrf.mxu3 }
 0x3a5   :  { %2571 = vmatmul.bf16.gmra.mxu0 %v8073_v2  ;;  %2620 = vmatmul.bf16.gmra.mxu1 %v8076_v7 }
 0x3a6   :  { %2669 = vmatmul.bf16.gmra.mxu2 %v7659_v27  ;;  %2718 = vmatmul.bf16.gmra.mxu3 %v7675_v52  ;;  %v8176_v27 = vperm.slane %v2105_v8, 0 }
 0x3a8   :  { %v2474_v29 = vpop.f32.mrf.mxu2  ;;  %v2523_v38 = vpop.f32.mrf.mxu3 }
 0x3a9   :  { %v2475_v45 = vadd.f32 %v2474_v29, %v7987_v30 }
 0x3ab   :  { %v8164_v42 = vadd.f32 %v2523_v38, %v2475_v45 }
 0x3b0   :  { %v8166_v9 = vpop.f32.mrf.mxu2  ;;  %v8168_v16 = vpop.f32.mrf.mxu3 }
 0x3b2   :  { %v2537_v25 = vpop.f32.mrf.mxu0  ;;  %v2586_v10 = vpop.f32.mrf.mxu1 }
 0x3b3   :  { %v2538_v46 = vadd.f32 %v2537_v25, %v8009_v34 }
 0x3b5   :  { %v8172_v0 = vadd.f32 %v2586_v10, %v2538_v46  ;;  %2732 = vmatmul.bf16.vlgmr.msra.gmra.mxu0 %v7976_v53  ;;  %2781 = vmatmul.bf16.vlgmr.msra.gmra.mxu1 %v7978_v20 }
 0x3b9   :  { %v2635_v52 = vpop.f32.mrf.mxu2  ;;  %v2684_v31 = vpop.f32.mrf.mxu3 }
 0x3ba   :  { %v2636_v1 = vadd.f32 %v2635_v52, %v8176_v27  ;;  %v2539_v26 = vpop.f32.mrf.mxu0  ;;  %v2588_v57 = vpop.f32.mrf.mxu1 }
 0x3bb   :  { %v2540_v59 = vadd.f32 %v2539_v26, %v8043_v37 }
 0x3bc   :  { %v8180_v6 = vadd.f32 %v2684_v31, %v2636_v1 }
 0x3bd   :  { %v8182_v41 = vadd.f32 %v2588_v57, %v2540_v59 }
 0x3c1   :  { %v8184_v34 = vpop.f32.mrf.mxu2  ;;  %v8186_v35 = vpop.f32.mrf.mxu3 }
 0x3c2   :  { %v2542_v53 = vpop.f32.mrf.mxu0  ;;  %v2591_v20 = vpop.f32.mrf.mxu1 }
 0x3c3   :  { %v2543_v13 = vadd.f32 %v2542_v53, %v8078_v23 }
 0x3c5   :  { %v8189_v33 = vadd.f32 %v2591_v20, %v2543_v13  ;;  %2737 = vmatmul.bf16.gmra.mxu0 %v8015_v19  ;;  %2786 = vmatmul.bf16.gmra.mxu1 %v8022_v62 }
 0x3c9   :  { %v2640_v15 = vpop.f32.mrf.mxu2  ;;  %v2689_v37 = vpop.f32.mrf.mxu3 }
 0x3ca   :  { %v2641_v48 = vadd.f32 %v2640_v15, %v8176_v27  ;;  %v2544_v47 = vpop.f32.mrf.mxu0  ;;  %v2593_v63 = vpop.f32.mrf.mxu1 }
 0x3cb   :  { %v2545_v50 = vadd.f32 %v2544_v47, %v8084_v28 }
 0x3cc   :  { %v8195_v39 = vadd.f32 %v2689_v37, %v2641_v48 }
 0x3cd   :  { %v8197_v29 = vadd.f32 %v2593_v63, %v2545_v50 }
 0x3d1   :  { %v8199_v45 = vpop.f32.mrf.mxu2  ;;  %v8201_v23 = vpop.f32.mrf.mxu3 }
 0x3d2   :  { %v2547_v38 = vpop.f32.mrf.mxu0  ;;  %v2596_v19 = vpop.f32.mrf.mxu1 }
 0x3d3   :  { %v2548_v62 = vadd.f32 %v2547_v38, %v8104_v17  ;;  %v2868_v38 = vmul.f32 %v8182_v41, %v8182_v41 }
 0x3d5   :  { %v8204_v25 = vadd.f32 %v2596_v19, %v2548_v62  ;;  %2742 = vmatmul.bf16.gmra.mxu0 %v8086_v24  ;;  %2791 = vmatmul.bf16.gmra.mxu1 %v8088_v43  ;;  %v2870_v19 = vmul.f32 %v8189_v33, %v8189_v33 }
 0x3d7   :  { %9016 = vst [vmem:[#allocation31_spill] sm:$0xff] %v8204_v25 }
 0x3d9   :  { %v2645_v10 = vpop.f32.mrf.mxu2  ;;  %v2694_v52 = vpop.f32.mrf.mxu3 }
 0x3da   :  { %v2646_v28 = vadd.f32 %v2645_v10, %v8176_v27  ;;  %v2549_v8 = vpop.f32.mrf.mxu0  ;;  %v2598_v46 = vpop.f32.mrf.mxu1 }
 0x3db   :  { %v2550_v31 = vadd.f32 %v2549_v8, %v8110_v56  ;;  %v2872_v8 = vmul.f32 %v8197_v29, %v8197_v29 }
 0x3dc   :  { %v8210_v1 = vadd.f32 %v2694_v52, %v2646_v28 }
 0x3dd   :  { %v8212_v26 = vadd.f32 %v2598_v46, %v2550_v31 }
 0x3df   :  { %9017 = vst [vmem:[#allocation34_spill] sm:$0xff] %v8212_v26 }
 0x3e2   :  { %v2552_v57 = vpop.f32.mrf.mxu0  ;;  %v2601_v17 = vpop.f32.mrf.mxu1 }
 0x3e3   :  { %v2553_v59 = vadd.f32 %v2552_v57, %v8121_v4  ;;  %v2467_v57 = vadd.f32 %v8144_v12, %v7987_v30  ;;  %v2472_v12 = vadd.f32 %v8155_v5, %v7987_v30 }
 0x3e5   :  { %v8215_v53 = vadd.f32 %v2601_v17, %v2553_v59  ;;  %2747 = vmatmul.bf16.gmra.mxu0 %v8112_v32  ;;  %2796 = vmatmul.bf16.gmra.mxu1 %v8114_v49 }
 0x3e7   :  { %9018 = vst [vmem:[#allocation24_spill] sm:$0xff] %v8215_v53 }
 0x3ea   :  { %v2554_v24 = vpop.f32.mrf.mxu0  ;;  %v2603_v43 = vpop.f32.mrf.mxu1 }
 0x3eb   :  { %v2555_v20 = vadd.f32 %v2554_v24, %v8124_v3  ;;  %v2876_v24 = vmul.f32 %v8212_v26, %v8212_v26 }
 0x3ed   :  { %v8220_v13 = vadd.f32 %v2603_v43, %v2555_v20 }
 0x3ef   :  { %9019 = vst [vmem:[#allocation23_spill] sm:$0xff] %v8220_v13 }
 0x3f2   :  { %v2557_v56 = vpop.f32.mrf.mxu0  ;;  %v2606_v15 = vpop.f32.mrf.mxu1 }
 0x3f3   :  { %v2558_v37 = vadd.f32 %v2557_v56, %v8131_v18 }
 0x3f5   :  { %v8223_v48 = vadd.f32 %v2606_v15, %v2558_v37  ;;  %2752 = vmatmul.bf16.gmra.mxu0 %v8029_v51  ;;  %2801 = vmatmul.bf16.gmra.mxu1 %v8037_v36  ;;  %v2462_v51 = vadd.f32 %v8133_v60, %v7987_v30  ;;  %v2866_v36 = vmul.f32 %v8172_v0, %v8172_v0 }
 0x3f6   :  { %v2516_v15 = vadd.f32 %v8146_v14, %v2467_v57  ;;  %v2521_v14 = vadd.f32 %v8157_v40, %v2472_v12  ;;  %v2477_v40 = vadd.f32 %v8166_v9, %v7987_v30 }
 0x3f7   :  { %v2898_v10 = vadd.f32 %v2868_v38, %v2866_v36  ;;  %v2511_v46 = vadd.f32 %v8135_v11, %v2462_v51  ;;  %v2878_v11 = vmul.f32 %v8215_v53, %v8215_v53  ;;  %v2882_v36 = vmul.f32 %v8223_v48, %v8223_v48 }
 0x3f8   :  { %v2526_v9 = vadd.f32 %v8168_v16, %v2477_v40 }
 0x3f9   :  { %v2899_v52 = vadd.f32 %v2898_v10, %v2870_v19 }
 0x3fa   :  { %v2559_v4 = vpop.f32.mrf.mxu0  ;;  %v2608_v32 = vpop.f32.mrf.mxu1 }
 0x3fb   :  { %v2900_v17 = vadd.f32 %v2899_v52, %v2872_v8 }
 0x402   :  { %v2562_v47 = vpop.f32.mrf.mxu0  ;;  %v2611_v49 = vpop.f32.mrf.mxu1 }
 0x403   :  { %v2563_v63 = vadd.f32 %v2562_v47, %v8142_v58  ;;  %v2822_v58 = vadd.f32 %v8182_v41, %v8172_v0 }
 0x405   :  { %v8228_v50 = vadd.f32 %v2611_v49, %v2563_v63  ;;  %2757 = vmatmul.bf16.gmra.mxu0 %v8040_v54  ;;  %2806 = vmatmul.bf16.gmra.mxu1 %v8048_v22  ;;  %v2823_v28 = vadd.f32 %v2822_v58, %v8189_v33  ;;  %v2880_v49 = vmul.f32 %v8220_v13, %v8220_v13 }
 0x407   :  { %v2824_v31 = vadd.f32 %v2823_v28, %v8197_v29  ;;  %v2886_v28 = vmul.f32 %v8228_v50, %v8228_v50 }
 0x409   :  { %v2825_v59 = vadd.f32 %v2824_v31, %v8204_v25 }
 0x40a   :  { %v2564_v3 = vpop.f32.mrf.mxu0  ;;  %v2613_v18 = vpop.f32.mrf.mxu1 }
 0x40b   :  { %v2565_v63 = vadd.f32 %v2564_v3, %v2516_v15 }
 0x412   :  { %v2567_v54 = vpop.f32.mrf.mxu0  ;;  %v2616_v62 = vpop.f32.mrf.mxu1 }
 0x413   :  { %v2568_v22 = vadd.f32 %v2567_v54, %v8153_v21  ;;  %v2874_v21 = vmul.f32 %v8204_v25, %v8204_v25  ;;  %v8277_v54 = vadd.f32 %v2613_v18, %v2565_v63  ;;  %v2643_v25 = vadd.f32 %v8199_v45, %v8176_v27 }
 0x415   :  { %v8246_v60 = vadd.f32 %v2616_v62, %v2568_v22  ;;  %2762 = vmatmul.bf16.gmra.mxu0 %v8055_v61  ;;  %2811 = vmatmul.bf16.gmra.mxu1 %v8064_v44  ;;  %v2560_v61 = vadd.f32 %v2559_v4, %v2511_v46  ;;  %v2901_v43 = vadd.f32 %v2900_v17, %v2874_v21 }
 0x416   :  { %v2826_v44 = vadd.f32 %v2825_v59, %v8212_v26  ;;  %v2888_v18 = vmul.f32 %v8277_v54, %v8277_v54 }
 0x417   :  { %9020 = vst [vmem:[#allocation25_spill] sm:$0xff] %v8246_v60  ;;  %v2902_v37 = vadd.f32 %v2901_v43, %v2876_v24  ;;  %v8268_v4 = vadd.f32 %v2608_v32, %v2560_v61  ;;  %v2890_v30 = vmul.f32 %v8246_v60, %v8246_v60 }
 0x418   :  { %v2827_v47 = vadd.f32 %v2826_v44, %v8215_v53  ;;  %v2638_v53 = vadd.f32 %v8184_v34, %v8176_v27  ;;  %v2692_v34 = vadd.f32 %v8201_v23, %v2643_v25 }
 0x419   :  { %v2903_v38 = vadd.f32 %v2902_v37, %v2878_v11  ;;  %v2884_v19 = vmul.f32 %v8268_v4, %v8268_v4 }
 0x41a   :  { %v2569_v20 = vpop.f32.mrf.mxu0  ;;  %v2618_v56 = vpop.f32.mrf.mxu1  ;;  %v2828_v51 = vadd.f32 %v2827_v47, %v8220_v13  ;;  %v5713_v13 = vld [vmem:[#allocation10 + $0x2a0] sm:$0xf]  ;;  %v2687_v26 = vadd.f32 %v8186_v35, %v2638_v53 }
 0x41b   :  { %v2904_v58 = vadd.f32 %v2903_v38, %v2880_v49  ;;  %v2570_v62 = vadd.f32 %v2569_v20, %v2521_v14 }
 0x41c   :  { %v2829_v5 = vadd.f32 %v2828_v51, %v8223_v48 }
 0x41d   :  { %v2905_v32 = vadd.f32 %v2904_v58, %v2882_v36  ;;  %v8288_v31 = vadd.f32 %v2618_v56, %v2570_v62 }
 0x41e   :  { %v2830_v3 = vadd.f32 %v2829_v5, %v8268_v4 }
 0x41f   :  { %v2906_v46 = vadd.f32 %v2905_v32, %v2884_v19  ;;  %9021 = vst [vmem:[#allocation26_spill] sm:$0xff] %v8288_v31  ;;  %v2892_v24 = vmul.f32 %v8288_v31, %v8288_v31 }
 0x420   :  { %v2831_v52 = vadd.f32 %v2830_v3, %v8228_v50  ;;  %v9023_v3 = vld [vmem:[#allocation19_spill] sm:$0xff] }
 0x421   :  { %v2907_v57 = vadd.f32 %v2906_v46, %v2886_v28 }
 0x422   :  { %v2572_v22 = vpop.f32.mrf.mxu0  ;;  %v2621_v10 = vpop.f32.mrf.mxu1 }
 0x423   :  { %v2573_v8 = vadd.f32 %v2572_v22, %v8164_v42  ;;  %v2832_v42 = vadd.f32 %v2831_v52, %v8277_v54  ;;  %v2908_v17 = vadd.f32 %v2907_v57, %v2888_v18 }
 0x425   :  { %v8290_v21 = vadd.f32 %v2621_v10, %v2573_v8  ;;  %2767 = vmatmul.bf16.gmra.mxu0 %v8073_v2  ;;  %2816 = vmatmul.bf16.gmra.mxu1 %v8076_v7  ;;  %v2833_v59 = vadd.f32 %v2832_v42, %v8246_v60  ;;  %v2909_v43 = vadd.f32 %v2908_v17, %v2890_v30 }
 0x427   :  { %9022 = vst [vmem:[#allocation37_spill] sm:$0xff] %v8290_v21  ;;  %v2834_v2 = vadd.f32 %v2833_v59, %v8288_v31  ;;  %v2894_v7 = vmul.f32 %v8290_v21, %v8290_v21  ;;  %v2910_v20 = vadd.f32 %v2909_v43, %v2892_v24  ;;  %v8318_v59 = vpop.f32.mrf.mxu2  ;;  %v8320_v43 = vpop.f32.mrf.mxu3 }
 0x428   :  { %v2648_v31 = vadd.f32 %v8318_v59, %v8176_v27 }
 0x429   :  { %v2835_v56 = vadd.f32 %v2834_v2, %v8290_v21  ;;  %v2911_v16 = vadd.f32 %v2910_v20, %v2894_v7 }
 0x42a   :  { %v2574_v61 = vpop.f32.mrf.mxu0  ;;  %v2623_v11 = vpop.f32.mrf.mxu1 }
 0x42b   :  { %v2575_v44 = vadd.f32 %v2574_v61, %v2526_v9 }
 0x42d   :  { %v2624_v15 = vadd.f32 %v2623_v11, %v2575_v44 }
 0x42f   :  { %v2836_v12 = vadd.f32 %v2835_v56, %v2624_v15  ;;  %v2896_v37 = vmul.f32 %v2624_v15, %v2624_v15  ;;  %v8325_v20 = vpop.f32.mrf.mxu2 }
 0x431   :  { %v2837_v47 = vrot.slane %v2836_v12, 4  ;;  %v2912_v49 = vadd.f32 %v2911_v16, %v2896_v37 }
 0x432   :  { %v2733_v28 = vpop.f32.mrf.mxu0  ;;  %v2782_v8 = vpop.f32.mrf.mxu1 }
 0x433   :  { %v2838_v63 = vadd.f32 %v2837_v47, %v2836_v12  ;;  %v2913_v38 = vrot.slane %v2912_v49, 4  ;;  %v2734_v40 = vadd.f32 %v2733_v28, %v8180_v6  ;;  %v2970_v12 = vperm.slane %v7963_v55, 1  ;;  %v5797_v55 = vld [vmem:[#allocation10 + $0x348] sm:$0xf] }
 0x435   :  { %v2839_v51 = vrot.slane %v2838_v63, 2  ;;  %v2914_v36 = vadd.f32 %v2913_v38, %v2912_v49  ;;  %v8312_v18 = vadd.f32 %v2782_v8, %v2734_v40 }
 0x437   :  { %v2840_v14 = vadd.f32 %v2839_v51, %v2838_v63  ;;  %v2915_v58 = vrot.slane %v2914_v36, 2  ;;  %v8332_v63 = vpop.f32.mrf.mxu3 }
 0x439   :  { %v2841_v5 = vrot.slane %v2840_v14, 1  ;;  %v2916_v19 = vadd.f32 %v2915_v58, %v2914_v36  ;;  %v8339_v36 = vpop.f32.mrf.mxu2  ;;  %v6027_v58 = vld [vmem:[#allocation10 + $0x1a0] sm:$0xf0] }
 0x43a   :  { %v8314_v9 = vpop.f32.mrf.mxu0  ;;  %v8316_v17 = vpop.f32.mrf.mxu1  ;;  %v2653_v23 = vadd.f32 %v8339_v36, %v8176_v27 }
 0x43b   :  { %v2842_v62 = vadd.f32 %v2841_v5, %v2840_v14  ;;  %v2917_v32 = vrot.slane %v2916_v19, 1  ;;  %v5573_v14 = vld [vmem:[#allocation10 + $0x188] sm:$0xf] }
 0x43d   :  { %v8306_v22 = vmul.f32 %v2842_v62, %v9023_v3  ;;  %v2918_v10 = vadd.f32 %v2917_v32, %v2916_v19  ;;  %v5574_v32 = vor.u32 %v6027_v58, %v5573_v14  ;;  %v5517_v14 = vld [vmem:[#allocation10 + $0x118] sm:$0xf]  ;;  %v6013_v58 = vld [vmem:[#allocation10 + $0x130] sm:$0xf0] }
 0x43f   :  { %v2940_v46 = vmul.f32 %v2918_v10, %v9023_v3  ;;  %v2942_v52 = vmul.f32 %v8306_v22, %v8306_v22  ;;  %v6083_v10 = vld [vmem:[#allocation10 + $0x360] sm:$0xf0]  ;;  %3835 = vmatpush.bf16.msra.mxu2 %v5574_v32  ;;  %v5518_v32 = vor.u32 %v6013_v58, %v5517_v14 }
 0x440   :  { %v5798_v8 = vor.u32 %v6083_v10, %v5797_v55  ;;  %v5741_v55 = vld [vmem:[#allocation10 + $0x2d8] sm:$0xf]  ;;  %v6069_v10 = vld [vmem:[#allocation10 + $0x2f0] sm:$0xf0] }
 0x441   :  { %v2944_v57 = vsub.f32 %v2940_v46, %v2942_v52  ;;  %v8347_v46 = vpop.f32.mrf.mxu3 }
 0x442   :  { %v2738_v61 = vpop.f32.mrf.mxu0  ;;  %v2787_v6 = vpop.f32.mrf.mxu1  ;;  %3884 = vmatpush.bf16.msra.mxu3 %v5798_v8 }
 0x443   :  { %v2946_v42 = vmax.f32 %v2944_v57, 0.0  ;;  %v2739_v7 = vadd.f32 %v2738_v61, %v8195_v39  ;;  %v5769_v61 = vld [vmem:[#allocation10 + $0x310] sm:$0xf] }
 0x445   :  { %v2948_v30 = vadd.f32 1e-05, %v2946_v42  ;;  %v8323_v11 = vadd.f32 %v2787_v6, %v2739_v7  ;;  %v2655_v42 = vpop.f32.mrf.mxu2  ;;  %v6076_v7 = vld [vmem:[#allocation10 + $0x328] sm:$0xf0] }
 0x446   :  { %v2656_v25 = vadd.f32 %v2655_v42, %v8176_v27 }
 0x447   :  { %6119 = vrsqrt.f32 %v2948_v30  ;;  %vm2956_vm5 = vweird.f32 %v2948_v30 }
 0x44a   :  { %v8328_v37 = vpop.f32.mrf.mxu0  ;;  %v8330_v47 = vpop.f32.mrf.mxu1 }
 0x44b   :  { %v2741_v35 = vadd.f32 %v8328_v37, %v2692_v34 }
 0x44d   :  { %v6120_v24 = vpop.eup %6119  ;;  %v8402_v59 = vadd.f32 %v8330_v47, %v2741_v35 }
 0x44e   :  { %v2951_v2 = vmul.f32 %v6120_v24, %v2948_v30  ;;  %vm2957_vm4 = vweird.f32 %v6120_v24  ;;  %v5545_v30 = vld [vmem:[#allocation10 + $0x150] sm:$0xf] }
 0x44f   :  { %vm2958_vm6 = vmor %vm2956_vm5, %vm2957_vm4 }
 0x450   :  { %v2952_v44 = vmul.f32 %v6120_v24, %v2951_v2 }
 0x452   :  { %v2953_v56 = vmul.f32 0.5, %v2952_v44  ;;  %v2743_v19 = vpop.f32.mrf.mxu0  ;;  %v2792_v62 = vpop.f32.mrf.mxu1  ;;  %v5770_v44 = vor.u32 %v6076_v7, %v5769_v61  ;;  %v5489_v7 = vld [vmem:[#allocation10 + $0xe0] sm:$0xf] }
 0x453   :  { %v2744_v28 = vadd.f32 %v2743_v19, %v8210_v1 }
 0x454   :  { %v2954_v16 = vsub.f32 1.5, %v2953_v56  ;;  %v2657_v56 = vpop.f32.mrf.mxu2  ;;  %3885 = vmatpush.bf16.msra.mxu3 %v5770_v44  ;;  %v6006_v44 = vld [vmem:[#allocation10 + $0xf8] sm:$0xf0] }
 0x455   :  { %v8345_v40 = vadd.f32 %v2792_v62, %v2744_v28  ;;  %v5742_v28 = vor.u32 %v6069_v10, %v5741_v55  ;;  %v5490_v55 = vor.u32 %v6006_v44, %v5489_v7  ;;  %v2658_v42 = vadd.f32 %v2657_v56, %v8176_v27 }
 0x456   :  { %v2955_v49 = vmul.f32 %v6120_v24, %v2954_v16 }
 0x457   :  { %v2875_v56 = vmul.f32 %v8345_v40, %v8345_v40 }
 0x458   :  { %v2959_v39 = vsel %vm2958_vm6, %v6120_v24, %v2955_v49  ;;  %v6020_v24 = vld [vmem:[#allocation10 + $0x168] sm:$0xf0]  ;;  %3886 = vmatpush.bf16.msra.mxu3 %v5742_v28 }
 0x459   :  { %v8334_v38 = vmul.f32 %v2970_v12, %v2959_v39  ;;  %v5546_v1 = vor.u32 %v6020_v24, %v5545_v30 }
 0x45a   :  { %v8349_v52 = vpop.f32.mrf.mxu0  ;;  %v8351_v57 = vpop.f32.mrf.mxu1 }
 0x45b   :  { %v8337_v51 = vperm.slane %v8334_v38, 0  ;;  %3836 = vmatpush.bf16.msra.mxu2 %v5546_v1 }
 0x45c   :  { %v2660_v39 = vpop.f32.mrf.mxu2 }
 0x45d   :  { %v8342_v5 = vmul.f32 %v8337_v51, %v2624_v15  ;;  %v8353_v15 = vpop.f32.mrf.mxu3 }
 0x45f   :  { %9024 = vst [vmem:[#allocation39_spill] sm:$0xff] %v8342_v5  ;;  %3837 = vmatpush.bf16.msra.mxu2 %v5518_v32  ;;  %v6062_v32 = vld [vmem:[#allocation10 + $0x2b8] sm:$0xf0]  ;;  %v2736_v5 = vadd.f32 %v8314_v9, %v2687_v26  ;;  %v2697_v26 = vadd.f32 %v8320_v43, %v2648_v31  ;;  %v2867_v31 = vmul.f32 %v8312_v18, %v8312_v18 }
 0x460   :  { %v5714_v28 = vor.u32 %v6062_v32, %v5713_v13  ;;  %v2651_v13 = vadd.f32 %v8325_v20, %v8176_v27  ;;  %v2702_v20 = vadd.f32 %v8347_v46, %v2653_v23  ;;  %v2871_v43 = vmul.f32 %v8323_v11, %v8323_v11 }
 0x461   :  { %v8391_v44 = vadd.f32 %v8316_v17, %v2736_v5  ;;  %v2746_v17 = vadd.f32 %v8349_v52, %v2697_v26  ;;  %v2873_v46 = vmul.f32 %v8402_v59, %v8402_v59 }
 0x462   :  { %v2748_v6 = vpop.f32.mrf.mxu0  ;;  %v8355_v2 = vpop.f32.mrf.mxu1  ;;  %3887 = vmatpush.bf16.msra.mxu3 %v5714_v28  ;;  %v2700_v53 = vadd.f32 %v8332_v63, %v2651_v13  ;;  %v2705_v63 = vadd.f32 %v8353_v15, %v2656_v25 }
 0x463   :  { %3838 = vmatpush.bf16.msra.mxu2 %v5490_v55  ;;  %v2869_v9 = vmul.f32 %v8391_v44, %v8391_v44  ;;  %v2843_v47 = vadd.f32 %v8391_v44, %v8312_v18  ;;  %v8417_v32 = vadd.f32 %v8351_v57, %v2746_v17 }
 0x464   :  { %v2662_v30 = vpop.f32.mrf.mxu2  ;;  %v2749_v37 = vadd.f32 %v2748_v6, %v2700_v53  ;;  %v2661_v6 = vadd.f32 %v2660_v39, %v8176_v27 }
 0x465   :  { %v8361_v49 = vpop.f32.mrf.mxu3  ;;  %v2919_v52 = vadd.f32 %v2869_v9, %v2867_v31  ;;  %v2844_v34 = vadd.f32 %v2843_v47, %v8323_v11  ;;  %v2663_v23 = vadd.f32 %v2662_v30, %v8176_v27  ;;  %v2877_v39 = vmul.f32 %v8417_v32, %v8417_v32 }
 0x466   :  { %v8425_v13 = vadd.f32 %v8355_v2, %v2749_v37  ;;  %v2707_v26 = vadd.f32 %v8361_v49, %v2658_v42 }
 0x467   :  { %v2920_v15 = vadd.f32 %v2919_v52, %v2871_v43  ;;  %v2845_v25 = vadd.f32 %v2844_v34, %v8402_v59 }
 0x468   :  { %v2879_v30 = vmul.f32 %v8425_v13, %v8425_v13 }
 0x46a   :  { %v8357_v16 = vpop.f32.mrf.mxu0  ;;  %v8359_v12 = vpop.f32.mrf.mxu1 }
 0x46b   :  { %v2751_v28 = vadd.f32 %v8357_v16, %v2702_v20  ;;  %v2921_v16 = vadd.f32 %v2920_v15, %v2873_v46 }
 0x46c   :  { %v2665_v10 = vpop.f32.mrf.mxu2 }
 0x46d   :  { %v8365_v8 = vpop.f32.mrf.mxu3  ;;  %v8433_v53 = vadd.f32 %v8359_v12, %v2751_v28  ;;  %v2666_v2 = vadd.f32 %v2665_v10, %v8176_v27  ;;  %v2922_v17 = vadd.f32 %v2921_v16, %v2875_v56 }
 0x46e   :  { %v2710_v9 = vadd.f32 %v8365_v8, %v2661_v6 }
 0x46f   :  { %v2881_v42 = vmul.f32 %v8433_v53, %v8433_v53 }
 0x472   :  { %v2753_v19 = vpop.f32.mrf.mxu0  ;;  %v8363_v62 = vpop.f32.mrf.mxu1 }
 0x473   :  { %v2754_v35 = vadd.f32 %v2753_v19, %v2705_v63  ;;  %v2846_v19 = vadd.f32 %v2845_v25, %v8345_v40 }
 0x474   :  { %v2667_v45 = vpop.f32.mrf.mxu2 }
 0x475   :  { %v8371_v1 = vpop.f32.mrf.mxu3  ;;  %v8442_v20 = vadd.f32 %v8363_v62, %v2754_v35  ;;  %v2668_v37 = vadd.f32 %v2667_v45, %v8176_v27  ;;  %v2847_v8 = vadd.f32 %v2846_v19, %v8417_v32 }
 0x476   :  { %v2712_v12 = vadd.f32 %v8371_v1, %v2663_v23 }
 0x477   :  { %v2848_v62 = vadd.f32 %v2847_v8, %v8425_v13  ;;  %v2883_v45 = vmul.f32 %v8442_v20, %v8442_v20 }
 0x47a   :  { %v8367_v24 = vpop.f32.mrf.mxu0  ;;  %v8369_v61 = vpop.f32.mrf.mxu1 }
 0x47b   :  { %v2756_v49 = vadd.f32 %v8367_v24, %v2707_v26  ;;  %v2923_v24 = vadd.f32 %v2922_v17, %v2877_v39 }
 0x47c   :  { %v2670_v57 = vpop.f32.mrf.mxu2 }
 0x47d   :  { %v2714_v21 = vpop.f32.mrf.mxu3  ;;  %v2671_v63 = vadd.f32 %v2670_v57, %v8176_v27  ;;  %v8453_v52 = vadd.f32 %v8369_v61, %v2756_v49  ;;  %v2924_v28 = vadd.f32 %v2923_v24, %v2879_v30 }
 0x47e   :  { %v2715_v47 = vadd.f32 %v2714_v21, %v2666_v2 }
 0x47f   :  { %v2925_v21 = vadd.f32 %v2924_v28, %v2881_v42 }
 0x481   :  { %v2926_v57 = vadd.f32 %v2925_v21, %v2883_v45 }
 0x482   :  { %v8375_v14 = vpop.f32.mrf.mxu0  ;;  %v8377_v58 = vpop.f32.mrf.mxu1 }
 0x483   :  { %v2759_v10 = vadd.f32 %v8375_v14, %v2710_v9  ;;  %v2849_v14 = vadd.f32 %v2848_v62, %v8433_v53 }
 0x484   :  { %v2672_v35 = vpop.f32.mrf.mxu2 }
 0x485   :  { %v2716_v55 = vpop.f32.mrf.mxu3  ;;  %v8459_v34 = vadd.f32 %v8377_v58, %v2759_v10  ;;  %v2850_v26 = vadd.f32 %v2849_v14, %v8442_v20  ;;  %v2673_v9 = vadd.f32 %v2672_v35, %v8176_v27 }
 0x486   :  { %v2717_v6 = vadd.f32 %v2716_v55, %v2668_v37 }
 0x487   :  { %v2851_v16 = vadd.f32 %v2850_v26, %v8453_v52  ;;  %v2887_v58 = vmul.f32 %v8459_v34, %v8459_v34 }
 0x489   :  { %v2852_v19 = vadd.f32 %v2851_v16, %v8459_v34 }
 0x48a   :  { %v2760_v60 = vpop.f32.mrf.mxu0  ;;  %v8386_v7 = vpop.f32.mrf.mxu1 }
 0x48b   :  { %v2761_v46 = vadd.f32 %v2760_v60, %v2712_v12  ;;  %v2885_v60 = vmul.f32 %v8453_v52, %v8453_v52 }
 0x48d   :  { %v2719_v1 = vpop.f32.mrf.mxu3  ;;  %v8465_v61 = vadd.f32 %v8386_v7, %v2761_v46  ;;  %v2927_v2 = vadd.f32 %v2926_v57, %v2885_v60 }
 0x48e   :  { %v2720_v56 = vadd.f32 %v2719_v1, %v2671_v63 }
 0x48f   :  { %v2889_v7 = vmul.f32 %v8465_v61, %v8465_v61  ;;  %v2928_v17 = vadd.f32 %v2927_v2, %v2887_v58  ;;  %v2853_v30 = vadd.f32 %v2852_v19, %v8465_v61 }
 0x491   :  { %v2929_v8 = vadd.f32 %v2928_v17, %v2889_v7 }
 0x492   :  { %v2763_v36 = vpop.f32.mrf.mxu0  ;;  %v2812_v5 = vpop.f32.mrf.mxu1 }
 0x493   :  { %v2764_v15 = vadd.f32 %v2763_v36, %v2715_v47 }
 0x495   :  { %v8470_v36 = vadd.f32 %v2812_v5, %v2764_v15  ;;  %v2721_v5 = vpop.f32.mrf.mxu3 }
 0x496   :  { %v2722_v37 = vadd.f32 %v2721_v5, %v2673_v9  ;;  %v5999_v5 = vld [vmem:[#allocation10 + $0xc0] sm:$0xf0] }
 0x497   :  { %v2854_v27 = vadd.f32 %v2853_v30, %v8470_v36 }
 0x49a   :  { %v2765_v31 = vpop.f32.mrf.mxu0  ;;  %v2814_v43 = vpop.f32.mrf.mxu1 }
 0x49b   :  { %v2766_v23 = vadd.f32 %v2765_v31, %v2717_v6  ;;  %v2891_v31 = vmul.f32 %v8470_v36, %v8470_v36 }
 0x49d   :  { %v8476_v49 = vadd.f32 %v2814_v43, %v2766_v23  ;;  %v2930_v24 = vadd.f32 %v2929_v8, %v2891_v31  ;;  %v5461_v31 = vld [vmem:[#allocation10 + $0xa8] sm:$0xf] }
 0x49f   :  { %v2893_v10 = vmul.f32 %v8476_v49, %v8476_v49  ;;  %v2855_v43 = vadd.f32 %v2854_v27, %v8476_v49  ;;  %v5462_v27 = vor.u32 %v5999_v5, %v5461_v31  ;;  %v6010_v31 = vld [vmem:[#allocation10 + $0x11c] sm:$0xf]  ;;  %v5519_v5 = vld [vmem:[#allocation10 + $0x134] sm:$0xf0] }
 0x4a1   :  { %v2931_v46 = vadd.f32 %v2930_v24, %v2893_v10  ;;  %v6055_v10 = vld [vmem:[#allocation10 + $0x280] sm:$0xf0]  ;;  %v5992_v24 = vld [vmem:[#allocation10 + $0x88] sm:$0xf0]  ;;  %3839 = vmatpush.bf16.msra.mxu2 %v5462_v27 }
 0x4a2   :  { %v2768_v55 = vpop.f32.mrf.mxu0  ;;  %v2817_v25 = vpop.f32.mrf.mxu1 }
 0x4a3   :  { %v2769_v39 = vadd.f32 %v2768_v55, %v2720_v56 }
 0x4a5   :  { %v8481_v12 = vadd.f32 %v2817_v25, %v2769_v39 }
 0x4a7   :  { %v2895_v42 = vmul.f32 %v8481_v12, %v8481_v12  ;;  %v2856_v1 = vadd.f32 %v2855_v43, %v8481_v12 }
 0x4a9   :  { %v2932_v45 = vadd.f32 %v2931_v46, %v2895_v42  ;;  %v5405_v46 = vld [vmem:[#allocation10 + $0x38] sm:$0xf] }
 0x4aa   :  { %v2770_v63 = vpop.f32.mrf.mxu0  ;;  %v2819_v62 = vpop.f32.mrf.mxu1 }
 0x4ab   :  { %v2771_v47 = vadd.f32 %v2770_v63, %v2722_v37  ;;  %v5685_v37 = vld [vmem:[#allocation10 + $0x268] sm:$0xf]  ;;  %v5433_v63 = vld [vmem:[#allocation10 + $0x70] sm:$0xf] }
 0x4ac   :  { %v5686_v42 = vor.u32 %v6055_v10, %v5685_v37  ;;  %v6348_v37 = vld [vmem:[#allocation11 + $0x18] sm:$0x77] }
 0x4ad   :  { %v8490_v28 = vadd.f32 %v2819_v62, %v2771_v47  ;;  %v6048_v47 = vld [vmem:[#allocation10 + $0x248] sm:$0xf0]  ;;  %v5434_v62 = vor.u32 %v5992_v24, %v5433_v63  ;;  %v2971_v27 = vperm.slane %v6348_v37, 5  ;;  %v6066_v10 = vld [vmem:[#allocation10 + $0x2dc] sm:$0xf] }
 0x4ae   :  { %3888 = vmatpush.bf16.msra.mxu3 %v5686_v42  ;;  %v5743_v63 = vld [vmem:[#allocation10 + $0x2f4] sm:$0xf0]  ;;  %v5978_v42 = vld [vmem:[#allocation10 + $0x18] sm:$0xf0] }
 0x4af   :  { %v2857_v6 = vadd.f32 %v2856_v1, %v8490_v28  ;;  %v2897_v14 = vmul.f32 %v8490_v28, %v8490_v28  ;;  %v5985_v1 = vld [vmem:[#allocation10 + $0x50] sm:$0xf0]  ;;  %3840 = vmatpush.bf16.msra.mxu2 %v5434_v62 }
 0x4b1   :  { %v2858_v15 = vrot.slane %v2857_v6, 4  ;;  %v2933_v56 = vadd.f32 %v2932_v45, %v2897_v14  ;;  %v6024_v45 = vld [vmem:[#allocation10 + $0x18c] sm:$0xf] }
 0x4b3   :  { %v2859_v21 = vadd.f32 %v2858_v15, %v2857_v6  ;;  %v2934_v35 = vrot.slane %v2933_v56, 4  ;;  %v5575_v15 = vld [vmem:[#allocation10 + $0x1a4] sm:$0xf0] }
 0x4b5   :  { %v2860_v26 = vrot.slane %v2859_v21, 2  ;;  %v2935_v60 = vadd.f32 %v2934_v35, %v2933_v56  ;;  %v6080_v56 = vld [vmem:[#allocation10 + $0x34c] sm:$0xf]  ;;  %v5578_v35 = vor.u32 %v6024_v45, %v5575_v15  ;;  %v5491_v45 = vld [vmem:[#allocation10 + $0xfc] sm:$0xf0] }
 0x4b7   :  { %v2861_v23 = vadd.f32 %v2860_v26, %v2859_v21  ;;  %v2936_v57 = vrot.slane %v2935_v60, 2  ;;  %v5799_v21 = vld [vmem:[#allocation10 + $0x364] sm:$0xf0]  ;;  %3933 = vmatpush.bf16.msrb.mxu0 %v5578_v35 }
 0x4b8   :  { %v5802_v26 = vor.u32 %v6080_v56, %v5799_v21  ;;  %v5715_v56 = vld [vmem:[#allocation10 + $0x2bc] sm:$0xf0] }
 0x4b9   :  { %v2862_v55 = vrot.slane %v2861_v23, 1  ;;  %v2937_v25 = vadd.f32 %v2936_v57, %v2935_v60  ;;  %v5629_v60 = vld [vmem:[#allocation10 + $0x1f8] sm:$0xf]  ;;  %v6017_v57 = vld [vmem:[#allocation10 + $0x154] sm:$0xf] }
 0x4ba   :  { %3982 = vmatpush.bf16.msrb.mxu1 %v5802_v26 }
 0x4bb   :  { %v2863_v16 = vadd.f32 %v2862_v55, %v2861_v23  ;;  %v2938_v58 = vrot.slane %v2937_v25, 1  ;;  %v6041_v23 = vld [vmem:[#allocation10 + $0x210] sm:$0xf0] }
 0x4bd   :  { %v8496_v39 = vmul.f32 %v2863_v16, %v9023_v3  ;;  %v2939_v9 = vadd.f32 %v2938_v58, %v2937_v25  ;;  %v5547_v25 = vld [vmem:[#allocation10 + $0x16c] sm:$0xf0]  ;;  %v6073_v16 = vld [vmem:[#allocation10 + $0x314] sm:$0xf]  ;;  %v5406_v58 = vor.u32 %v5985_v1, %v5405_v46  ;;  %v5746_v1 = vor.u32 %v6066_v10, %v5743_v63 }
 0x4bf   :  { %v2941_v2 = vmul.f32 %v2939_v9, %v9023_v3  ;;  %v2943_v19 = vmul.f32 %v8496_v39, %v8496_v39  ;;  %v5657_v3 = vld [vmem:[#allocation10 + $0x230] sm:$0xf]  ;;  %v5550_v9 = vor.u32 %v6017_v57, %v5547_v25  ;;  %3841 = vmatpush.bf16.msra.mxu2 %v5406_v58  ;;  %v5463_v57 = vld [vmem:[#allocation10 + $0xc4] sm:$0xf0]  ;;  %v2976_v25 = vmul.f32 %v8334_v38, %v8306_v22  ;;  %v5989_v38 = vld [vmem:[#allocation10 + $0x74] sm:$0xf] }
 0x4c0   :  { %v5658_v14 = vor.u32 %v6048_v47, %v5657_v3  ;;  %v5522_v3 = vor.u32 %v6010_v31, %v5519_v5  ;;  %v6003_v47 = vld [vmem:[#allocation10 + $0xe4] sm:$0xf] }
 0x4c1   :  { %v2945_v7 = vsub.f32 %v2941_v2, %v2943_v19  ;;  %v5771_v2 = vld [vmem:[#allocation10 + $0x32c] sm:$0xf0]  ;;  %3934 = vmatpush.bf16.msrb.mxu0 %v5550_v9  ;;  %v5687_v9 = vld [vmem:[#allocation10 + $0x284] sm:$0xf0] }
 0x4c2   :  { %3889 = vmatpush.bf16.msra.mxu3 %v5658_v14  ;;  %v6034_v14 = vld [vmem:[#allocation10 + $0x1d8] sm:$0xf0] }
 0x4c3   :  { %v2947_v17 = vmax.f32 %v2945_v7, 0.0  ;;  %v5630_v7 = vor.u32 %v6041_v23, %v5629_v60  ;;  %v5494_v60 = vor.u32 %v6003_v47, %v5491_v45  ;;  %v6038_v47 = vld [vmem:[#allocation10 + $0x1fc] sm:$0xf]  ;;  %v5777_v45 = vld [vmem:[#allocation10 + $0x318] sm:$0xf] }
 0x4c5   :  { %v2949_v30 = vadd.f32 1e-05, %v2947_v17  ;;  %v5774_v17 = vor.u32 %v6073_v16, %v5771_v2  ;;  %3935 = vmatpush.bf16.msrb.mxu0 %v5522_v3  ;;  %v5581_v2 = vld [vmem:[#allocation10 + $0x190] sm:$0xf]  ;;  %v5407_v3 = vld [vmem:[#allocation10 + $0x54] sm:$0xf0] }
 0x4c6   :  { %3890 = vmatpush.bf16.msra.mxu3 %v5630_v7  ;;  %v5805_v7 = vld [vmem:[#allocation10 + $0x350] sm:$0xf] }
 0x4c7   :  { %6121 = vrsqrt.f32 %v2949_v30  ;;  %vm2966_vm9 = vweird.f32 %v2949_v30  ;;  %3983 = vmatpush.bf16.msrb.mxu1 %v5774_v17  ;;  %v6084_v17 = vld [vmem:[#allocation10 + $0x368] sm:$0xf0] }
 0x4c8   :  { %v5806_v10 = vor.u32 %v6084_v17, %v5805_v7  ;;  %v6031_v17 = vld [vmem:[#allocation10 + $0x1c4] sm:$0xf] }
 0x4c9   :  { %3936 = vmatpush.bf16.msrb.mxu0 %v5494_v60 }
 0x4cb   :  { %3984 = vmatpush.bf16.msrb.mxu1 %v5746_v1  ;;  %v6021_v1 = vld [vmem:[#allocation10 + $0x170] sm:$0xf0] }
 0x4cd   :  { %v8501_v8 = vpop.eup %6121 }
 0x4ce   :  { %v2961_v43 = vmul.f32 %v8501_v8, %v2949_v30  ;;  %vm2967_vm8 = vweird.f32 %v8501_v8  ;;  %v6059_v30 = vld [vmem:[#allocation10 + $0x2a4] sm:$0xf] }
 0x4cf   :  { %vm2968_vm10 = vmor %vm2966_vm9, %vm2967_vm8  ;;  %v5718_v23 = vor.u32 %v6059_v30, %v5715_v56  ;;  %v5631_v30 = vld [vmem:[#allocation10 + $0x214] sm:$0xf0] }
 0x4d0   :  { %v2962_v6 = vmul.f32 %v8501_v8, %v2961_v43  ;;  %v5377_v43 = vld [vmem:[#allocation10] sm:$0xf] }
 0x4d1   :  { %v5378_v62 = vor.u32 %v5978_v42, %v5377_v43  ;;  %3985 = vmatpush.bf16.msrb.mxu1 %v5718_v23  ;;  %v5659_v43 = vld [vmem:[#allocation10 + $0x24c] sm:$0xf0]  ;;  %v5982_v42 = vld [vmem:[#allocation10 + $0x3c] sm:$0xf] }
 0x4d2   :  { %v2963_v55 = vmul.f32 0.5, %v2962_v6  ;;  %v5601_v6 = vld [vmem:[#allocation10 + $0x1c0] sm:$0xf] }
 0x4d3   :  { %v5602_v21 = vor.u32 %v6034_v14, %v5601_v6  ;;  %3842 = vmatpush.bf16.msra.mxu2 %v5378_v62 }
 0x4d4   :  { %v2964_v19 = vsub.f32 1.5, %v2963_v55  ;;  %v6052_v55 = vld [vmem:[#allocation10 + $0x26c] sm:$0xf] }
 0x4d5   :  { %3891 = vmatpush.bf16.msra.mxu3 %v5602_v21  ;;  %v5690_v22 = vor.u32 %v6052_v55, %v5687_v9  ;;  %v6077_v21 = vld [vmem:[#allocation10 + $0x330] sm:$0xf0]  ;;  %v5634_v55 = vor.u32 %v6038_v47, %v5631_v30  ;;  %v3003_v47 = vmul.f32 %v8337_v51, %v8223_v48  ;;  %v9025_v48 = vld [vmem:[#allocation25_spill] sm:$0xff] }
 0x4d6   :  { %v2965_v24 = vmul.f32 %v8501_v8, %v2964_v19  ;;  %v6028_v19 = vld [vmem:[#allocation10 + $0x1a8] sm:$0xf0]  ;;  %v5778_v60 = vor.u32 %v6077_v21, %v5777_v45  ;;  %v9026_v45 = vld [vmem:[#allocation26_spill] sm:$0xff] }
 0x4d7   :  { %3986 = vmatpush.bf16.msrb.mxu1 %v5690_v22 }
 0x4d8   :  { %v2969_v46 = vsel %vm2968_vm10, %v8501_v8, %v2965_v24  ;;  %v5996_v8 = vld [vmem:[#allocation10 + $0xac] sm:$0xf]  ;;  %v5435_v24 = vld [vmem:[#allocation10 + $0x8c] sm:$0xf0] }
 0x4d9   :  { %v2975_v15 = vmul.f32 %v2971_v27, %v2969_v46  ;;  %v5466_v5 = vor.u32 %v5996_v8, %v5463_v57  ;;  %v5582_v27 = vor.u32 %v6028_v19, %v5581_v2  ;;  %4080 = vmatpush.bf16.msrb.mxu3 %v5806_v10  ;;  %v5438_v62 = vor.u32 %v5989_v38, %v5435_v24  ;;  %v5553_v46 = vld [vmem:[#allocation10 + $0x158] sm:$0xf]  ;;  %v5975_v2 = vld [vmem:[#allocation10 + $0x4] sm:$0xf]  ;;  %v5379_v19 = vld [vmem:[#allocation10 + $0x1c] sm:$0xf0] }
 0x4da   :  { %v5554_v56 = vor.u32 %v6021_v1, %v5553_v46  ;;  %v5410_v8 = vor.u32 %v5982_v42, %v5407_v3  ;;  %v2989_v57 = vmul.f32 %v8337_v51, %v8182_v41  ;;  %v2991_v38 = vmul.f32 %v8337_v51, %v8189_v33 }
 0x4db   :  { %v2977_v35 = vmul.f32 %v2975_v15, %v8496_v39  ;;  %v8511_v26 = vperm.slane %v2975_v15, 0  ;;  %4031 = vmatpush.bf16.msrb.mxu2 %v5582_v27  ;;  %3937 = vmatpush.bf16.msrb.mxu0 %v5466_v5  ;;  %v3005_v33 = vmul.f32 %v8337_v51, %v8268_v4  ;;  %v3009_v1 = vmul.f32 %v8337_v51, %v8277_v54 }
 0x4dc   :  { %v3011_v4 = vmul.f32 %v8337_v51, %v9025_v48  ;;  %v9028_v48 = vld [vmem:[#allocation39_spill] sm:$0xff] }
 0x4dd   :  { %v2980_v16 = vrot.slane %v2977_v35, 4  ;;  %v3016_v58 = vmul.f32 %v8511_v26, %v8481_v12  ;;  %v3018_v39 = vmul.f32 %v8511_v26, %v8490_v28  ;;  %v6045_v12 = vld [vmem:[#allocation10 + $0x234] sm:$0xf]  ;;  %v2987_v35 = vmul.f32 %v8337_v51, %v8172_v0  ;;  %4081 = vmatpush.bf16.msrb.mxu3 %v5778_v60 }
 0x4de   :  { %v5662_v15 = vor.u32 %v6045_v12, %v5659_v43  ;;  %v2992_v46 = vmul.f32 %v8511_v26, %v8323_v11  ;;  %v2994_v11 = vmul.f32 %v8511_v26, %v8402_v59  ;;  %v3004_v54 = vmul.f32 %v8511_v26, %v8442_v20 }
 0x4df   :  { %v2981_v31 = vsel %vm555_vm7, %v2976_v25, %v2980_v16  ;;  %4032 = vmatpush.bf16.msrb.mxu2 %v5554_v56  ;;  %3938 = vmatpush.bf16.msrb.mxu0 %v5438_v62  ;;  %v2988_v25 = vmul.f32 %v8511_v26, %v8312_v18  ;;  %v2990_v16 = vmul.f32 %v8511_v26, %v8391_v44 }
 0x4e0   :  { %v2982_v63 = vrot.slane %v2981_v31, 6  ;;  %3987 = vmatpush.bf16.msrb.mxu1 %v5662_v15  ;;  %v5603_v31 = vld [vmem:[#allocation10 + $0x1dc] sm:$0xf0]  ;;  %v3006_v30 = vmul.f32 %v8511_v26, %v8453_v52  ;;  %v3008_v21 = vmul.f32 %v8511_v26, %v8459_v34  ;;  %v3012_v60 = vmul.f32 %v8511_v26, %v8470_v36  ;;  %v6014_v34 = vld [vmem:[#allocation10 + $0x138] sm:$0xf0] }
 0x4e1   :  { %v5606_v12 = vor.u32 %v6031_v17, %v5603_v31 }
 0x4e2   :  { %v2984_v28 = vsub.f32 %v6348_v37, %v2982_v63 }
 0x4e3   :  { %3939 = vmatpush.bf16.msrb.mxu0 %v5410_v8 }
 0x4e4   :  { %v3020_v6 = vperm.slane %v2984_v28, 2  ;;  %v3021_v14 = vperm.slane %v2984_v28, 6  ;;  %3988 = vmatpush.bf16.msrb.mxu1 %v5634_v55  ;;  %v2993_v28 = vmul.f32 %v8337_v51, %v8197_v29  ;;  %v3007_v29 = vmul.f32 %v8337_v51, %v8228_v50  ;;  %v5749_v55 = vld [vmem:[#allocation10 + $0x2e0] sm:$0xf] }
 0x4e6   :  { %v8522_v37 = vperm.slane %v3020_v6, 2  ;;  %v8524_v23 = vperm.slane %v3021_v14, 2  ;;  %v3013_v6 = vmul.f32 %v8337_v51, %v9026_v45  ;;  %v9027_v14 = vld [vmem:[#allocation37_spill] sm:$0xff] }
 0x4e7   :  { %v3015_v15 = vmul.f32 %v8337_v51, %v9027_v14 }
 0x4e8   :  { %v3055_v0 = vadd.f32 %v8524_v23, %v3016_v58  ;;  %v3057_v9 = vadd.f32 %v8524_v23, %v3018_v39  ;;  %v3026_v7 = vadd.f32 %v8522_v37, %v2987_v35  ;;  %v3028_v41 = vadd.f32 %v8522_v37, %v2989_v57  ;;  %3989 = vmatpush.bf16.msrb.mxu1 %v5606_v12  ;;  %v5525_v57 = vld [vmem:[#allocation10 + $0x120] sm:$0xf] }
 0x4e9   :  { %v3027_v5 = vadd.f32 %v8524_v23, %v2988_v25  ;;  %v3029_v18 = vadd.f32 %v8524_v23, %v2990_v16  ;;  %v5382_v58 = vor.u32 %v5975_v2, %v5379_v19  ;;  %v8549_v3 = vadd.f32 %v8522_v37, %v2991_v38  ;;  %v6070_v2 = vld [vmem:[#allocation10 + $0x2f8] sm:$0xf0] }
 0x4ea   :  { %v3087_v27 = vmax.f32 %v3055_v0, 0.0  ;;  %v3089_v44 = vmax.f32 %v3057_v9, 0.0  ;;  %v3058_v10 = vmax.f32 %v3026_v7, 0.0  ;;  %v3060_v63 = vmax.f32 %v3028_v41, 0.0 }
 0x4eb   :  { %v3059_v39 = vmax.f32 %v3027_v5, 0.0  ;;  %v3061_v22 = vmax.f32 %v3029_v18, 0.0  ;;  %v8557_v62 = vadd.f32 %v8522_v37, %v2993_v28  ;;  %3940 = vmatpush.bf16.msrb.mxu0 %v5382_v58  ;;  %v3031_v50 = vadd.f32 %v8524_v23, %v2992_v46 }
 0x4ec   :  { %v8540_v24 = vpack.c.bf16 %v3089_v44, %v3087_v27  ;;  %v8542_v43 = vpack.c.bf16 %v3060_v63, %v3058_v10  ;;  %v3062_v56 = vmax.f32 %v8549_v3, 0.0  ;;  %v3010_v35 = vmul.f32 %v8511_v26, %v8465_v61 }
 0x4ed   :  { %v8546_v42 = vpack.c.bf16 %v3061_v22, %v3059_v39  ;;  %v3064_v59 = vmax.f32 %v8557_v62, 0.0  ;;  %v3033_v20 = vadd.f32 %v8524_v23, %v2994_v11  ;;  %v3042_v8 = vadd.f32 %v8522_v37, %v3003_v47 }
 0x4ee   :  { %3843 = vmatmul.bf16.vlgmr.msra.gmra.mxu2 %v8542_v43  ;;  %3941 = vmatmul.bf16.vlgmr.msrb.gmra.mxu0 %v8542_v43  ;;  %v3044_v52 = vadd.f32 %v8522_v37, %v3005_v33  ;;  %v3043_v61 = vadd.f32 %v8524_v23, %v3004_v54  ;;  %v3045_v25 = vadd.f32 %v8524_v23, %v3006_v30  ;;  %v3063_v0 = vmax.f32 %v3031_v50, 0.0 }
 0x4ef   :  { %3892 = vmatmul.bf16.vlgmr.msra.gmra.mxu3 %v8546_v42  ;;  %3990 = vmatmul.bf16.vlgmr.msrb.gmra.mxu1 %v8546_v42  ;;  %v3046_v36 = vadd.f32 %v8522_v37, %v3007_v29  ;;  %v3014_v16 = vmul.f32 %v8511_v26, %v8476_v49  ;;  %v5526_v9 = vor.u32 %v6014_v34, %v5525_v57  ;;  %v3074_v19 = vmax.f32 %v3042_v8, 0.0  ;;  %v5497_v8 = vld [vmem:[#allocation10 + $0xe8] sm:$0xf] }
 0x4f0   :  { %v3076_v7 = vmax.f32 %v3044_v52, 0.0  ;;  %v5750_v41 = vor.u32 %v6070_v2, %v5749_v55  ;;  %v3075_v17 = vmax.f32 %v3043_v61, 0.0  ;;  %v3077_v31 = vmax.f32 %v3045_v25, 0.0  ;;  %v6007_v52 = vld [vmem:[#allocation10 + $0x100] sm:$0xf0] }
 0x4f1   :  { %v3048_v5 = vadd.f32 %v8522_v37, %v3009_v1  ;;  %v3065_v18 = vmax.f32 %v3033_v20, 0.0  ;;  %4033 = vmatpush.bf16.msrb.mxu2 %v5526_v9  ;;  %v3078_v44 = vmax.f32 %v3046_v36, 0.0  ;;  %v3047_v10 = vadd.f32 %v8524_v23, %v3008_v21  ;;  %v9029_v21 = vld [vmem:[#allocation31_spill] sm:$0xff]  ;;  %v5721_v57 = vld [vmem:[#allocation10 + $0x2a8] sm:$0xf] }
 0x4f2   :  { %v8598_v27 = vpack.c.bf16 %v3076_v7, %v3074_v19  ;;  %4082 = vmatpush.bf16.msrb.mxu3 %v5750_v41  ;;  %v8601_v63 = vpack.c.bf16 %v3077_v31, %v3075_v17  ;;  %v3049_v58 = vadd.f32 %v8524_v23, %v3010_v35  ;;  %v3050_v39 = vadd.f32 %v8522_v37, %v3011_v4  ;;  %v6063_v25 = vld [vmem:[#allocation10 + $0x2c0] sm:$0xf0]  ;;  %v9032_v31 = vld [vmem:[#allocation23_spill] sm:$0xff] }
 0x4f3   :  { %v3080_v49 = vmax.f32 %v3048_v5, 0.0  ;;  %v3079_v22 = vmax.f32 %v3047_v10, 0.0  ;;  %v3052_v38 = vadd.f32 %v8522_v37, %v3013_v6  ;;  %v3051_v12 = vadd.f32 %v8524_v23, %v3012_v60  ;;  %v9031_v41 = vld [vmem:[#allocation24_spill] sm:$0xff]  ;;  %v5469_v10 = vld [vmem:[#allocation10 + $0xb0] sm:$0xf] }
 0x4f4   :  { %v3053_v28 = vadd.f32 %v8524_v23, %v3014_v16  ;;  %v3081_v47 = vmax.f32 %v3049_v58, 0.0  ;;  %v3082_v33 = vmax.f32 %v3050_v39, 0.0  ;;  %v3054_v62 = vadd.f32 %v8522_v37, %v3015_v15  ;;  %v5693_v58 = vld [vmem:[#allocation10 + $0x270] sm:$0xf] }
 0x4f5   :  { %v8608_v3 = vpack.c.bf16 %v3080_v49, %v3078_v44  ;;  %v3084_v46 = vmax.f32 %v3052_v38, 0.0  ;;  %v3083_v29 = vmax.f32 %v3051_v12, 0.0  ;;  %v3056_v45 = vadd.f32 %v8522_v37, %v9028_v48  ;;  %v6000_v49 = vld [vmem:[#allocation10 + $0xc8] sm:$0xf0]  ;;  %v6049_v48 = vld [vmem:[#allocation10 + $0x250] sm:$0xf0] }
 0x4f6   :  { %v3085_v1 = vmax.f32 %v3053_v28, 0.0  ;;  %v8613_v4 = vpack.c.bf16 %v3081_v47, %v3079_v22  ;;  %v3086_v14 = vmax.f32 %v3054_v62, 0.0  ;;  %v8615_v6 = vpack.c.bf16 %v3064_v59, %v3062_v56  ;;  %v9030_v56 = vld [vmem:[#allocation34_spill] sm:$0xff]  ;;  %v6056_v12 = vld [vmem:[#allocation10 + $0x288] sm:$0xf0] }
 0x4f7   :  { %v8617_v11 = vpack.c.bf16 %v3084_v46, %v3082_v33  ;;  %v3088_v54 = vmax.f32 %v3056_v45, 0.0  ;;  %v8621_v30 = vpack.c.bf16 %v3065_v18, %v3063_v0  ;;  %v2995_v35 = vmul.f32 %v8337_v51, %v9029_v21  ;;  %v6025_v21 = vld [vmem:[#allocation10 + $0x194] sm:$0xf] }
 0x4f8   :  { %v8619_v50 = vpack.c.bf16 %v3085_v1, %v3083_v29  ;;  %v2997_v60 = vmul.f32 %v8337_v51, %v9030_v56  ;;  %v2996_v59 = vmul.f32 %v8511_v26, %v8345_v40  ;;  %v2998_v20 = vmul.f32 %v8511_v26, %v8417_v32  ;;  %v5665_v29 = vld [vmem:[#allocation10 + $0x238] sm:$0xf]  ;;  %v5583_v56 = vld [vmem:[#allocation10 + $0x1ac] sm:$0xf0] }
 0x4f9   :  { %v8624_v15 = vpack.c.bf16 %v3088_v54, %v3086_v14  ;;  %v3034_v34 = vadd.f32 %v8522_v37, %v2995_v35  ;;  %v5498_v61 = vor.u32 %v6007_v52, %v5497_v8  ;;  %v5722_v0 = vor.u32 %v6063_v25, %v5721_v57  ;;  %v5413_v14 = vld [vmem:[#allocation10 + $0x40] sm:$0xf]  ;;  %v5986_v54 = vld [vmem:[#allocation10 + $0x58] sm:$0xf0] }
 0x4fa   :  { %v3036_v55 = vadd.f32 %v8522_v37, %v2997_v60  ;;  %v3035_v36 = vadd.f32 %v8524_v23, %v2996_v59  ;;  %v3037_v16 = vadd.f32 %v8524_v23, %v2998_v20  ;;  %v2999_v17 = vmul.f32 %v8337_v51, %v9031_v41  ;;  %v6081_v60 = vld [vmem:[#allocation10 + $0x354] sm:$0xf]  ;;  %v5807_v59 = vld [vmem:[#allocation10 + $0x36c] sm:$0xf0]  ;;  %v5637_v52 = vld [vmem:[#allocation10 + $0x200] sm:$0xf] }
 0x4fb   :  { %4034 = vmatpush.bf16.msrb.mxu2 %v5498_v61  ;;  %4083 = vmatpush.bf16.msrb.mxu3 %v5722_v0  ;;  %v3066_v40 = vmax.f32 %v3034_v34, 0.0  ;;  %v3001_v5 = vmul.f32 %v8337_v51, %v9032_v31  ;;  %v3000_v18 = vmul.f32 %v8511_v26, %v8425_v13  ;;  %v3002_v44 = vmul.f32 %v8511_v26, %v8433_v53  ;;  %v6042_v57 = vld [vmem:[#allocation10 + $0x218] sm:$0xf0]  ;;  %v5555_v61 = vld [vmem:[#allocation10 + $0x174] sm:$0xf0] }
 0x4fc   :  { %v3068_v9 = vmax.f32 %v3036_v55, 0.0  ;;  %v3067_v2 = vmax.f32 %v3035_v36, 0.0  ;;  %v3069_v32 = vmax.f32 %v3037_v16, 0.0  ;;  %v3038_v39 = vadd.f32 %v8522_v37, %v2999_v17  ;;  %v6018_v34 = vld [vmem:[#allocation10 + $0x15c] sm:$0xf] }
 0x4fd   :  { %v3040_v22 = vadd.f32 %v8522_v37, %v3001_v5  ;;  %v5470_v38 = vor.u32 %v6000_v49, %v5469_v10  ;;  %v3039_v28 = vadd.f32 %v8524_v23, %v3000_v18  ;;  %v3041_v51 = vadd.f32 %v8524_v23, %v3002_v44  ;;  %v5441_v37 = vld [vmem:[#allocation10 + $0x78] sm:$0xf]  ;;  %v5993_v23 = vld [vmem:[#allocation10 + $0x90] sm:$0xf0]  ;;  %v6074_v25 = vld [vmem:[#allocation10 + $0x31c] sm:$0xf] }
 0x4fe   :  { %3848 = vmatmul.bf16.gmra.mxu2 %v8615_v6  ;;  %3946 = vmatmul.bf16.gmra.mxu0 %v8615_v6  ;;  %v8641_v19 = vpack.c.bf16 %v3068_v9, %v3066_v40  ;;  %v8643_v7 = vpack.c.bf16 %v3069_v32, %v3067_v2  ;;  %v5694_v47 = vor.u32 %v6056_v12, %v5693_v58  ;;  %v3070_v13 = vmax.f32 %v3038_v39, 0.0  ;;  %v5779_v36 = vld [vmem:[#allocation10 + $0x334] sm:$0xf0]  ;;  %v6011_v40 = vld [vmem:[#allocation10 + $0x124] sm:$0xf] }
 0x4ff   :  { %3897 = vmatmul.bf16.gmra.mxu3 %v8621_v30  ;;  %3995 = vmatmul.bf16.gmra.mxu1 %v8621_v30  ;;  %v3072_v33 = vmax.f32 %v3040_v22, 0.0  ;;  %v3071_v62 = vmax.f32 %v3039_v28, 0.0  ;;  %v3073_v53 = vmax.f32 %v3041_v51, 0.0  ;;  %v5442_v1 = vor.u32 %v5993_v23, %v5441_v37  ;;  %v5527_v9 = vld [vmem:[#allocation10 + $0x13c] sm:$0xf0] }
 0x500   :  { %4035 = vmatpush.bf16.msrb.mxu2 %v5470_v38  ;;  %4084 = vmatpush.bf16.msrb.mxu3 %v5694_v47  ;;  %v5666_v45 = vor.u32 %v6049_v48, %v5665_v29  ;;  %v5414_v35 = vor.u32 %v5986_v54, %v5413_v14  ;;  %v5586_v20 = vor.u32 %v6025_v21, %v5583_v56  ;;  %v6067_v2 = vld [vmem:[#allocation10 + $0x2e4] sm:$0xf]  ;;  %v5751_v32 = vld [vmem:[#allocation10 + $0x2fc] sm:$0xf0]  ;;  %v6004_v31 = vld [vmem:[#allocation10 + $0xec] sm:$0xf] }
 0x501   :  { %v8661_v26 = vpack.c.bf16 %v3072_v33, %v3070_v13  ;;  %v8663_v46 = vpack.c.bf16 %v3073_v53, %v3071_v62  ;;  %v5810_v8 = vor.u32 %v6081_v60, %v5807_v59  ;;  %v5638_v55 = vor.u32 %v6042_v57, %v5637_v52  ;;  %v5499_v5 = vld [vmem:[#allocation10 + $0x104] sm:$0xf0]  ;;  %v6060_v18 = vld [vmem:[#allocation10 + $0x2ac] sm:$0xf]  ;;  %v5979_v39 = vld [vmem:[#allocation10 + $0x20] sm:$0xf0] }
 0x502   :  { %4129 = vmatpush.bf16.msra.mxu0 %v5586_v20  ;;  %v5558_v16 = vor.u32 %v6018_v34, %v5555_v61  ;;  %v5782_v0 = vor.u32 %v6074_v25, %v5779_v36  ;;  %v5530_v41 = vor.u32 %v6011_v40, %v5527_v9  ;;  %v5754_v17 = vor.u32 %v6067_v2, %v5751_v32  ;;  %v5723_v44 = vld [vmem:[#allocation10 + $0x2c4] sm:$0xf0]  ;;  %v5997_v22 = vld [vmem:[#allocation10 + $0xb4] sm:$0xf]  ;;  %v5471_v12 = vld [vmem:[#allocation10 + $0xcc] sm:$0xf0] }
 0x503   :  { %4178 = vmatpush.bf16.msra.mxu1 %v5810_v8  ;;  %v5502_v10 = vor.u32 %v6004_v31, %v5499_v5  ;;  %v5726_v49 = vor.u32 %v6060_v18, %v5723_v44  ;;  %v5385_v58 = vld [vmem:[#allocation10 + $0x8] sm:$0xf]  ;;  %v6053_v28 = vld [vmem:[#allocation10 + $0x274] sm:$0xf]  ;;  %v5695_v51 = vld [vmem:[#allocation10 + $0x28c] sm:$0xf0]  ;;  %v5474_v47 = vor.u32 %v5997_v22, %v5471_v12 }
 0x504   :  { %4036 = vmatpush.bf16.msrb.mxu2 %v5442_v1  ;;  %4085 = vmatpush.bf16.msrb.mxu3 %v5666_v45  ;;  %v5386_v38 = vor.u32 %v5979_v39, %v5385_v58  ;;  %v5698_v13 = vor.u32 %v6053_v28, %v5695_v51  ;;  %v5609_v33 = vld [vmem:[#allocation10 + $0x1c8] sm:$0xf]  ;;  %v6035_v62 = vld [vmem:[#allocation10 + $0x1e0] sm:$0xf0]  ;;  %v5990_v53 = vld [vmem:[#allocation10 + $0x7c] sm:$0xf] }
 0x505   :  { %v5610_v37 = vor.u32 %v6035_v62, %v5609_v33  ;;  %v5443_v23 = vld [vmem:[#allocation10 + $0x94] sm:$0xf0]  ;;  %v6046_v29 = vld [vmem:[#allocation10 + $0x23c] sm:$0xf]  ;;  %v5983_v14 = vld [vmem:[#allocation10 + $0x44] sm:$0xf] }
 0x506   :  { %4130 = vmatpush.bf16.msra.mxu0 %v5558_v16  ;;  %v5667_v1 = vld [vmem:[#allocation10 + $0x254] sm:$0xf0]  ;;  %v5446_v48 = vor.u32 %v5990_v53, %v5443_v23  ;;  %v5415_v54 = vld [vmem:[#allocation10 + $0x5c] sm:$0xf0]  ;;  %v6039_v21 = vld [vmem:[#allocation10 + $0x204] sm:$0xf] }
 0x507   :  { %4179 = vmatpush.bf16.msra.mxu1 %v5782_v0  ;;  %v5670_v45 = vor.u32 %v6046_v29, %v5667_v1  ;;  %v5418_v56 = vor.u32 %v5983_v14, %v5415_v54  ;;  %v5976_v59 = vld [vmem:[#allocation10 + $0xc] sm:$0xf]  ;;  %v5387_v20 = vld [vmem:[#allocation10 + $0x24] sm:$0xf0]  ;;  %v5589_v34 = vld [vmem:[#allocation10 + $0x198] sm:$0xf] }
 0x508   :  { %4037 = vmatpush.bf16.msrb.mxu2 %v5414_v35  ;;  %4086 = vmatpush.bf16.msrb.mxu3 %v5638_v55  ;;  %v5639_v35 = vld [vmem:[#allocation10 + $0x21c] sm:$0xf0]  ;;  %v6032_v8 = vld [vmem:[#allocation10 + $0x1cc] sm:$0xf]  ;;  %v5390_v52 = vor.u32 %v5976_v59, %v5387_v20  ;;  %v5611_v57 = vld [vmem:[#allocation10 + $0x1e4] sm:$0xf0] }
 0x509   :  { %v5642_v60 = vor.u32 %v6039_v21, %v5639_v35  ;;  %v6029_v55 = vld [vmem:[#allocation10 + $0x1b0] sm:$0xf0]  ;;  %v5614_v61 = vor.u32 %v6032_v8, %v5611_v57  ;;  %v5813_v36 = vld [vmem:[#allocation10 + $0x358] sm:$0xf]  ;;  %v120_v40 = vld [vmem:[#allocation11 + $0x20] sm:$0x77] }
 0x50a   :  { %4131 = vmatpush.bf16.msra.mxu0 %v5530_v41  ;;  %v5590_v25 = vor.u32 %v6029_v55, %v5589_v34  ;;  %v6085_v16 = vld [vmem:[#allocation10 + $0x370] sm:$0xf0]  ;;  %v3239_v9 = vperm.slane %v120_v40, 4  ;;  %v3238_v2 = vperm.slane %v120_v40, 0  ;;  %v5561_v32 = vld [vmem:[#allocation10 + $0x160] sm:$0xf] }
 0x50b   :  { %4180 = vmatpush.bf16.msra.mxu1 %v5754_v17  ;;  %v5814_v0 = vor.u32 %v6085_v16, %v5813_v36  ;;  %v6022_v41 = vld [vmem:[#allocation10 + $0x178] sm:$0xf0]  ;;  %v5785_v17 = vld [vmem:[#allocation10 + $0x320] sm:$0xf]  ;;  %v5533_v1 = vld [vmem:[#allocation10 + $0x128] sm:$0xf] }
 0x50c   :  { %4038 = vmatpush.bf16.msrb.mxu2 %v5386_v38  ;;  %4087 = vmatpush.bf16.msrb.mxu3 %v5610_v37  ;;  %v8685_v31 = vperm.slane %v3239_v9, 0  ;;  %v5562_v5 = vor.u32 %v6022_v41, %v5561_v32  ;;  %v6078_v18 = vld [vmem:[#allocation10 + $0x338] sm:$0xf0]  ;;  %v5757_v21 = vld [vmem:[#allocation10 + $0x2e8] sm:$0xf] }
 0x50d   :  { %v5786_v44 = vor.u32 %v6078_v18, %v5785_v17  ;;  %v6071_v35 = vld [vmem:[#allocation10 + $0x300] sm:$0xf0]  ;;  %v5505_v17 = vld [vmem:[#allocation10 + $0xf0] sm:$0xf] }
 0x50e   :  { %3853 = vmatmul.bf16.gmra.mxu2 %v8641_v19  ;;  %3951 = vmatmul.bf16.gmra.mxu0 %v8641_v19 }
 0x50f   :  { %3902 = vmatmul.bf16.gmra.mxu3 %v8643_v7  ;;  %4000 = vmatmul.bf16.gmra.mxu1 %v8643_v7 }
 0x510   :  { %4132 = vmatpush.bf16.msra.mxu0 %v5502_v10  ;;  %4181 = vmatpush.bf16.msra.mxu1 %v5726_v49  ;;  %v8688_v10 = vperm.slane %v3238_v2, 0 }
 0x511   :  { %4227 = vmatpush.bf16.msra.mxu2 %v5590_v25  ;;  %4276 = vmatpush.bf16.msra.mxu3 %v5814_v0 }
 0x514   :  { %4133 = vmatpush.bf16.msra.mxu0 %v5474_v47  ;;  %4182 = vmatpush.bf16.msra.mxu1 %v5698_v13 }
 0x515   :  { %4228 = vmatpush.bf16.msra.mxu2 %v5562_v5  ;;  %4277 = vmatpush.bf16.msra.mxu3 %v5786_v44  ;;  %v6008_v5 = vld [vmem:[#allocation10 + $0x108] sm:$0xf0] }
 0x518   :  { %4134 = vmatpush.bf16.msra.mxu0 %v5446_v48  ;;  %4183 = vmatpush.bf16.msra.mxu1 %v5670_v45  ;;  %v6015_v48 = vld [vmem:[#allocation10 + $0x140] sm:$0xf0] }
 0x519   :  { %v5534_v54 = vor.u32 %v6015_v48, %v5533_v1 }
 0x51b   :  { %4229 = vmatpush.bf16.msra.mxu2 %v5534_v54 }
 0x51c   :  { %4135 = vmatpush.bf16.msra.mxu0 %v5418_v56  ;;  %4184 = vmatpush.bf16.msra.mxu1 %v5642_v60  ;;  %v5758_v56 = vor.u32 %v6071_v35, %v5757_v21  ;;  %v5477_v35 = vld [vmem:[#allocation10 + $0xb8] sm:$0xf] }
 0x51e   :  { %3858 = vmatmul.bf16.gmra.mxu2 %v8661_v26  ;;  %3956 = vmatmul.bf16.gmra.mxu0 %v8661_v26 }
 0x51f   :  { %3907 = vmatmul.bf16.gmra.mxu3 %v8663_v46  ;;  %4005 = vmatmul.bf16.gmra.mxu1 %v8663_v46 }
 0x520   :  { %4136 = vmatpush.bf16.msra.mxu0 %v5390_v52  ;;  %4185 = vmatpush.bf16.msra.mxu1 %v5614_v61 }
 0x521   :  { %4278 = vmatpush.bf16.msra.mxu3 %v5758_v56  ;;  %v6001_v56 = vld [vmem:[#allocation10 + $0xd0] sm:$0xf0] }
 0x52e   :  { %3863 = vmatmul.bf16.gmra.mxu2 %v8598_v27  ;;  %3961 = vmatmul.bf16.gmra.mxu0 %v8598_v27 }
 0x52f   :  { %3912 = vmatmul.bf16.gmra.mxu3 %v8601_v63  ;;  %4010 = vmatmul.bf16.gmra.mxu1 %v8601_v63 }
 0x53e   :  { %3868 = vmatmul.bf16.gmra.mxu2 %v8608_v3  ;;  %3966 = vmatmul.bf16.gmra.mxu0 %v8608_v3 }
 0x53f   :  { %3917 = vmatmul.bf16.gmra.mxu3 %v8613_v4  ;;  %4015 = vmatmul.bf16.gmra.mxu1 %v8613_v4 }
 0x54e   :  { %3873 = vmatmul.bf16.gmra.mxu2 %v8617_v11  ;;  %3971 = vmatmul.bf16.gmra.mxu0 %v8617_v11 }
 0x54f   :  { %3922 = vmatmul.bf16.gmra.mxu3 %v8619_v50  ;;  %4020 = vmatmul.bf16.gmra.mxu1 %v8619_v50 }
 0x55e   :  { %3878 = vmatmul.bf16.gmra.mxu2 %v8624_v15  ;;  %3976 = vmatmul.bf16.gmra.mxu0 %v8624_v15 }
 0x55f   :  { %3927 = vmatmul.bf16.gmra.mxu3 %v8540_v24  ;;  %4025 = vmatmul.bf16.gmra.mxu1 %v8540_v24 }
 0x56b   :  { %v3942_v49 = vpop.f32.mrf.mxu0 }
 0x56c   :  { %v3943_v58 = vadd.f32 %v3942_v49, %v8685_v31  ;;  %v3991_v39 = vpop.f32.mrf.mxu1  ;;  %v5506_v49 = vor.u32 %v6008_v5, %v5505_v17 }
 0x56e   :  { %4039 = vmatmul.bf16.vlgmr.msrb.gmra.mxu2 %v8542_v43  ;;  %v3992_v38 = vadd.f32 %v3991_v39, %v3943_v58  ;;  %4137 = vmatmul.bf16.vlgmr.msra.gmra.mxu0 %v8542_v43  ;;  %v5729_v58 = vld [vmem:[#allocation10 + $0x2b0] sm:$0xf]  ;;  %v6064_v39 = vld [vmem:[#allocation10 + $0x2c8] sm:$0xf0] }
 0x56f   :  { %4088 = vmatmul.bf16.vlgmr.msrb.gmra.mxu3 %v8546_v42  ;;  %4186 = vmatmul.bf16.vlgmr.msra.gmra.mxu1 %v8546_v42 }
 0x570   :  { %6123 = vtanh.f32 %v3992_v38  ;;  %4230 = vmatpush.bf16.msra.mxu2 %v5506_v49 }
 0x571   :  { %v3844_v22 = vpop.f32.mrf.mxu2 }
 0x572   :  { %v3845_v12 = vadd.f32 %v3844_v22, %v8688_v10  ;;  %v3893_v28 = vpop.f32.mrf.mxu3  ;;  %v5730_v22 = vor.u32 %v6064_v39, %v5729_v58  ;;  %v5449_v39 = vld [vmem:[#allocation10 + $0x80] sm:$0xf] }
 0x573   :  { %v3944_v47 = vpop.f32.mrf.mxu0 }
 0x574   :  { %v3894_v51 = vadd.f32 %v3893_v28, %v3845_v12  ;;  %v3945_v13 = vadd.f32 %v3944_v47, %v8685_v31  ;;  %v3993_v33 = vpop.f32.mrf.mxu1  ;;  %4279 = vmatpush.bf16.msra.mxu3 %v5730_v22  ;;  %v5994_v22 = vld [vmem:[#allocation10 + $0x98] sm:$0xf0] }
 0x576   :  { %6125 = vtanh.f32 %v3894_v51  ;;  %v6124_v53 = vpop.eup %6123  ;;  %v3994_v37 = vadd.f32 %v3993_v33, %v3945_v13 }
 0x577   :  { %4634 = vst [vmem:[#allocation13 + $0x8] sm:$0xff] %v6124_v53 }
 0x578   :  { %6127 = vtanh.f32 %v3994_v37 }
 0x579   :  { %v3846_v62 = vpop.f32.mrf.mxu2 }
 0x57a   :  { %v3847_v23 = vadd.f32 %v3846_v62, %v8688_v10  ;;  %v3895_v29 = vpop.f32.mrf.mxu3 }
 0x57b   :  { %v3947_v60 = vpop.f32.mrf.mxu0 }
 0x57c   :  { %v6126_v45 = vpop.eup %6125  ;;  %v3896_v14 = vadd.f32 %v3895_v29, %v3847_v23  ;;  %v3948_v59 = vadd.f32 %v3947_v60, %v8685_v31  ;;  %v3996_v20 = vpop.f32.mrf.mxu1 }
 0x57d   :  { %4633 = vst [vmem:[#allocation13] sm:$0xff] %v6126_v45 }
 0x57e   :  { %6129 = vtanh.f32 %v3896_v14  ;;  %4044 = vmatmul.bf16.gmra.mxu2 %v8615_v6  ;;  %v6128_v52 = vpop.eup %6127  ;;  %v3997_v57 = vadd.f32 %v3996_v20, %v3948_v59  ;;  %4142 = vmatmul.bf16.gmra.mxu0 %v8615_v6  ;;  %v5478_v20 = vor.u32 %v6001_v56, %v5477_v35 }
 0x57f   :  { %4093 = vmatmul.bf16.gmra.mxu3 %v8621_v30  ;;  %4641 = vst [vmem:[#allocation13 + $0x40] sm:$0xff] %v6128_v52  ;;  %4191 = vmatmul.bf16.gmra.mxu1 %v8621_v30  ;;  %v6057_v52 = vld [vmem:[#allocation10 + $0x290] sm:$0xf0] }
 0x580   :  { %6131 = vtanh.f32 %v3997_v57  ;;  %4231 = vmatpush.bf16.msra.mxu2 %v5478_v20 }
 0x581   :  { %v3849_v8 = vpop.f32.mrf.mxu2 }
 0x582   :  { %v3850_v34 = vadd.f32 %v3849_v8, %v8688_v10  ;;  %v3898_v55 = vpop.f32.mrf.mxu3  ;;  %v5701_v8 = vld [vmem:[#allocation10 + $0x278] sm:$0xf] }
 0x583   :  { %v3949_v36 = vpop.f32.mrf.mxu0  ;;  %v5702_v57 = vor.u32 %v6057_v52, %v5701_v8  ;;  %v5421_v52 = vld [vmem:[#allocation10 + $0x48] sm:$0xf] }
 0x584   :  { %v6130_v61 = vpop.eup %6129  ;;  %v3899_v25 = vadd.f32 %v3898_v55, %v3850_v34  ;;  %v3950_v16 = vadd.f32 %v3949_v36, %v8685_v31  ;;  %v3998_v0 = vpop.f32.mrf.mxu1 }
 0x585   :  { %4640 = vst [vmem:[#allocation13 + $0x38] sm:$0xff] %v6130_v61  ;;  %4280 = vmatpush.bf16.msra.mxu3 %v5702_v57  ;;  %v5987_v57 = vld [vmem:[#allocation10 + $0x60] sm:$0xf0] }
 0x586   :  { %6133 = vtanh.f32 %v3899_v25  ;;  %v6132_v9 = vpop.eup %6131  ;;  %v3999_v2 = vadd.f32 %v3998_v0, %v3950_v16 }
 0x587   :  { %4648 = vst [vmem:[#allocation13 + $0x78] sm:$0xff] %v6132_v9 }
 0x588   :  { %6135 = vtanh.f32 %v3999_v2 }
 0x589   :  { %v3851_v40 = vpop.f32.mrf.mxu2 }
 0x58a   :  { %v3852_v32 = vadd.f32 %v3851_v40, %v8688_v10  ;;  %v3900_v41 = vpop.f32.mrf.mxu3 }
 0x58b   :  { %v3952_v38 = vpop.f32.mrf.mxu0 }
 0x58c   :  { %v6134_v18 = vpop.eup %6133  ;;  %v3901_v44 = vadd.f32 %v3900_v41, %v3852_v32  ;;  %v3953_v12 = vadd.f32 %v3952_v38, %v8685_v31  ;;  %v4001_v28 = vpop.f32.mrf.mxu1 }
 0x58d   :  { %4647 = vst [vmem:[#allocation13 + $0x70] sm:$0xff] %v6134_v18 }
 0x58e   :  { %6137 = vtanh.f32 %v3901_v44  ;;  %4049 = vmatmul.bf16.gmra.mxu2 %v8641_v19  ;;  %v6136_v47 = vpop.eup %6135  ;;  %v4002_v13 = vadd.f32 %v4001_v28, %v3953_v12  ;;  %4147 = vmatmul.bf16.gmra.mxu0 %v8641_v19  ;;  %v5450_v28 = vor.u32 %v5994_v22, %v5449_v39 }
 0x58f   :  { %4098 = vmatmul.bf16.gmra.mxu3 %v8643_v7  ;;  %4655 = vst [vmem:[#allocation13 + $0xb0] sm:$0xff] %v6136_v47  ;;  %4196 = vmatmul.bf16.gmra.mxu1 %v8643_v7  ;;  %v6050_v47 = vld [vmem:[#allocation10 + $0x258] sm:$0xf0] }
 0x590   :  { %6139 = vtanh.f32 %v4002_v13  ;;  %4232 = vmatpush.bf16.msra.mxu2 %v5450_v28 }
 0x591   :  { %v3854_v51 = vpop.f32.mrf.mxu2 }
 0x592   :  { %v3855_v33 = vadd.f32 %v3854_v51, %v8688_v10  ;;  %v3903_v62 = vpop.f32.mrf.mxu3  ;;  %v5673_v51 = vld [vmem:[#allocation10 + $0x240] sm:$0xf] }
 0x593   :  { %v3954_v23 = vpop.f32.mrf.mxu0  ;;  %v5674_v13 = vor.u32 %v6050_v47, %v5673_v51 }
 0x594   :  { %v6138_v53 = vpop.eup %6137  ;;  %v3904_v37 = vadd.f32 %v3903_v62, %v3855_v33  ;;  %v3955_v29 = vadd.f32 %v3954_v23, %v8685_v31  ;;  %v4003_v1 = vpop.f32.mrf.mxu1 }
 0x595   :  { %4654 = vst [vmem:[#allocation13 + $0xa8] sm:$0xff] %v6138_v53  ;;  %4281 = vmatpush.bf16.msra.mxu3 %v5674_v13  ;;  %v6075_v13 = vld [vmem:[#allocation10 + $0x324] sm:$0xf] }
 0x596   :  { %6141 = vtanh.f32 %v3904_v37  ;;  %v6140_v45 = vpop.eup %6139  ;;  %v4004_v14 = vadd.f32 %v4003_v1, %v3955_v29 }
 0x597   :  { %4662 = vst [vmem:[#allocation13 + $0xe8] sm:$0xff] %v6140_v45 }
 0x598   :  { %6143 = vtanh.f32 %v4004_v14 }
 0x599   :  { %v3856_v48 = vpop.f32.mrf.mxu2 }
 0x59a   :  { %v3857_v54 = vadd.f32 %v3856_v48, %v8688_v10  ;;  %v3905_v21 = vpop.f32.mrf.mxu3 }
 0x59b   :  { %v3957_v34 = vpop.f32.mrf.mxu0 }
 0x59c   :  { %v6142_v60 = vpop.eup %6141  ;;  %v3906_v59 = vadd.f32 %v3905_v21, %v3857_v54  ;;  %v3958_v55 = vadd.f32 %v3957_v34, %v8685_v31  ;;  %v4006_v61 = vpop.f32.mrf.mxu1 }
 0x59d   :  { %4661 = vst [vmem:[#allocation13 + $0xe0] sm:$0xff] %v6142_v60 }
 0x59e   :  { %6145 = vtanh.f32 %v3906_v59  ;;  %4054 = vmatmul.bf16.gmra.mxu2 %v8661_v26  ;;  %v6144_v36 = vpop.eup %6143  ;;  %v4007_v16 = vadd.f32 %v4006_v61, %v3958_v55  ;;  %4152 = vmatmul.bf16.gmra.mxu0 %v8661_v26  ;;  %v5422_v61 = vor.u32 %v5987_v57, %v5421_v52 }
 0x59f   :  { %4103 = vmatmul.bf16.gmra.mxu3 %v8663_v46  ;;  %4669 = vst [vmem:[#allocation13 + $0x120] sm:$0xff] %v6144_v36  ;;  %4201 = vmatmul.bf16.gmra.mxu1 %v8663_v46  ;;  %v5591_v36 = vld [vmem:[#allocation10 + $0x1b4] sm:$0xf0] }
 0x5a0   :  { %6147 = vtanh.f32 %v4007_v16  ;;  %v6082_v16 = vld [vmem:[#allocation10 + $0x35c] sm:$0xf]  ;;  %4233 = vmatpush.bf16.msra.mxu2 %v5422_v61  ;;  %v5731_v61 = vld [vmem:[#allocation10 + $0x2cc] sm:$0xf0] }
 0x5a1   :  { %v3859_v25 = vpop.f32.mrf.mxu2 }
 0x5a2   :  { %v3860_v0 = vadd.f32 %v3859_v25, %v8688_v10  ;;  %v3908_v40 = vpop.f32.mrf.mxu3  ;;  %v6026_v25 = vld [vmem:[#allocation10 + $0x19c] sm:$0xf] }
 0x5a3   :  { %v3959_v32 = vpop.f32.mrf.mxu0 }
 0x5a4   :  { %v6146_v9 = vpop.eup %6145  ;;  %v3909_v2 = vadd.f32 %v3908_v40, %v3860_v0  ;;  %v3960_v41 = vadd.f32 %v3959_v32, %v8685_v31  ;;  %v4008_v17 = vpop.f32.mrf.mxu1  ;;  %v5594_v0 = vor.u32 %v6026_v25, %v5591_v36  ;;  %v5815_v40 = vld [vmem:[#allocation10 + $0x374] sm:$0xf0]  ;;  %v6043_v32 = vld [vmem:[#allocation10 + $0x220] sm:$0xf0]  ;;  %v5393_v25 = vld [vmem:[#allocation10 + $0x10] sm:$0xf] }
 0x5a5   :  { %4668 = vst [vmem:[#allocation13 + $0x118] sm:$0xff] %v6146_v9  ;;  %v5645_v9 = vld [vmem:[#allocation10 + $0x208] sm:$0xf] }
 0x5a6   :  { %6149 = vtanh.f32 %v3909_v2  ;;  %v6148_v18 = vpop.eup %6147  ;;  %v4009_v44 = vadd.f32 %v4008_v17, %v3960_v41  ;;  %v5818_v2 = vor.u32 %v6082_v16, %v5815_v40  ;;  %v5646_v17 = vor.u32 %v6043_v32, %v5645_v9  ;;  %4325 = vmatpush.bf16.msrb.mxu0 %v5594_v0  ;;  %v5980_v16 = vld [vmem:[#allocation10 + $0x28] sm:$0xf0]  ;;  %v5998_v0 = vld [vmem:[#allocation10 + $0xbc] sm:$0xf]  ;;  %v5479_v9 = vld [vmem:[#allocation10 + $0xd4] sm:$0xf0] }
 0x5a7   :  { %4676 = vst [vmem:[#allocation13 + $0x158] sm:$0xff] %v6148_v18  ;;  %v5394_v40 = vor.u32 %v5980_v16, %v5393_v25  ;;  %v5703_v32 = vld [vmem:[#allocation10 + $0x294] sm:$0xf0]  ;;  %v6033_v16 = vld [vmem:[#allocation10 + $0x1d4] sm:$0xf] }
 0x5a8   :  { %6151 = vtanh.f32 %v4009_v44  ;;  %4374 = vmatpush.bf16.msrb.mxu1 %v5818_v2  ;;  %4282 = vmatpush.bf16.msra.mxu3 %v5646_v17  ;;  %v6054_v2 = vld [vmem:[#allocation10 + $0x27c] sm:$0xf]  ;;  %v5482_v17 = vor.u32 %v5998_v0, %v5479_v9  ;;  %v5619_v0 = vld [vmem:[#allocation10 + $0x1ec] sm:$0xf0] }
 0x5a9   :  { %v3861_v5 = vpop.f32.mrf.mxu2  ;;  %4234 = vmatpush.bf16.msra.mxu2 %v5394_v40  ;;  %v5597_v40 = vld [vmem:[#allocation10 + $0x1a0] sm:$0xf]  ;;  %v5622_v9 = vor.u32 %v6033_v16, %v5619_v0 }
 0x5aa   :  { %v3862_v49 = vadd.f32 %v3861_v5, %v8688_v10  ;;  %v3910_v58 = vpop.f32.mrf.mxu3 }
 0x5ab   :  { %v3962_v33 = vpop.f32.mrf.mxu0 }
 0x5ac   :  { %v6150_v38 = vpop.eup %6149  ;;  %v3911_v12 = vadd.f32 %v3910_v58, %v3862_v49  ;;  %v3963_v62 = vadd.f32 %v3962_v33, %v8685_v31  ;;  %v4011_v53 = vpop.f32.mrf.mxu1  ;;  %v5787_v33 = vld [vmem:[#allocation10 + $0x33c] sm:$0xf0] }
 0x5ad   :  { %4675 = vst [vmem:[#allocation13 + $0x150] sm:$0xff] %v6150_v38  ;;  %v6019_v38 = vld [vmem:[#allocation10 + $0x164] sm:$0xf] }
 0x5ae   :  { %6153 = vtanh.f32 %v3911_v12  ;;  %4059 = vmatmul.bf16.gmra.mxu2 %v8598_v27  ;;  %v6152_v23 = vpop.eup %6151  ;;  %v4012_v29 = vadd.f32 %v4011_v53, %v3963_v62  ;;  %4157 = vmatmul.bf16.gmra.mxu0 %v8598_v27  ;;  %v5563_v12 = vld [vmem:[#allocation10 + $0x17c] sm:$0xf0]  ;;  %v6012_v62 = vld [vmem:[#allocation10 + $0x12c] sm:$0xf]  ;;  %v5790_v53 = vor.u32 %v6075_v13, %v5787_v33 }
 0x5af   :  { %4108 = vmatmul.bf16.gmra.mxu3 %v8601_v63  ;;  %4683 = vst [vmem:[#allocation13 + $0x190] sm:$0xff] %v6152_v23  ;;  %4206 = vmatmul.bf16.gmra.mxu1 %v8601_v63  ;;  %v5566_v47 = vor.u32 %v6019_v38, %v5563_v12  ;;  %v6068_v23 = vld [vmem:[#allocation10 + $0x2ec] sm:$0xf]  ;;  %v5451_v13 = vld [vmem:[#allocation10 + $0x9c] sm:$0xf0] }
 0x5b0   :  { %6155 = vtanh.f32 %v4012_v29  ;;  %4375 = vmatpush.bf16.msrb.mxu1 %v5790_v53 }
 0x5b1   :  { %v3864_v37 = vpop.f32.mrf.mxu2  ;;  %4326 = vmatpush.bf16.msrb.mxu0 %v5566_v47  ;;  %v5991_v47 = vld [vmem:[#allocation10 + $0x84] sm:$0xf] }
 0x5b2   :  { %v3865_v1 = vadd.f32 %v3864_v37, %v8688_v10  ;;  %v3913_v48 = vpop.f32.mrf.mxu3  ;;  %v5535_v37 = vld [vmem:[#allocation10 + $0x144] sm:$0xf0]  ;;  %v5454_v53 = vor.u32 %v5991_v47, %v5451_v13 }
 0x5b3   :  { %v3964_v54 = vpop.f32.mrf.mxu0  ;;  %v5538_v29 = vor.u32 %v6012_v62, %v5535_v37  ;;  %v6047_v37 = vld [vmem:[#allocation10 + $0x244] sm:$0xf]  ;;  %v121_v47 = vld [vmem:[#allocation11 + $0x28] sm:$0x77] }
 0x5b4   :  { %v6154_v45 = vpop.eup %6153  ;;  %v3914_v14 = vadd.f32 %v3913_v48, %v3865_v1  ;;  %v3965_v21 = vadd.f32 %v3964_v54, %v8685_v31  ;;  %v4013_v35 = vpop.f32.mrf.mxu1  ;;  %v5759_v1 = vld [vmem:[#allocation10 + $0x304] sm:$0xf0] }
 0x5b5   :  { %4682 = vst [vmem:[#allocation13 + $0x188] sm:$0xff] %v6154_v45  ;;  %v5762_v45 = vor.u32 %v6068_v23, %v5759_v1  ;;  %4327 = vmatpush.bf16.msrb.mxu0 %v5538_v29  ;;  %v5675_v23 = vld [vmem:[#allocation10 + $0x25c] sm:$0xf0]  ;;  %v5984_v29 = vld [vmem:[#allocation10 + $0x4c] sm:$0xf] }
 0x5b6   :  { %6157 = vtanh.f32 %v3914_v14  ;;  %v6156_v60 = vpop.eup %6155  ;;  %v4014_v59 = vadd.f32 %v4013_v35, %v3965_v21  ;;  %v5678_v1 = vor.u32 %v6047_v37, %v5675_v23 }
 0x5b7   :  { %4690 = vst [vmem:[#allocation13 + $0x1c8] sm:$0xff] %v6156_v60  ;;  %4376 = vmatpush.bf16.msrb.mxu1 %v5762_v45  ;;  %v6040_v45 = vld [vmem:[#allocation10 + $0x20c] sm:$0xf] }
 0x5b8   :  { %6159 = vtanh.f32 %v4014_v59 }
 0x5b9   :  { %v3866_v56 = vpop.f32.mrf.mxu2 }
 0x5ba   :  { %v3867_v20 = vadd.f32 %v3866_v56, %v8688_v10  ;;  %v3915_v8 = vpop.f32.mrf.mxu3 }
 0x5bb   :  { %v3967_v41 = vpop.f32.mrf.mxu0 }
 0x5bc   :  { %v6158_v34 = vpop.eup %6157  ;;  %v3916_v55 = vadd.f32 %v3915_v8, %v3867_v20  ;;  %v3968_v5 = vadd.f32 %v3967_v41, %v8685_v31  ;;  %v4016_v18 = vpop.f32.mrf.mxu1  ;;  %v6005_v20 = vld [vmem:[#allocation10 + $0xf4] sm:$0xf]  ;;  %v5507_v8 = vld [vmem:[#allocation10 + $0x10c] sm:$0xf0] }
 0x5bd   :  { %4689 = vst [vmem:[#allocation13 + $0x1c0] sm:$0xff] %v6158_v34  ;;  %v5510_v34 = vor.u32 %v6005_v20, %v5507_v8 }
 0x5be   :  { %6161 = vtanh.f32 %v3916_v55  ;;  %4064 = vmatmul.bf16.gmra.mxu2 %v8608_v3  ;;  %v6160_v49 = vpop.eup %6159  ;;  %v4017_v58 = vadd.f32 %v4016_v18, %v3968_v5  ;;  %4162 = vmatmul.bf16.gmra.mxu0 %v8608_v3  ;;  %v6061_v55 = vld [vmem:[#allocation10 + $0x2b4] sm:$0xf]  ;;  %v5617_v5 = vld [vmem:[#allocation10 + $0x1d0] sm:$0xf]  ;;  %v6036_v18 = vld [vmem:[#allocation10 + $0x1e8] sm:$0xf0] }
 0x5bf   :  { %4113 = vmatmul.bf16.gmra.mxu3 %v8613_v4  ;;  %4697 = vst [vmem:[#allocation13 + $0x200] sm:$0xff] %v6160_v49  ;;  %4211 = vmatmul.bf16.gmra.mxu1 %v8613_v4  ;;  %v5734_v36 = vor.u32 %v6061_v55, %v5731_v61  ;;  %v5395_v55 = vld [vmem:[#allocation10 + $0x2c] sm:$0xf0] }
 0x5c0   :  { %6163 = vtanh.f32 %v4017_v58  ;;  %4328 = vmatpush.bf16.msrb.mxu0 %v5510_v34  ;;  %v5706_v58 = vor.u32 %v6054_v2, %v5703_v32  ;;  %v5977_v34 = vld [vmem:[#allocation10 + $0x14] sm:$0xf]  ;;  %v6030_v2 = vld [vmem:[#allocation10 + $0x1b8] sm:$0xf0]  ;;  %v5821_v32 = vld [vmem:[#allocation10 + $0x360] sm:$0xf] }
 0x5c1   :  { %v3869_v44 = vpop.f32.mrf.mxu2  ;;  %4377 = vmatpush.bf16.msrb.mxu1 %v5734_v36  ;;  %v5398_v36 = vor.u32 %v5977_v34, %v5395_v55 }
 0x5c2   :  { %v3870_v39 = vadd.f32 %v3869_v44, %v8688_v10  ;;  %v3918_v22 = vpop.f32.mrf.mxu3 }
 0x5c3   :  { %v3969_v48 = vpop.f32.mrf.mxu0 }
 0x5c4   :  { %v6162_v28 = vpop.eup %6161  ;;  %v3919_v51 = vadd.f32 %v3918_v22, %v3870_v39  ;;  %v3970_v14 = vadd.f32 %v3969_v48, %v8685_v31  ;;  %v4018_v54 = vpop.f32.mrf.mxu1  ;;  %v5618_v39 = vor.u32 %v6036_v18, %v5617_v5  ;;  %4329 = vmatpush.bf16.msrb.mxu0 %v5482_v17  ;;  %v5423_v48 = vld [vmem:[#allocation10 + $0x64] sm:$0xf0]  ;;  %v6086_v17 = vld [vmem:[#allocation10 + $0x378] sm:$0xf0] }
 0x5c5   :  { %4696 = vst [vmem:[#allocation13 + $0x1f8] sm:$0xff] %v6162_v28  ;;  %4378 = vmatpush.bf16.msrb.mxu1 %v5706_v58  ;;  %v5822_v18 = vor.u32 %v6086_v17, %v5821_v32 }
 0x5c6   :  { %6165 = vtanh.f32 %v3919_v51  ;;  %v6164_v35 = vpop.eup %6163  ;;  %v4019_v56 = vadd.f32 %v4018_v54, %v3970_v14  ;;  %4283 = vmatpush.bf16.msra.mxu3 %v5618_v39  ;;  %v5647_v14 = vld [vmem:[#allocation10 + $0x224] sm:$0xf0] }
 0x5c7   :  { %4704 = vst [vmem:[#allocation13 + $0x238] sm:$0xff] %v6164_v35 }
 0x5c8   :  { %6167 = vtanh.f32 %v4019_v56  ;;  %4330 = vmatpush.bf16.msrb.mxu0 %v5454_v53  ;;  %v3241_v53 = vperm.slane %v121_v47, 4 }
 0x5c9   :  { %v3871_v21 = vpop.f32.mrf.mxu2  ;;  %4379 = vmatpush.bf16.msrb.mxu1 %v5678_v1 }
 0x5ca   :  { %v3872_v60 = vadd.f32 %v3871_v21, %v8688_v10  ;;  %v3920_v59 = vpop.f32.mrf.mxu3  ;;  %v5426_v21 = vor.u32 %v5984_v29, %v5423_v48  ;;  %4472 = vmatpush.bf16.msrb.mxu3 %v5822_v18 }
 0x5cb   :  { %v3972_v41 = vpop.f32.mrf.mxu0 }
 0x5cc   :  { %v6166_v52 = vpop.eup %6165  ;;  %v3921_v57 = vadd.f32 %v3920_v59, %v3872_v60  ;;  %v3973_v44 = vadd.f32 %v3972_v41, %v8685_v31  ;;  %v4021_v49 = vpop.f32.mrf.mxu1  ;;  %v5650_v60 = vor.u32 %v6040_v45, %v5647_v14  ;;  %4331 = vmatpush.bf16.msrb.mxu0 %v5426_v21  ;;  %v5598_v41 = vor.u32 %v6030_v2, %v5597_v40  ;;  %v5569_v14 = vld [vmem:[#allocation10 + $0x168] sm:$0xf] }
 0x5cd   :  { %4703 = vst [vmem:[#allocation13 + $0x230] sm:$0xff] %v6166_v52  ;;  %v3240_v45 = vperm.slane %v121_v47, 0 }
 0x5ce   :  { %6169 = vtanh.f32 %v3921_v57  ;;  %4069 = vmatmul.bf16.gmra.mxu2 %v8617_v11  ;;  %v6168_v38 = vpop.eup %6167  ;;  %v4022_v12 = vadd.f32 %v4021_v49, %v3973_v44  ;;  %4167 = vmatmul.bf16.gmra.mxu0 %v8617_v11 }
 0x5cf   :  { %4118 = vmatmul.bf16.gmra.mxu3 %v8619_v50  ;;  %4711 = vst [vmem:[#allocation13 + $0x270] sm:$0xff] %v6168_v38  ;;  %4216 = vmatmul.bf16.gmra.mxu1 %v8619_v50 }
 0x5d0   :  { %6171 = vtanh.f32 %v4022_v12  ;;  %4380 = vmatpush.bf16.msrb.mxu1 %v5650_v60  ;;  %4332 = vmatpush.bf16.msrb.mxu0 %v5398_v36 }
 0x5d1   :  { %v3874_v22 = vpop.f32.mrf.mxu2  ;;  %4423 = vmatpush.bf16.msrb.mxu2 %v5598_v41 }
 0x5d2   :  { %v3875_v28 = vadd.f32 %v3874_v22, %v8688_v10  ;;  %v3923_v51 = vpop.f32.mrf.mxu3 }
 0x5d3   :  { %v3974_v54 = vpop.f32.mrf.mxu0 }
 0x5d4   :  { %v6170_v33 = vpop.eup %6169  ;;  %v3924_v62 = vadd.f32 %v3923_v51, %v3875_v28  ;;  %v3975_v35 = vadd.f32 %v3974_v54, %v8685_v31  ;;  %v4023_v56 = vpop.f32.mrf.mxu1  ;;  %4381 = vmatpush.bf16.msrb.mxu1 %v5622_v9  ;;  %v6023_v54 = vld [vmem:[#allocation10 + $0x180] sm:$0xf0] }
 0x5d5   :  { %4710 = vst [vmem:[#allocation13 + $0x268] sm:$0xff] %v6170_v33  ;;  %v5570_v60 = vor.u32 %v6023_v54, %v5569_v14 }
 0x5d6   :  { %6173 = vtanh.f32 %v3924_v62  ;;  %v6172_v20 = vpop.eup %6171  ;;  %v4024_v8 = vadd.f32 %v4023_v56, %v3975_v35  ;;  %v8753_v56 = vperm.slane %v3241_v53, 0 }
 0x5d7   :  { %4718 = vst [vmem:[#allocation13 + $0x2a8] sm:$0xff] %v6172_v20  ;;  %4424 = vmatpush.bf16.msrb.mxu2 %v5570_v60 }
 0x5d8   :  { %6175 = vtanh.f32 %v4024_v8  ;;  %v8756_v8 = vperm.slane %v3240_v45, 0 }
 0x5d9   :  { %v3876_v59 = vpop.f32.mrf.mxu2 }
 0x5da   :  { %v3877_v52 = vadd.f32 %v3876_v59, %v8688_v10  ;;  %v3925_v57 = vpop.f32.mrf.mxu3  ;;  %v5793_v59 = vld [vmem:[#allocation10 + $0x328] sm:$0xf] }
 0x5db   :  { %v3977_v5 = vpop.f32.mrf.mxu0 }
 0x5dc   :  { %v6174_v61 = vpop.eup %6173  ;;  %v3926_v25 = vadd.f32 %v3925_v57, %v3877_v52  ;;  %v3978_v44 = vadd.f32 %v3977_v5, %v8685_v31  ;;  %v4026_v49 = vpop.f32.mrf.mxu1 }
 0x5dd   :  { %4717 = vst [vmem:[#allocation13 + $0x2a0] sm:$0xff] %v6174_v61 }
 0x5de   :  { %6177 = vtanh.f32 %v3926_v25  ;;  %4074 = vmatmul.bf16.gmra.mxu2 %v8624_v15  ;;  %v6176_v39 = vpop.eup %6175  ;;  %v4027_v22 = vadd.f32 %v4026_v49, %v3978_v44  ;;  %4172 = vmatmul.bf16.gmra.mxu0 %v8624_v15  ;;  %v5541_v44 = vld [vmem:[#allocation10 + $0x130] sm:$0xf]  ;;  %v6016_v49 = vld [vmem:[#allocation10 + $0x148] sm:$0xf0] }
 0x5df   :  { %4123 = vmatmul.bf16.gmra.mxu3 %v8540_v24  ;;  %4725 = vst [vmem:[#allocation13 + $0x2e0] sm:$0xff] %v6176_v39  ;;  %4221 = vmatmul.bf16.gmra.mxu1 %v8540_v24 }
 0x5e0   :  { %6179 = vtanh.f32 %v4027_v22  ;;  %v5542_v22 = vor.u32 %v6016_v49, %v5541_v44 }
 0x5e1   :  { %v3879_v58 = vpop.f32.mrf.mxu2 }
 0x5e2   :  { %v3880_v38 = vadd.f32 %v3879_v58, %v8688_v10  ;;  %v3928_v12 = vpop.f32.mrf.mxu3  ;;  %4425 = vmatpush.bf16.msrb.mxu2 %v5542_v22 }
 0x5e3   :  { %v3979_v13 = vpop.f32.mrf.mxu0 }
 0x5e4   :  { %v6178_v28 = vpop.eup %6177  ;;  %v3929_v51 = vadd.f32 %v3928_v12, %v3880_v38  ;;  %v3980_v33 = vadd.f32 %v3979_v13, %v8685_v31  ;;  %v4028_v62 = vpop.f32.mrf.mxu1  ;;  %v6079_v31 = vld [vmem:[#allocation10 + $0x340] sm:$0xf0]  ;;  %v5765_v38 = vld [vmem:[#allocation10 + $0x2f0] sm:$0xf]  ;;  %v6072_v12 = vld [vmem:[#allocation10 + $0x308] sm:$0xf0] }
 0x5e5   :  { %4724 = vst [vmem:[#allocation13 + $0x2d8] sm:$0xff] %v6178_v28  ;;  %v5794_v20 = vor.u32 %v6079_v31, %v5793_v59  ;;  %v5766_v28 = vor.u32 %v6072_v12, %v5765_v38  ;;  %v5513_v31 = vld [vmem:[#allocation10 + $0xf8] sm:$0xf]  ;;  %v5485_v12 = vld [vmem:[#allocation10 + $0xc0] sm:$0xf] }
 0x5e6   :  { %6181 = vtanh.f32 %v3929_v51  ;;  %v6180_v23 = vpop.eup %6179  ;;  %v4029_v29 = vadd.f32 %v4028_v62, %v3980_v33 }
 0x5e7   :  { %4732 = vst [vmem:[#allocation13 + $0x318] sm:$0xff] %v6180_v23  ;;  %4473 = vmatpush.bf16.msrb.mxu3 %v5794_v20  ;;  %v6009_v20 = vld [vmem:[#allocation10 + $0x110] sm:$0xf0] }
 0x5e8   :  { %6183 = vtanh.f32 %v4029_v29 }
 0x5e9   :  { %v3881_v37 = vpop.f32.mrf.mxu2 }
 0x5ea   :  { %v3882_v1 = vadd.f32 %v3881_v37, %v8688_v10  ;;  %v3930_v48 = vpop.f32.mrf.mxu3 }
 0x5eb   :  { %v4138_v10 = vpop.f32.mrf.mxu0  ;;  %4474 = vmatpush.bf16.msrb.mxu3 %v5766_v28  ;;  %v6002_v28 = vld [vmem:[#allocation10 + $0xd8] sm:$0xf0] }
 0x5ec   :  { %v6182_v21 = vpop.eup %6181  ;;  %v3931_v35 = vadd.f32 %v3930_v48, %v3882_v1  ;;  %v4139_v52 = vadd.f32 %v4138_v10, %v8753_v56  ;;  %v4187_v57 = vpop.f32.mrf.mxu1 }
 0x5ed   :  { %4731 = vst [vmem:[#allocation13 + $0x310] sm:$0xff] %v6182_v21 }
 0x5ee   :  { %6185 = vtanh.f32 %v3931_v35  ;;  %4235 = vmatmul.bf16.vlgmr.msra.gmra.mxu2 %v8542_v43  ;;  %v6184_v55 = vpop.eup %6183  ;;  %v4188_v61 = vadd.f32 %v4187_v57, %v4139_v52  ;;  %4333 = vmatmul.bf16.vlgmr.msrb.gmra.mxu0 %v8542_v43  ;;  %v5514_v57 = vor.u32 %v6009_v20, %v5513_v31 }
 0x5ef   :  { %4284 = vmatmul.bf16.vlgmr.msra.gmra.mxu3 %v8546_v42  ;;  %4739 = vst [vmem:[#allocation13 + $0x350] sm:$0xff] %v6184_v55  ;;  %4382 = vmatmul.bf16.vlgmr.msrb.gmra.mxu1 %v8546_v42  ;;  %v6065_v55 = vld [vmem:[#allocation10 + $0x2d0] sm:$0xf0] }
 0x5f0   :  { %6187 = vtanh.f32 %v4188_v61  ;;  %4426 = vmatpush.bf16.msrb.mxu2 %v5514_v57 }
 0x5f1   :  { %v4040_v34 = vpop.f32.mrf.mxu2 }
 0x5f2   :  { %v4041_v25 = vadd.f32 %v4040_v34, %v8756_v8  ;;  %v4089_v36 = vpop.f32.mrf.mxu3  ;;  %v5737_v34 = vld [vmem:[#allocation10 + $0x2b8] sm:$0xf] }
 0x5f3   :  { %v4140_v40 = vpop.f32.mrf.mxu0  ;;  %v5738_v61 = vor.u32 %v6065_v55, %v5737_v34  ;;  %v5457_v55 = vld [vmem:[#allocation10 + $0x88] sm:$0xf] }
 0x5f4   :  { %v6186_v16 = vpop.eup %6185  ;;  %v4090_v0 = vadd.f32 %v4089_v36, %v4041_v25  ;;  %v4141_v9 = vadd.f32 %v4140_v40, %v8753_v56  ;;  %v4189_v2 = vpop.f32.mrf.mxu1 }
 0x5f5   :  { %4738 = vst [vmem:[#allocation13 + $0x348] sm:$0xff] %v6186_v16  ;;  %4475 = vmatpush.bf16.msrb.mxu3 %v5738_v61  ;;  %v5995_v61 = vld [vmem:[#allocation10 + $0xa0] sm:$0xf0] }
 0x5f6   :  { %6189 = vtanh.f32 %v4090_v0  ;;  %v6188_v41 = vpop.eup %6187  ;;  %v4190_v17 = vadd.f32 %v4189_v2, %v4141_v9 }
 0x5f7   :  { %4636 = vst [vmem:[#allocation13 + $0x18] sm:$0xff] %v6188_v41 }
 0x5f8   :  { %6191 = vtanh.f32 %v4190_v17 }
 0x5f9   :  { %v4042_v32 = vpop.f32.mrf.mxu2 }
 0x5fa   :  { %v4043_v5 = vadd.f32 %v4042_v32, %v8756_v8  ;;  %v4091_v18 = vpop.f32.mrf.mxu3 }
 0x5fb   :  { %v4143_v51 = vpop.f32.mrf.mxu0 }
 0x5fc   :  { %v6190_v58 = vpop.eup %6189  ;;  %v4092_v39 = vadd.f32 %v4091_v18, %v4043_v5  ;;  %v4144_v47 = vadd.f32 %v4143_v51, %v8753_v56  ;;  %v4192_v13 = vpop.f32.mrf.mxu1 }
 0x5fd   :  { %4635 = vst [vmem:[#allocation13 + $0x10] sm:$0xff] %v6190_v58 }
 0x5fe   :  { %6193 = vtanh.f32 %v4092_v39  ;;  %4240 = vmatmul.bf16.gmra.mxu2 %v8615_v6  ;;  %v6192_v62 = vpop.eup %6191  ;;  %v4193_v53 = vadd.f32 %v4192_v13, %v4144_v47  ;;  %4338 = vmatmul.bf16.gmra.mxu0 %v8615_v6  ;;  %v5486_v13 = vor.u32 %v6002_v28, %v5485_v12 }
 0x5ff   :  { %4289 = vmatmul.bf16.gmra.mxu3 %v8621_v30  ;;  %4643 = vst [vmem:[#allocation13 + $0x50] sm:$0xff] %v6192_v62  ;;  %4387 = vmatmul.bf16.gmra.mxu1 %v8621_v30  ;;  %v6058_v62 = vld [vmem:[#allocation10 + $0x298] sm:$0xf0] }
 0x600   :  { %6195 = vtanh.f32 %v4193_v53  ;;  %4427 = vmatpush.bf16.msrb.mxu2 %v5486_v13 }
 0x601   :  { %v4045_v33 = vpop.f32.mrf.mxu2 }
 0x602   :  { %v4046_v37 = vadd.f32 %v4045_v33, %v8756_v8  ;;  %v4094_v23 = vpop.f32.mrf.mxu3  ;;  %v5709_v33 = vld [vmem:[#allocation10 + $0x280] sm:$0xf] }
 0x603   :  { %v4145_v48 = vpop.f32.mrf.mxu0  ;;  %v5710_v53 = vor.u32 %v6058_v62, %v5709_v33  ;;  %v5429_v62 = vld [vmem:[#allocation10 + $0x50] sm:$0xf] }
 0x604   :  { %v6194_v29 = vpop.eup %6193  ;;  %v4095_v1 = vadd.f32 %v4094_v23, %v4046_v37  ;;  %v4146_v45 = vadd.f32 %v4145_v48, %v8753_v56  ;;  %v4194_v14 = vpop.f32.mrf.mxu1 }
 0x605   :  { %4642 = vst [vmem:[#allocation13 + $0x48] sm:$0xff] %v6194_v29  ;;  %4476 = vmatpush.bf16.msrb.mxu3 %v5710_v53  ;;  %v5988_v53 = vld [vmem:[#allocation10 + $0x68] sm:$0xf0] }
 0x606   :  { %6197 = vtanh.f32 %v4095_v1  ;;  %v6196_v21 = vpop.eup %6195  ;;  %v4195_v35 = vadd.f32 %v4194_v14, %v4146_v45 }
 0x607   :  { %4650 = vst [vmem:[#allocation13 + $0x88] sm:$0xff] %v6196_v21 }
 0x608   :  { %6199 = vtanh.f32 %v4195_v35 }
 0x609   :  { %v4047_v54 = vpop.f32.mrf.mxu2 }
 0x60a   :  { %v4048_v60 = vadd.f32 %v4047_v54, %v8756_v8  ;;  %v4096_v59 = vpop.f32.mrf.mxu3 }
 0x60b   :  { %v4148_v25 = vpop.f32.mrf.mxu0 }
 0x60c   :  { %v6198_v10 = vpop.eup %6197  ;;  %v4097_v52 = vadd.f32 %v4096_v59, %v4048_v60  ;;  %v4149_v36 = vadd.f32 %v4148_v25, %v8753_v56  ;;  %v4197_v16 = vpop.f32.mrf.mxu1 }
 0x60d   :  { %4649 = vst [vmem:[#allocation13 + $0x80] sm:$0xff] %v6198_v10 }
 0x60e   :  { %6201 = vtanh.f32 %v4097_v52  ;;  %4245 = vmatmul.bf16.gmra.mxu2 %v8641_v19  ;;  %v6200_v40 = vpop.eup %6199  ;;  %v4198_v9 = vadd.f32 %v4197_v16, %v4149_v36  ;;  %4343 = vmatmul.bf16.gmra.mxu0 %v8641_v19  ;;  %v5458_v16 = vor.u32 %v5995_v61, %v5457_v55 }
 0x60f   :  { %4294 = vmatmul.bf16.gmra.mxu3 %v8643_v7  ;;  %4657 = vst [vmem:[#allocation13 + $0xc0] sm:$0xff] %v6200_v40  ;;  %4392 = vmatmul.bf16.gmra.mxu1 %v8643_v7  ;;  %v6051_v40 = vld [vmem:[#allocation10 + $0x260] sm:$0xf0] }
 0x610   :  { %6203 = vtanh.f32 %v4198_v9  ;;  %4428 = vmatpush.bf16.msrb.mxu2 %v5458_v16 }
 0x611   :  { %v4050_v0 = vpop.f32.mrf.mxu2 }
 0x612   :  { %v4051_v2 = vadd.f32 %v4050_v0, %v8756_v8  ;;  %v4099_v32 = vpop.f32.mrf.mxu3  ;;  %v5681_v0 = vld [vmem:[#allocation10 + $0x248] sm:$0xf] }
 0x613   :  { %v4150_v5 = vpop.f32.mrf.mxu0  ;;  %v5682_v9 = vor.u32 %v6051_v40, %v5681_v0  ;;  %v5401_v40 = vld [vmem:[#allocation10 + $0x18] sm:$0xf] }
 0x614   :  { %v6202_v41 = vpop.eup %6201  ;;  %v4100_v17 = vadd.f32 %v4099_v32, %v4051_v2  ;;  %v4151_v18 = vadd.f32 %v4150_v5, %v8753_v56  ;;  %v4199_v44 = vpop.f32.mrf.mxu1 }
 0x615   :  { %4656 = vst [vmem:[#allocation13 + $0xb8] sm:$0xff] %v6202_v41  ;;  %4477 = vmatpush.bf16.msrb.mxu3 %v5682_v9  ;;  %v5981_v9 = vld [vmem:[#allocation10 + $0x30] sm:$0xf0] }
 0x616   :  { %6205 = vtanh.f32 %v4100_v17  ;;  %v6204_v58 = vpop.eup %6203  ;;  %v4200_v39 = vadd.f32 %v4199_v44, %v4151_v18 }
 0x617   :  { %4664 = vst [vmem:[#allocation13 + $0xf8] sm:$0xff] %v6204_v58 }
 0x618   :  { %6207 = vtanh.f32 %v4200_v39 }
 0x619   :  { %v4052_v49 = vpop.f32.mrf.mxu2 }
 0x61a   :  { %v4053_v22 = vadd.f32 %v4052_v49, %v8756_v8  ;;  %v4101_v38 = vpop.f32.mrf.mxu3 }
 0x61b   :  { %v4153_v37 = vpop.f32.mrf.mxu0 }
 0x61c   :  { %v6206_v51 = vpop.eup %6205  ;;  %v4102_v47 = vadd.f32 %v4101_v38, %v4053_v22  ;;  %v4154_v23 = vadd.f32 %v4153_v37, %v8753_v56  ;;  %v4202_v29 = vpop.f32.mrf.mxu1 }
 0x61d   :  { %4663 = vst [vmem:[#allocation13 + $0xf0] sm:$0xff] %v6206_v51 }
 0x61e   :  { %6209 = vtanh.f32 %v4102_v47  ;;  %4250 = vmatmul.bf16.gmra.mxu2 %v8661_v26  ;;  %v6208_v48 = vpop.eup %6207  ;;  %v4203_v45 = vadd.f32 %v4202_v29, %v4154_v23  ;;  %4348 = vmatmul.bf16.gmra.mxu0 %v8661_v26  ;;  %v5430_v29 = vor.u32 %v5988_v53, %v5429_v62 }
 0x61f   :  { %4299 = vmatmul.bf16.gmra.mxu3 %v8663_v46  ;;  %4671 = vst [vmem:[#allocation13 + $0x130] sm:$0xff] %v6208_v48  ;;  %4397 = vmatmul.bf16.gmra.mxu1 %v8663_v46  ;;  %v6044_v48 = vld [vmem:[#allocation10 + $0x228] sm:$0xf0] }
 0x620   :  { %6211 = vtanh.f32 %v4203_v45  ;;  %4429 = vmatpush.bf16.msrb.mxu2 %v5430_v29 }
 0x621   :  { %v4055_v1 = vpop.f32.mrf.mxu2 }
 0x622   :  { %v4056_v14 = vadd.f32 %v4055_v1, %v8756_v8  ;;  %v4104_v54 = vpop.f32.mrf.mxu3  ;;  %v5653_v1 = vld [vmem:[#allocation10 + $0x210] sm:$0xf] }
 0x623   :  { %v4155_v60 = vpop.f32.mrf.mxu0  ;;  %v5654_v45 = vor.u32 %v6044_v48, %v5653_v1 }
 0x624   :  { %v6210_v21 = vpop.eup %6209  ;;  %v4105_v35 = vadd.f32 %v4104_v54, %v4056_v14  ;;  %v4156_v59 = vadd.f32 %v4155_v60, %v8753_v56  ;;  %v4204_v31 = vpop.f32.mrf.mxu1 }
 0x625   :  { %4670 = vst [vmem:[#allocation13 + $0x128] sm:$0xff] %v6210_v21  ;;  %4478 = vmatpush.bf16.msrb.mxu3 %v5654_v45 }
 0x626   :  { %6213 = vtanh.f32 %v4105_v35  ;;  %v6212_v10 = vpop.eup %6211  ;;  %v4205_v52 = vadd.f32 %v4204_v31, %v4156_v59 }
 0x627   :  { %4678 = vst [vmem:[#allocation13 + $0x168] sm:$0xff] %v6212_v10 }
 0x628   :  { %6215 = vtanh.f32 %v4205_v52 }
 0x629   :  { %v4057_v20 = vpop.f32.mrf.mxu2 }
 0x62a   :  { %v4058_v57 = vadd.f32 %v4057_v20, %v8756_v8  ;;  %v4106_v34 = vpop.f32.mrf.mxu3 }
 0x62b   :  { %v4158_v2 = vpop.f32.mrf.mxu0 }
 0x62c   :  { %v6214_v25 = vpop.eup %6213  ;;  %v4107_v36 = vadd.f32 %v4106_v34, %v4058_v57  ;;  %v4159_v32 = vadd.f32 %v4158_v2, %v8753_v56  ;;  %v4207_v41 = vpop.f32.mrf.mxu1 }
 0x62d   :  { %4677 = vst [vmem:[#allocation13 + $0x160] sm:$0xff] %v6214_v25 }
 0x62e   :  { %6217 = vtanh.f32 %v4107_v36  ;;  %4255 = vmatmul.bf16.gmra.mxu2 %v8598_v27  ;;  %v6216_v5 = vpop.eup %6215  ;;  %v4208_v18 = vadd.f32 %v4207_v41, %v4159_v32  ;;  %4353 = vmatmul.bf16.gmra.mxu0 %v8598_v27  ;;  %v5402_v41 = vor.u32 %v5981_v9, %v5401_v40 }
 0x62f   :  { %4304 = vmatmul.bf16.gmra.mxu3 %v8601_v63  ;;  %4685 = vst [vmem:[#allocation13 + $0x1a0] sm:$0xff] %v6216_v5  ;;  %4402 = vmatmul.bf16.gmra.mxu1 %v8601_v63  ;;  %v6037_v5 = vld [vmem:[#allocation10 + $0x1f0] sm:$0xf0] }
 0x630   :  { %6219 = vtanh.f32 %v4208_v18  ;;  %4430 = vmatpush.bf16.msrb.mxu2 %v5402_v41 }
 0x631   :  { %v4060_v17 = vpop.f32.mrf.mxu2 }
 0x632   :  { %v4061_v44 = vadd.f32 %v4060_v17, %v8756_v8  ;;  %v4109_v49 = vpop.f32.mrf.mxu3  ;;  %v5625_v17 = vld [vmem:[#allocation10 + $0x1d8] sm:$0xf] }
 0x633   :  { %v4160_v22 = vpop.f32.mrf.mxu0  ;;  %v5626_v18 = vor.u32 %v6037_v5, %v5625_v17 }
 0x634   :  { %v6218_v58 = vpop.eup %6217  ;;  %v4110_v39 = vadd.f32 %v4109_v49, %v4061_v44  ;;  %v4161_v38 = vadd.f32 %v4160_v22, %v8753_v56  ;;  %v4209_v12 = vpop.f32.mrf.mxu1 }
 0x635   :  { %4684 = vst [vmem:[#allocation13 + $0x198] sm:$0xff] %v6218_v58  ;;  %4479 = vmatpush.bf16.msrb.mxu3 %v5626_v18 }
 0x636   :  { %6221 = vtanh.f32 %v4110_v39  ;;  %v6220_v51 = vpop.eup %6219  ;;  %v4210_v47 = vadd.f32 %v4209_v12, %v4161_v38 }
 0x637   :  { %4692 = vst [vmem:[#allocation13 + $0x1d8] sm:$0xff] %v6220_v51 }
 0x638   :  { %6223 = vtanh.f32 %v4210_v47 }
 0x639   :  { %v4062_v28 = vpop.f32.mrf.mxu2 }
 0x63a   :  { %v4063_v13 = vadd.f32 %v4062_v28, %v8756_v8  ;;  %v4111_v33 = vpop.f32.mrf.mxu3 }
 0x63b   :  { %v4163_v14 = vpop.f32.mrf.mxu0 }
 0x63c   :  { %v6222_v37 = vpop.eup %6221  ;;  %v4112_v23 = vadd.f32 %v4111_v33, %v4063_v13  ;;  %v4164_v54 = vadd.f32 %v4163_v14, %v8753_v56  ;;  %v4212_v21 = vpop.f32.mrf.mxu1 }
 0x63d   :  { %4691 = vst [vmem:[#allocation13 + $0x1d0] sm:$0xff] %v6222_v37 }
 0x63e   :  { %6225 = vtanh.f32 %v4112_v23  ;;  %4260 = vmatmul.bf16.gmra.mxu2 %v8608_v3  ;;  %v6224_v60 = vpop.eup %6223  ;;  %v4213_v59 = vadd.f32 %v4212_v21, %v4164_v54  ;;  %4358 = vmatmul.bf16.gmra.mxu0 %v8608_v3 }
 0x63f   :  { %4309 = vmatmul.bf16.gmra.mxu3 %v8613_v4  ;;  %4699 = vst [vmem:[#allocation13 + $0x210] sm:$0xff] %v6224_v60  ;;  %4407 = vmatmul.bf16.gmra.mxu1 %v8613_v4 }
 0x640   :  { %6227 = vtanh.f32 %v4213_v59 }
 0x641   :  { %v4065_v35 = vpop.f32.mrf.mxu2 }
 0x642   :  { %v4066_v31 = vadd.f32 %v4065_v35, %v8756_v8  ;;  %v4114_v20 = vpop.f32.mrf.mxu3 }
 0x643   :  { %v4165_v57 = vpop.f32.mrf.mxu0 }
 0x644   :  { %v6226_v10 = vpop.eup %6225  ;;  %v4115_v52 = vadd.f32 %v4114_v20, %v4066_v31  ;;  %v4166_v34 = vadd.f32 %v4165_v57, %v8753_v56  ;;  %v4214_v55 = vpop.f32.mrf.mxu1  ;;  %v122_v57 = vld [vmem:[#allocation11 + $0x30] sm:$0x77] }
 0x645   :  { %4698 = vst [vmem:[#allocation13 + $0x208] sm:$0xff] %v6226_v10 }
 0x646   :  { %6229 = vtanh.f32 %v4115_v52  ;;  %v6228_v25 = vpop.eup %6227  ;;  %v4215_v36 = vadd.f32 %v4214_v55, %v4166_v34 }
 0x647   :  { %4706 = vst [vmem:[#allocation13 + $0x248] sm:$0xff] %v6228_v25  ;;  %v3243_v25 = vperm.slane %v122_v57, 4 }
 0x648   :  { %6231 = vtanh.f32 %v4215_v36 }
 0x649   :  { %v4067_v61 = vpop.f32.mrf.mxu2  ;;  %v8821_v17 = vperm.slane %v3243_v25, 0 }
 0x64a   :  { %v4068_v16 = vadd.f32 %v4067_v61, %v8756_v8  ;;  %v4116_v0 = vpop.f32.mrf.mxu3 }
 0x64b   :  { %v4168_v44 = vpop.f32.mrf.mxu0 }
 0x64c   :  { %v6230_v2 = vpop.eup %6229  ;;  %v4117_v32 = vadd.f32 %v4116_v0, %v4068_v16  ;;  %v4169_v49 = vadd.f32 %v4168_v44, %v8753_v56  ;;  %v4217_v58 = vpop.f32.mrf.mxu1 }
 0x64d   :  { %4705 = vst [vmem:[#allocation13 + $0x240] sm:$0xff] %v6230_v2  ;;  %v3242_v2 = vperm.slane %v122_v57, 0 }
 0x64e   :  { %6233 = vtanh.f32 %v4117_v32  ;;  %4265 = vmatmul.bf16.gmra.mxu2 %v8617_v11  ;;  %v6232_v22 = vpop.eup %6231  ;;  %v4218_v38 = vadd.f32 %v4217_v58, %v4169_v49  ;;  %4363 = vmatmul.bf16.gmra.mxu0 %v8617_v11 }
 0x64f   :  { %4314 = vmatmul.bf16.gmra.mxu3 %v8619_v50  ;;  %4713 = vst [vmem:[#allocation13 + $0x280] sm:$0xff] %v6232_v22  ;;  %4412 = vmatmul.bf16.gmra.mxu1 %v8619_v50 }
 0x650   :  { %6235 = vtanh.f32 %v4218_v38 }
 0x651   :  { %v4070_v39 = vpop.f32.mrf.mxu2 }
 0x652   :  { %v4071_v12 = vadd.f32 %v4070_v39, %v8756_v8  ;;  %v4119_v28 = vpop.f32.mrf.mxu3 }
 0x653   :  { %v4170_v13 = vpop.f32.mrf.mxu0 }
 0x654   :  { %v6234_v51 = vpop.eup %6233  ;;  %v4120_v47 = vadd.f32 %v4119_v28, %v4071_v12  ;;  %v4171_v33 = vadd.f32 %v4170_v13, %v8753_v56  ;;  %v4219_v62 = vpop.f32.mrf.mxu1 }
 0x655   :  { %4712 = vst [vmem:[#allocation13 + $0x278] sm:$0xff] %v6234_v51 }
 0x656   :  { %6237 = vtanh.f32 %v4120_v47  ;;  %v6236_v37 = vpop.eup %6235  ;;  %v4220_v23 = vadd.f32 %v4219_v62, %v4171_v33 }
 0x657   :  { %4720 = vst [vmem:[#allocation13 + $0x2b8] sm:$0xff] %v6236_v37 }
 0x658   :  { %6239 = vtanh.f32 %v4220_v23 }
 0x659   :  { %v4072_v53 = vpop.f32.mrf.mxu2 }
 0x65a   :  { %v4073_v29 = vadd.f32 %v4072_v53, %v8756_v8  ;;  %v4121_v1 = vpop.f32.mrf.mxu3 }
 0x65b   :  { %v4173_v14 = vpop.f32.mrf.mxu0 }
 0x65c   :  { %v6238_v48 = vpop.eup %6237  ;;  %v4122_v45 = vadd.f32 %v4121_v1, %v4073_v29  ;;  %v4174_v54 = vadd.f32 %v4173_v14, %v8753_v56  ;;  %v4222_v21 = vpop.f32.mrf.mxu1 }
 0x65d   :  { %4719 = vst [vmem:[#allocation13 + $0x2b0] sm:$0xff] %v6238_v48 }
 0x65e   :  { %6241 = vtanh.f32 %v4122_v45  ;;  %4270 = vmatmul.bf16.gmra.mxu2 %v8624_v15  ;;  %v6240_v60 = vpop.eup %6239  ;;  %v4223_v59 = vadd.f32 %v4222_v21, %v4174_v54  ;;  %4368 = vmatmul.bf16.gmra.mxu0 %v8624_v15 }
 0x65f   :  { %4319 = vmatmul.bf16.gmra.mxu3 %v8540_v24  ;;  %4727 = vst [vmem:[#allocation13 + $0x2f0] sm:$0xff] %v6240_v60  ;;  %4417 = vmatmul.bf16.gmra.mxu1 %v8540_v24 }
 0x660   :  { %6243 = vtanh.f32 %v4223_v59 }
 0x661   :  { %v4075_v35 = vpop.f32.mrf.mxu2 }
 0x662   :  { %v4076_v31 = vadd.f32 %v4075_v35, %v8756_v8  ;;  %v4124_v20 = vpop.f32.mrf.mxu3 }
 0x663   :  { %v4175_v34 = vpop.f32.mrf.mxu0 }
 0x664   :  { %v6242_v10 = vpop.eup %6241  ;;  %v4125_v52 = vadd.f32 %v4124_v20, %v4076_v31  ;;  %v4176_v55 = vadd.f32 %v4175_v34, %v8753_v56  ;;  %v4224_v61 = vpop.f32.mrf.mxu1  ;;  %v8824_v56 = vperm.slane %v3242_v2, 0 }
 0x665   :  { %4726 = vst [vmem:[#allocation13 + $0x2e8] sm:$0xff] %v6242_v10 }
 0x666   :  { %6245 = vtanh.f32 %v4125_v52  ;;  %v6244_v16 = vpop.eup %6243  ;;  %v4225_v0 = vadd.f32 %v4224_v61, %v4176_v55 }
 0x667   :  { %4734 = vst [vmem:[#allocation13 + $0x328] sm:$0xff] %v6244_v16 }
 0x668   :  { %6247 = vtanh.f32 %v4225_v0 }
 0x669   :  { %v4077_v36 = vpop.f32.mrf.mxu2 }
 0x66a   :  { %v4078_v40 = vadd.f32 %v4077_v36, %v8756_v8  ;;  %v4126_v9 = vpop.f32.mrf.mxu3 }
 0x66b   :  { %v4334_v5 = vpop.f32.mrf.mxu0 }
 0x66c   :  { %v6246_v32 = vpop.eup %6245  ;;  %v4127_v41 = vadd.f32 %v4126_v9, %v4078_v40  ;;  %v4335_v18 = vadd.f32 %v4334_v5, %v8821_v17  ;;  %v4383_v8 = vpop.f32.mrf.mxu1 }
 0x66d   :  { %4733 = vst [vmem:[#allocation13 + $0x320] sm:$0xff] %v6246_v32 }
 0x66e   :  { %6249 = vtanh.f32 %v4127_v41  ;;  %4431 = vmatmul.bf16.vlgmr.msrb.gmra.mxu2 %v8542_v43  ;;  %v6248_v49 = vpop.eup %6247  ;;  %v4384_v58 = vadd.f32 %v4383_v8, %v4335_v18 }
 0x66f   :  { %4480 = vmatmul.bf16.vlgmr.msrb.gmra.mxu3 %v8546_v42  ;;  %4741 = vst [vmem:[#allocation13 + $0x360] sm:$0xff] %v6248_v49 }
 0x670   :  { %6251 = vtanh.f32 %v4384_v58 }
 0x671   :  { %v4236_v44 = vpop.f32.mrf.mxu2 }
 0x672   :  { %v4237_v39 = vadd.f32 %v4236_v44, %v8824_v56  ;;  %v4285_v22 = vpop.f32.mrf.mxu3 }
 0x673   :  { %v4336_v43 = vpop.f32.mrf.mxu0 }
 0x674   :  { %v6250_v38 = vpop.eup %6249  ;;  %v4286_v12 = vadd.f32 %v4285_v22, %v4237_v39  ;;  %v4337_v28 = vadd.f32 %v4336_v43, %v8821_v17  ;;  %v4385_v51 = vpop.f32.mrf.mxu1 }
 0x675   :  { %4740 = vst [vmem:[#allocation13 + $0x358] sm:$0xff] %v6250_v38 }
 0x676   :  { %6253 = vtanh.f32 %v4286_v12  ;;  %v6252_v47 = vpop.eup %6251  ;;  %v4386_v13 = vadd.f32 %v4385_v51, %v4337_v28 }
 0x677   :  { %4638 = vst [vmem:[#allocation13 + $0x28] sm:$0xff] %v6252_v47 }
 0x678   :  { %6255 = vtanh.f32 %v4386_v13 }
 0x679   :  { %v4238_v42 = vpop.f32.mrf.mxu2 }
 0x67a   :  { %v4239_v33 = vadd.f32 %v4238_v42, %v8824_v56  ;;  %v4287_v62 = vpop.f32.mrf.mxu3 }
 0x67b   :  { %v4339_v23 = vpop.f32.mrf.mxu0 }
 0x67c   :  { %v6254_v53 = vpop.eup %6253  ;;  %v4288_v37 = vadd.f32 %v4287_v62, %v4239_v33  ;;  %v4340_v29 = vadd.f32 %v4339_v23, %v8821_v17  ;;  %v4388_v1 = vpop.f32.mrf.mxu1 }
 0x67d   :  { %4637 = vst [vmem:[#allocation13 + $0x20] sm:$0xff] %v6254_v53 }
 0x67e   :  { %6257 = vtanh.f32 %v4288_v37  ;;  %4436 = vmatmul.bf16.gmra.mxu2 %v8615_v6  ;;  %v6256_v45 = vpop.eup %6255  ;;  %v4389_v14 = vadd.f32 %v4388_v1, %v4340_v29 }
 0x67f   :  { %4485 = vmatmul.bf16.gmra.mxu3 %v8621_v30  ;;  %4645 = vst [vmem:[#allocation13 + $0x60] sm:$0xff] %v6256_v45 }
 0x680   :  { %6259 = vtanh.f32 %v4389_v14 }
 0x681   :  { %v4241_v48 = vpop.f32.mrf.mxu2 }
 0x682   :  { %v4242_v54 = vadd.f32 %v4241_v48, %v8824_v56  ;;  %v4290_v21 = vpop.f32.mrf.mxu3 }
 0x683   :  { %v4341_v59 = vpop.f32.mrf.mxu0 }
 0x684   :  { %v6258_v35 = vpop.eup %6257  ;;  %v4291_v60 = vadd.f32 %v4290_v21, %v4242_v54  ;;  %v4342_v6 = vadd.f32 %v4341_v59, %v8821_v17  ;;  %v4390_v31 = vpop.f32.mrf.mxu1 }
 0x685   :  { %4644 = vst [vmem:[#allocation13 + $0x58] sm:$0xff] %v6258_v35 }
 0x686   :  { %6261 = vtanh.f32 %v4291_v60  ;;  %v6260_v20 = vpop.eup %6259  ;;  %v4391_v10 = vadd.f32 %v4390_v31, %v4342_v6 }
 0x687   :  { %4652 = vst [vmem:[#allocation13 + $0x98] sm:$0xff] %v6260_v20 }
 0x688   :  { %6263 = vtanh.f32 %v4391_v10 }
 0x689   :  { %v4243_v30 = vpop.f32.mrf.mxu2 }
 0x68a   :  { %v4244_v52 = vadd.f32 %v4243_v30, %v8824_v56  ;;  %v4292_v57 = vpop.f32.mrf.mxu3 }
 0x68b   :  { %v4344_v61 = vpop.f32.mrf.mxu0 }
 0x68c   :  { %v6262_v34 = vpop.eup %6261  ;;  %v4293_v55 = vadd.f32 %v4292_v57, %v4244_v52  ;;  %v4345_v25 = vadd.f32 %v4344_v61, %v8821_v17  ;;  %v4393_v36 = vpop.f32.mrf.mxu1 }
 0x68d   :  { %4651 = vst [vmem:[#allocation13 + $0x90] sm:$0xff] %v6262_v34 }
 0x68e   :  { %6265 = vtanh.f32 %v4293_v55  ;;  %4441 = vmatmul.bf16.gmra.mxu2 %v8641_v19  ;;  %v6264_v0 = vpop.eup %6263  ;;  %v4394_v40 = vadd.f32 %v4393_v36, %v4345_v25 }
 0x68f   :  { %4490 = vmatmul.bf16.gmra.mxu3 %v8643_v7  ;;  %4659 = vst [vmem:[#allocation13 + $0xd0] sm:$0xff] %v6264_v0 }
 0x690   :  { %6267 = vtanh.f32 %v4394_v40 }
 0x691   :  { %v4246_v16 = vpop.f32.mrf.mxu2 }
 0x692   :  { %v4247_v9 = vadd.f32 %v4246_v16, %v8824_v56  ;;  %v4295_v2 = vpop.f32.mrf.mxu3 }
 0x693   :  { %v4346_v5 = vpop.f32.mrf.mxu0 }
 0x694   :  { %v6266_v32 = vpop.eup %6265  ;;  %v4296_v41 = vadd.f32 %v4295_v2, %v4247_v9  ;;  %v4347_v19 = vadd.f32 %v4346_v5, %v8821_v17  ;;  %v4395_v18 = vpop.f32.mrf.mxu1 }
 0x695   :  { %4658 = vst [vmem:[#allocation13 + $0xc8] sm:$0xff] %v6266_v32 }
 0x696   :  { %6269 = vtanh.f32 %v4296_v41  ;;  %v6268_v8 = vpop.eup %6267  ;;  %v4396_v44 = vadd.f32 %v4395_v18, %v4347_v19 }
 0x697   :  { %4666 = vst [vmem:[#allocation13 + $0x108] sm:$0xff] %v6268_v8 }
 0x698   :  { %6271 = vtanh.f32 %v4396_v44 }
 0x699   :  { %v4248_v7 = vpop.f32.mrf.mxu2 }
 0x69a   :  { %v4249_v49 = vadd.f32 %v4248_v7, %v8824_v56  ;;  %v4297_v58 = vpop.f32.mrf.mxu3 }
 0x69b   :  { %v4349_v38 = vpop.f32.mrf.mxu0 }
 0x69c   :  { %v6270_v39 = vpop.eup %6269  ;;  %v4298_v22 = vadd.f32 %v4297_v58, %v4249_v49  ;;  %v4350_v12 = vadd.f32 %v4349_v38, %v8821_v17  ;;  %v4398_v43 = vpop.f32.mrf.mxu1 }
 0x69d   :  { %4665 = vst [vmem:[#allocation13 + $0x100] sm:$0xff] %v6270_v39 }
 0x69e   :  { %6273 = vtanh.f32 %v4298_v22  ;;  %4446 = vmatmul.bf16.gmra.mxu2 %v8661_v26  ;;  %v6272_v51 = vpop.eup %6271  ;;  %v4399_v42 = vadd.f32 %v4398_v43, %v4350_v12 }
 0x69f   :  { %4495 = vmatmul.bf16.gmra.mxu3 %v8663_v46  ;;  %4673 = vst [vmem:[#allocation13 + $0x140] sm:$0xff] %v6272_v51 }
 0x6a0   :  { %6275 = vtanh.f32 %v4399_v42 }
 0x6a1   :  { %v4251_v28 = vpop.f32.mrf.mxu2 }
 0x6a2   :  { %v4252_v47 = vadd.f32 %v4251_v28, %v8824_v56  ;;  %v4300_v13 = vpop.f32.mrf.mxu3 }
 0x6a3   :  { %v4351_v53 = vpop.f32.mrf.mxu0 }
 0x6a4   :  { %v6274_v33 = vpop.eup %6273  ;;  %v4301_v62 = vadd.f32 %v4300_v13, %v4252_v47  ;;  %v4352_v26 = vadd.f32 %v4351_v53, %v8821_v17  ;;  %v4400_v37 = vpop.f32.mrf.mxu1 }
 0x6a5   :  { %4672 = vst [vmem:[#allocation13 + $0x138] sm:$0xff] %v6274_v33 }
 0x6a6   :  { %6277 = vtanh.f32 %v4301_v62  ;;  %v6276_v23 = vpop.eup %6275  ;;  %v4401_v29 = vadd.f32 %v4400_v37, %v4352_v26 }
 0x6a7   :  { %4680 = vst [vmem:[#allocation13 + $0x178] sm:$0xff] %v6276_v23 }
 0x6a8   :  { %6279 = vtanh.f32 %v4401_v29 }
 0x6a9   :  { %v4253_v46 = vpop.f32.mrf.mxu2 }
 0x6aa   :  { %v4254_v1 = vadd.f32 %v4253_v46, %v8824_v56  ;;  %v4302_v48 = vpop.f32.mrf.mxu3 }
 0x6ab   :  { %v4354_v54 = vpop.f32.mrf.mxu0 }
 0x6ac   :  { %v6278_v45 = vpop.eup %6277  ;;  %v4303_v14 = vadd.f32 %v4302_v48, %v4254_v1  ;;  %v4355_v21 = vadd.f32 %v4354_v54, %v8821_v17  ;;  %v4403_v35 = vpop.f32.mrf.mxu1 }
 0x6ad   :  { %4679 = vst [vmem:[#allocation13 + $0x170] sm:$0xff] %v6278_v45 }
 0x6ae   :  { %6281 = vtanh.f32 %v4303_v14  ;;  %4451 = vmatmul.bf16.gmra.mxu2 %v8598_v27  ;;  %v6280_v59 = vpop.eup %6279  ;;  %v4404_v6 = vadd.f32 %v4403_v35, %v4355_v21 }
 0x6af   :  { %4500 = vmatmul.bf16.gmra.mxu3 %v8601_v63  ;;  %4687 = vst [vmem:[#allocation13 + $0x1b0] sm:$0xff] %v6280_v59 }
 0x6b0   :  { %6283 = vtanh.f32 %v4404_v6 }
 0x6b1   :  { %v4256_v60 = vpop.f32.mrf.mxu2 }
 0x6b2   :  { %v4257_v31 = vadd.f32 %v4256_v60, %v8824_v56  ;;  %v4305_v30 = vpop.f32.mrf.mxu3 }
 0x6b3   :  { %v4356_v52 = vpop.f32.mrf.mxu0 }
 0x6b4   :  { %v6282_v20 = vpop.eup %6281  ;;  %v4306_v10 = vadd.f32 %v4305_v30, %v4257_v31  ;;  %v4357_v27 = vadd.f32 %v4356_v52, %v8821_v17  ;;  %v4405_v57 = vpop.f32.mrf.mxu1 }
 0x6b5   :  { %4686 = vst [vmem:[#allocation13 + $0x1a8] sm:$0xff] %v6282_v20 }
 0x6b6   :  { %6285 = vtanh.f32 %v4306_v10  ;;  %v6284_v34 = vpop.eup %6283  ;;  %v4406_v55 = vadd.f32 %v4405_v57, %v4357_v27 }
 0x6b7   :  { %4694 = vst [vmem:[#allocation13 + $0x1e8] sm:$0xff] %v6284_v34 }
 0x6b8   :  { %6287 = vtanh.f32 %v4406_v55 }
 0x6b9   :  { %v4258_v63 = vpop.f32.mrf.mxu2 }
 0x6ba   :  { %v4259_v61 = vadd.f32 %v4258_v63, %v8824_v56  ;;  %v4307_v25 = vpop.f32.mrf.mxu3 }
 0x6bb   :  { %v4359_v0 = vpop.f32.mrf.mxu0 }
 0x6bc   :  { %v6286_v36 = vpop.eup %6285  ;;  %v4308_v16 = vadd.f32 %v4307_v25, %v4259_v61  ;;  %v4360_v40 = vadd.f32 %v4359_v0, %v8821_v17  ;;  %v4408_v9 = vpop.f32.mrf.mxu1 }
 0x6bd   :  { %4693 = vst [vmem:[#allocation13 + $0x1e0] sm:$0xff] %v6286_v36 }
 0x6be   :  { %6289 = vtanh.f32 %v4308_v16  ;;  %4456 = vmatmul.bf16.gmra.mxu2 %v8608_v3  ;;  %v6288_v32 = vpop.eup %6287  ;;  %v4409_v41 = vadd.f32 %v4408_v9, %v4360_v40 }
 0x6bf   :  { %4505 = vmatmul.bf16.gmra.mxu3 %v8613_v4  ;;  %4701 = vst [vmem:[#allocation13 + $0x220] sm:$0xff] %v6288_v32 }
 0x6c0   :  { %6291 = vtanh.f32 %v4409_v41 }
 0x6c1   :  { %v4261_v2 = vpop.f32.mrf.mxu2 }
 0x6c2   :  { %v4262_v5 = vadd.f32 %v4261_v2, %v8824_v56  ;;  %v4310_v19 = vpop.f32.mrf.mxu3 }
 0x6c3   :  { %v4361_v8 = vpop.f32.mrf.mxu0 }
 0x6c4   :  { %v6290_v18 = vpop.eup %6289  ;;  %v4311_v7 = vadd.f32 %v4310_v19, %v4262_v5  ;;  %v4362_v3 = vadd.f32 %v4361_v8, %v8821_v17  ;;  %v4410_v44 = vpop.f32.mrf.mxu1 }
 0x6c5   :  { %4700 = vst [vmem:[#allocation13 + $0x218] sm:$0xff] %v6290_v18 }
 0x6c6   :  { %6293 = vtanh.f32 %v4311_v7  ;;  %v6292_v49 = vpop.eup %6291  ;;  %v4411_v58 = vadd.f32 %v4410_v44, %v4362_v3 }
 0x6c7   :  { %4708 = vst [vmem:[#allocation13 + $0x258] sm:$0xff] %v6292_v49 }
 0x6c8   :  { %6295 = vtanh.f32 %v4411_v58 }
 0x6c9   :  { %v4263_v4 = vpop.f32.mrf.mxu2 }
 0x6ca   :  { %v4264_v39 = vadd.f32 %v4263_v4, %v8824_v56  ;;  %v4312_v22 = vpop.f32.mrf.mxu3 }
 0x6cb   :  { %v4364_v43 = vpop.f32.mrf.mxu0 }
 0x6cc   :  { %v6294_v38 = vpop.eup %6293  ;;  %v4313_v12 = vadd.f32 %v4312_v22, %v4264_v39  ;;  %v4365_v28 = vadd.f32 %v4364_v43, %v8821_v17  ;;  %v4413_v51 = vpop.f32.mrf.mxu1 }
 0x6cd   :  { %4707 = vst [vmem:[#allocation13 + $0x250] sm:$0xff] %v6294_v38 }
 0x6ce   :  { %6297 = vtanh.f32 %v4313_v12  ;;  %4461 = vmatmul.bf16.gmra.mxu2 %v8617_v11  ;;  %v6296_v47 = vpop.eup %6295  ;;  %v4414_v13 = vadd.f32 %v4413_v51, %v4365_v28 }
 0x6cf   :  { %4510 = vmatmul.bf16.gmra.mxu3 %v8619_v50  ;;  %4715 = vst [vmem:[#allocation13 + $0x290] sm:$0xff] %v6296_v47 }
 0x6d0   :  { %6299 = vtanh.f32 %v4414_v13 }
 0x6d1   :  { %v4266_v42 = vpop.f32.mrf.mxu2 }
 0x6d2   :  { %v4267_v33 = vadd.f32 %v4266_v42, %v8824_v56  ;;  %v4315_v62 = vpop.f32.mrf.mxu3 }
 0x6d3   :  { %v4366_v37 = vpop.f32.mrf.mxu0 }
 0x6d4   :  { %v6298_v53 = vpop.eup %6297  ;;  %v4316_v26 = vadd.f32 %v4315_v62, %v4267_v33  ;;  %v4367_v11 = vadd.f32 %v4366_v37, %v8821_v17  ;;  %v4415_v46 = vpop.f32.mrf.mxu1 }
 0x6d5   :  { %4714 = vst [vmem:[#allocation13 + $0x288] sm:$0xff] %v6298_v53 }
 0x6d6   :  { %6301 = vtanh.f32 %v4316_v26  ;;  %v6300_v23 = vpop.eup %6299  ;;  %v4416_v29 = vadd.f32 %v4415_v46, %v4367_v11 }
 0x6d7   :  { %4722 = vst [vmem:[#allocation13 + $0x2c8] sm:$0xff] %v6300_v23 }
 0x6d8   :  { %6303 = vtanh.f32 %v4416_v29 }
 0x6d9   :  { %v4268_v50 = vpop.f32.mrf.mxu2 }
 0x6da   :  { %v4269_v1 = vadd.f32 %v4268_v50, %v8824_v56  ;;  %v4317_v48 = vpop.f32.mrf.mxu3 }
 0x6db   :  { %v4369_v54 = vpop.f32.mrf.mxu0 }
 0x6dc   :  { %v6302_v45 = vpop.eup %6301  ;;  %v4318_v14 = vadd.f32 %v4317_v48, %v4269_v1  ;;  %v4370_v21 = vadd.f32 %v4369_v54, %v8821_v17  ;;  %v4418_v35 = vpop.f32.mrf.mxu1 }
 0x6dd   :  { %4721 = vst [vmem:[#allocation13 + $0x2c0] sm:$0xff] %v6302_v45 }
 0x6de   :  { %6305 = vtanh.f32 %v4318_v14  ;;  %4466 = vmatmul.bf16.gmra.mxu2 %v8624_v15  ;;  %v6304_v59 = vpop.eup %6303  ;;  %v4419_v6 = vadd.f32 %v4418_v35, %v4370_v21  ;;  %v123_v15 = vld [vmem:[#allocation11 + $0x38] sm:$0x7] }
 0x6df   :  { %4515 = vmatmul.bf16.gmra.mxu3 %v8540_v24  ;;  %4729 = vst [vmem:[#allocation13 + $0x300] sm:$0xff] %v6304_v59  ;;  %v3244_v25 = vperm.slane %v123_v15, 0 }
 0x6e0   :  { %6307 = vtanh.f32 %v4419_v6 }
 0x6e1   :  { %v4271_v60 = vpop.f32.mrf.mxu2  ;;  %v8873_v0 = vperm.slane %v3244_v25, 0 }
 0x6e2   :  { %v4272_v31 = vadd.f32 %v4271_v60, %v8824_v56  ;;  %v4320_v30 = vpop.f32.mrf.mxu3 }
 0x6e3   :  { %v4371_v52 = vpop.f32.mrf.mxu0 }
 0x6e4   :  { %v6306_v20 = vpop.eup %6305  ;;  %v4321_v10 = vadd.f32 %v4320_v30, %v4272_v31  ;;  %v4372_v27 = vadd.f32 %v4371_v52, %v8821_v17  ;;  %v4420_v24 = vpop.f32.mrf.mxu1 }
 0x6e5   :  { %4728 = vst [vmem:[#allocation13 + $0x2f8] sm:$0xff] %v6306_v20 }
 0x6e6   :  { %6309 = vtanh.f32 %v4321_v10  ;;  %v6308_v63 = vpop.eup %6307  ;;  %v4421_v34 = vadd.f32 %v4420_v24, %v4372_v27 }
 0x6e7   :  { %4736 = vst [vmem:[#allocation13 + $0x338] sm:$0xff] %v6308_v63 }
 0x6e8   :  { %6311 = vtanh.f32 %v4421_v34 }
 0x6e9   :  { %v4273_v57 = vpop.f32.mrf.mxu2 }
 0x6ea   :  { %v4274_v55 = vadd.f32 %v4273_v57, %v8824_v56  ;;  %v4322_v61 = vpop.f32.mrf.mxu3 }
 0x6ec   :  { %v6310_v36 = vpop.eup %6309  ;;  %v4323_v16 = vadd.f32 %v4322_v61, %v4274_v55 }
 0x6ed   :  { %4735 = vst [vmem:[#allocation13 + $0x330] sm:$0xff] %v6310_v36 }
 0x6ee   :  { %6313 = vtanh.f32 %v4323_v16  ;;  %v6312_v9 = vpop.eup %6311 }
 0x6ef   :  { %4743 = vst [vmem:[#allocation13 + $0x370] sm:$0xff] %v6312_v9 }
 0x6f1   :  { %v4432_v40 = vpop.f32.mrf.mxu2 }
 0x6f2   :  { %v4433_v17 = vadd.f32 %v4432_v40, %v8873_v0  ;;  %v4481_v2 = vpop.f32.mrf.mxu3 }
 0x6f4   :  { %v6314_v32 = vpop.eup %6313  ;;  %v4482_v41 = vadd.f32 %v4481_v2, %v4433_v17 }
 0x6f5   :  { %4742 = vst [vmem:[#allocation13 + $0x368] sm:$0xff] %v6314_v32 }
 0x6f6   :  { %6315 = vtanh.f32 %v4482_v41 }
 0x6f9   :  { %v4434_v56 = vpop.f32.mrf.mxu2 }
 0x6fa   :  { %v4435_v5 = vadd.f32 %v4434_v56, %v8873_v0  ;;  %v4483_v19 = vpop.f32.mrf.mxu3 }
 0x6fc   :  { %v6316_v18 = vpop.eup %6315  ;;  %v4484_v7 = vadd.f32 %v4483_v19, %v4435_v5 }
 0x6fd   :  { %4639 = vst [vmem:[#allocation13 + $0x30] sm:$0xff] %v6316_v18 }
 0x6fe   :  { %6317 = vtanh.f32 %v4484_v7 }
 0x701   :  { %v4437_v8 = vpop.f32.mrf.mxu2 }
 0x702   :  { %v4438_v3 = vadd.f32 %v4437_v8, %v8873_v0  ;;  %v4486_v44 = vpop.f32.mrf.mxu3 }
 0x704   :  { %v6318_v4 = vpop.eup %6317  ;;  %v4487_v49 = vadd.f32 %v4486_v44, %v4438_v3 }
 0x705   :  { %4646 = vst [vmem:[#allocation13 + $0x68] sm:$0xff] %v6318_v4 }
 0x706   :  { %6319 = vtanh.f32 %v4487_v49 }
 0x709   :  { %v4439_v58 = vpop.f32.mrf.mxu2 }
 0x70a   :  { %v4440_v39 = vadd.f32 %v4439_v58, %v8873_v0  ;;  %v4488_v22 = vpop.f32.mrf.mxu3 }
 0x70c   :  { %v6320_v38 = vpop.eup %6319  ;;  %v4489_v12 = vadd.f32 %v4488_v22, %v4440_v39 }
 0x70d   :  { %4653 = vst [vmem:[#allocation13 + $0xa0] sm:$0xff] %v6320_v38 }
 0x70e   :  { %6321 = vtanh.f32 %v4489_v12 }
 0x711   :  { %v4442_v43 = vpop.f32.mrf.mxu2 }
 0x712   :  { %v4443_v28 = vadd.f32 %v4442_v43, %v8873_v0  ;;  %v4491_v51 = vpop.f32.mrf.mxu3 }
 0x714   :  { %v6322_v42 = vpop.eup %6321  ;;  %v4492_v47 = vadd.f32 %v4491_v51, %v4443_v28 }
 0x715   :  { %4660 = vst [vmem:[#allocation13 + $0xd8] sm:$0xff] %v6322_v42 }
 0x716   :  { %6323 = vtanh.f32 %v4492_v47 }
 0x719   :  { %v4444_v13 = vpop.f32.mrf.mxu2 }
 0x71a   :  { %v4445_v33 = vadd.f32 %v4444_v13, %v8873_v0  ;;  %v4493_v62 = vpop.f32.mrf.mxu3 }
 0x71c   :  { %v6324_v53 = vpop.eup %6323  ;;  %v4494_v26 = vadd.f32 %v4493_v62, %v4445_v33 }
 0x71d   :  { %4667 = vst [vmem:[#allocation13 + $0x110] sm:$0xff] %v6324_v53 }
 0x71e   :  { %6325 = vtanh.f32 %v4494_v26 }
 0x721   :  { %v4447_v37 = vpop.f32.mrf.mxu2 }
 0x722   :  { %v4448_v11 = vadd.f32 %v4447_v37, %v8873_v0  ;;  %v4496_v46 = vpop.f32.mrf.mxu3 }
 0x724   :  { %v6326_v50 = vpop.eup %6325  ;;  %v4497_v23 = vadd.f32 %v4496_v46, %v4448_v11 }
 0x725   :  { %4674 = vst [vmem:[#allocation13 + $0x148] sm:$0xff] %v6326_v50 }
 0x726   :  { %6327 = vtanh.f32 %v4497_v23 }
 0x729   :  { %v4449_v29 = vpop.f32.mrf.mxu2 }
 0x72a   :  { %v4450_v1 = vadd.f32 %v4449_v29, %v8873_v0  ;;  %v4498_v48 = vpop.f32.mrf.mxu3 }
 0x72c   :  { %v6328_v45 = vpop.eup %6327  ;;  %v4499_v14 = vadd.f32 %v4498_v48, %v4450_v1 }
 0x72d   :  { %4681 = vst [vmem:[#allocation13 + $0x180] sm:$0xff] %v6328_v45 }
 0x72e   :  { %6329 = vtanh.f32 %v4499_v14 }
 0x731   :  { %v4452_v54 = vpop.f32.mrf.mxu2 }
 0x732   :  { %v4453_v21 = vadd.f32 %v4452_v54, %v8873_v0  ;;  %v4501_v35 = vpop.f32.mrf.mxu3 }
 0x734   :  { %v6330_v60 = vpop.eup %6329  ;;  %v4502_v59 = vadd.f32 %v4501_v35, %v4453_v21 }
 0x735   :  { %4688 = vst [vmem:[#allocation13 + $0x1b8] sm:$0xff] %v6330_v60 }
 0x736   :  { %6331 = vtanh.f32 %v4502_v59 }
 0x739   :  { %v4454_v6 = vpop.f32.mrf.mxu2 }
 0x73a   :  { %v4455_v31 = vadd.f32 %v4454_v6, %v8873_v0  ;;  %v4503_v30 = vpop.f32.mrf.mxu3 }
 0x73c   :  { %v6332_v20 = vpop.eup %6331  ;;  %v4504_v10 = vadd.f32 %v4503_v30, %v4455_v31 }
 0x73d   :  { %4695 = vst [vmem:[#allocation13 + $0x1f0] sm:$0xff] %v6332_v20 }
 0x73e   :  { %6333 = vtanh.f32 %v4504_v10 }
 0x741   :  { %v4457_v52 = vpop.f32.mrf.mxu2 }
 0x742   :  { %v4458_v15 = vadd.f32 %v4457_v52, %v8873_v0  ;;  %v4506_v27 = vpop.f32.mrf.mxu3 }
 0x744   :  { %v6334_v24 = vpop.eup %6333  ;;  %v4507_v57 = vadd.f32 %v4506_v27, %v4458_v15 }
 0x745   :  { %4702 = vst [vmem:[#allocation13 + $0x228] sm:$0xff] %v6334_v24 }
 0x746   :  { %6335 = vtanh.f32 %v4507_v57 }
 0x749   :  { %v4459_v63 = vpop.f32.mrf.mxu2 }
 0x74a   :  { %v4460_v34 = vadd.f32 %v4459_v63, %v8873_v0  ;;  %v4508_v55 = vpop.f32.mrf.mxu3 }
 0x74c   :  { %v6336_v61 = vpop.eup %6335  ;;  %v4509_v25 = vadd.f32 %v4508_v55, %v4460_v34 }
 0x74d   :  { %4709 = vst [vmem:[#allocation13 + $0x260] sm:$0xff] %v6336_v61 }
 0x74e   :  { %6337 = vtanh.f32 %v4509_v25 }
 0x751   :  { %v4462_v36 = vpop.f32.mrf.mxu2 }
 0x752   :  { %v4463_v16 = vadd.f32 %v4462_v36, %v8873_v0  ;;  %v4511_v40 = vpop.f32.mrf.mxu3 }
 0x754   :  { %v6338_v9 = vpop.eup %6337  ;;  %v4512_v17 = vadd.f32 %v4511_v40, %v4463_v16 }
 0x755   :  { %4716 = vst [vmem:[#allocation13 + $0x298] sm:$0xff] %v6338_v9 }
 0x756   :  { %6339 = vtanh.f32 %v4512_v17 }
 0x759   :  { %v4464_v2 = vpop.f32.mrf.mxu2 }
 0x75a   :  { %v4465_v32 = vadd.f32 %v4464_v2, %v8873_v0  ;;  %v4513_v41 = vpop.f32.mrf.mxu3 }
 0x75c   :  { %v6340_v56 = vpop.eup %6339  ;;  %v4514_v5 = vadd.f32 %v4513_v41, %v4465_v32 }
 0x75d   :  { %4723 = vst [vmem:[#allocation13 + $0x2d0] sm:$0xff] %v6340_v56 }
 0x75e   :  { %6341 = vtanh.f32 %v4514_v5 }
 0x761   :  { %v4467_v19 = vpop.f32.mrf.mxu2 }
 0x762   :  { %v4468_v18 = vadd.f32 %v4467_v19, %v8873_v0  ;;  %v4516_v7 = vpop.f32.mrf.mxu3 }
 0x764   :  { %v6342_v8 = vpop.eup %6341  ;;  %v4517_v3 = vadd.f32 %v4516_v7, %v4468_v18 }
 0x765   :  { %4730 = vst [vmem:[#allocation13 + $0x308] sm:$0xff] %v6342_v8 }
 0x766   :  { %6343 = vtanh.f32 %v4517_v3 }
 0x769   :  { %v4469_v44 = vpop.f32.mrf.mxu2 }
 0x76a   :  { %v4470_v4 = vadd.f32 %v4469_v44, %v8873_v0  ;;  %v4518_v49 = vpop.f32.mrf.mxu3 }
 0x76c   :  { %v6344_v58 = vpop.eup %6343  ;;  %v4519_v39 = vadd.f32 %v4518_v49, %v4470_v4 }
 0x76d   :  { %4737 = vst [vmem:[#allocation13 + $0x340] sm:$0xff] %v6344_v58 }
 0x76e   :  { %6345 = vtanh.f32 %v4519_v39 }
 0x774   :  { %v6346_v22 = vpop.eup %6345 }
 0x775   :  { %4744 = vst [vmem:[#allocation13 + $0x378] sm:$0xff] %v6346_v22 }
 0x776   :  { %4757 = dma.vmem_to_hbm [thread:$0]  %s4750_s5, 14336, %s4752_s9, [#allocation4], %s6543_s10, %s6543_s10, %s6544_s11  }
 0x777   :  { %6525 = dma.done.wait [#allocation4], 14336  }
 0x778   :  { %6526 = vsyncadd [#allocation4], 4294952960 }
 0x779   :  { %4762 = vsyncpa [#allocation3], 1 }
 0x77a   :  { %4763 = vsyncpa [#allocation6], 1 }
 0x77b   :  { %4764 = vsyncpa [#allocation9], 1 }
 0x77c   :  { %4765 = vsyncpa [#allocation12], 1 }
 0x77d   :  { %4766 = vsyncpa [#allocation4], 1 }

</bundles_post_ra>
